<compile_context>
chip_gen: v5e
topology: v5e:2x2
jax: 0.10.0
libtpu: 0.0.40
codegen_flags: <defaults>
</compile_context>

<pallas_src>
import functools
import math

import jax
import jax.numpy as jnp
from jax.experimental import pallas as pl
from jax.experimental.pallas import tpu as pltpu


# --------------------------- shared compiler params --------------------------

_VMEM_LIMIT_BYTES = 32 * 1024 * 1024   # explicit (v5e default scoped VMEM is 16 MiB)
_CPARAMS_1D = pltpu.CompilerParams(
    dimension_semantics=("parallel",),
    vmem_limit_bytes=_VMEM_LIMIT_BYTES,
)

# Row-tile cap for the MLP / MoE kernels.  ~1024 is fine on v5e/v6e (128 MiB
# VMEM), ~512 on v7x (64 MiB); 512 is the safe common choice.
_ROW_TILE_CAP = 512


def _row_tile(m, cap=_ROW_TILE_CAP):
    """Largest legal row tile: divides m, and is a multiple of 8 (or == m)."""
    if m <= cap:
        return m
    for tm in (cap, 256, 128, 64, 32, 16, 8):
        if m % tm == 0:
            return tm
    # TODO(synk): pad M to a multiple of 8 instead of falling back to one block.
    return m


# ----------------------------- in-kernel math -------------------------------

_GELU_C = math.sqrt(2.0 / math.pi)


def _gelu(x):
    # tanh-approx GELU (EUP tanh); |err| vs torch.nn.GELU's exact erf ~1e-3.
    return 0.5 * x * (1.0 + jnp.tanh(_GELU_C * (x + 0.044715 * x * x * x)))


def _bf16_dot(a, b):
    """MXU matmul: bf16 operands, f32 accumulation."""
    return jnp.dot(a.astype(jnp.bfloat16), b.astype(jnp.bfloat16),
                   preferred_element_type=jnp.float32)


def _softmax_last(x):
    m = jnp.max(x, axis=-1, keepdims=True)
    e = jnp.exp(x - m)
    return e * pl.reciprocal(jnp.sum(e, axis=-1, keepdims=True), approx=True)


def _head_softmax(x, head_mask):
    """Per-head softmax of a lane-dense (rows, D) array, D = H*hd.

    `head_mask` is the (D, D) block-diagonal ones matrix; `e @ head_mask`
    broadcasts each head's sum across that head's lanes, so the whole thing
    stays lane-dense (no (rows, hd) slicing).  The row-global max is used for
    stability (a per-row constant shift cancels inside each head's softmax).
    """
    m = jnp.max(x, axis=-1, keepdims=True)
    e = jnp.exp(x - m)
    s = jnp.dot(e, head_mask, preferred_element_type=jnp.float32)
    return e * pl.reciprocal(s, approx=True)


def _norm_linear_attn(qs, k, v, head_mask):
    """Normalized linear attention, all heads at once, lane-dense (L, D).

    qs: softmaxed query (L, D); k, v: raw projections (Lk, D).
    """
    ks = _head_softmax(k, head_mask)                               # (Lk, D)
    k_sum = jnp.sum(ks, axis=0, keepdims=True)                     # (1, D)
    # Per-head normalizer, broadcast across head lanes via the mask matmul.
    denom = jnp.dot(qs * k_sum, head_mask,
                    preferred_element_type=jnp.float32)            # (L, D)
    alpha = pl.reciprocal(denom, approx=True)
    # Lane-axis contraction: transpose K once (XLU), then standard MXU dot.
    kT = ks.T                                                      # (D, Lk)
    t = _bf16_dot(kT, v) * head_mask                               # (D, D) block-diag
    out = _bf16_dot(qs, t)                                         # (L, D)
    return alpha * out


# ------------------------------ Pallas kernels ------------------------------

def _mlp_kernel(*refs, n_lin, acts, softmax_out):
    """Whole MLP (all layers) for one row tile; optional trailing softmax."""
    x_ref = refs[0]
    o_ref = refs[-1]
    w_refs = refs[1:-1]
    h = x_ref[...].astype(jnp.float32)
    for li in range(n_lin):
        w = w_refs[2 * li][...]
        b = w_refs[2 * li + 1][...]
        h = _bf16_dot(h, w) + b
        if acts[li] == "gelu":
            h = _gelu(h)
    if softmax_out:
        h = _softmax_last(h)
    o_ref[...] = h.astype(o_ref.dtype)


def _self_attn_kernel(x_ref, wqkv_ref, bqkv_ref, mask_ref, o_ref, *, D):
    """Fused q|k|v projection + normalized linear attention, lane-dense.

    Output is the un-scrambled (1, L, D) result softmax(q)+attn; torch's
    (B,H,L,hd)->(B,L,D) reshape is applied by the wrapper.
    """
    x = x_ref[0].astype(jnp.float32)                               # (L, D)
    mask = mask_ref[...]                                           # (D, D)
    qkv = _bf16_dot(x, wqkv_ref[...]) + bqkv_ref[...]              # (L, 3D)
    q = qkv[:, :D]
    k = qkv[:, D:2 * D]
    v = qkv[:, 2 * D:]
    qs = _head_softmax(q, mask)
    res = qs + _norm_linear_attn(qs, k, v, mask)
    o_ref[0] = res.astype(o_ref.dtype)                             # one lane-dense store


def _cross_attn_kernel(*refs, D, n_fns):
    """q projection + per-input-function fused k|v projection + attention.

    softmax(q) and the accumulator are single lane-dense (L, D) arrays and are
    reused for every input function.
    """
    x_ref, wq_ref, bq_ref, mask_ref = refs[:4]
    o_ref = refs[-1]
    fn_refs = refs[4:-1]                       # groups of (f, Wkv, bkv)
    x = x_ref[0].astype(jnp.float32)
    mask = mask_ref[...]
    q = _bf16_dot(x, wq_ref[...]) + bq_ref[...]
    qs = _head_softmax(q, mask)
    acc = jnp.zeros_like(qs)
    for i in range(n_fns):
        f = fn_refs[3 * i][0].astype(jnp.float32)                  # (Lk, D)
        kv = _bf16_dot(f, fn_refs[3 * i + 1][...]) + fn_refs[3 * i + 2][...]
        acc = acc + _norm_linear_attn(qs, kv[:, :D], kv[:, D:], mask)
    res = qs + acc * (1.0 / float(n_fns))
    o_ref[0] = res.astype(o_ref.dtype)


def _ffn_moe_kernel(*refs, E, n_mid, acts_mid):
    """fc_out + all expert MLPs + score-weighted combine + residual add.

    The experts' first layer runs as ONE wide (D, E*Dh) matmul shared by the
    fc_out output; subsequent layers are per-expert.
    """
    res_ref, q_ref, s_ref, wo_ref, bo_ref, w0_ref, b0_ref = refs[:7]
    o_ref = refs[-1]
    w_refs = refs[7:-1]                        # per mid layer: (E,din,dout),(E,1,dout)
    res = res_ref[...].astype(jnp.float32)
    h0 = _bf16_dot(res, wo_ref[...]) + bo_ref[...]                 # fc_out
    wide = _gelu(_bf16_dot(h0, w0_ref[...]) + b0_ref[...])         # (TM, E*Dh)
    dh = w0_ref.shape[1] // E
    scores = s_ref[...].astype(jnp.float32)                        # (TM, E)
    combined = q_ref[...].astype(jnp.float32)                      # start from residual
    # TODO(synk): at production E*Dh, use block-diagonal concatenated weights
    # for the remaining layers too, to stay fully lane-dense.
    for e in range(E):
        h = wide[:, e * dh:(e + 1) * dh]
        for li in range(n_mid):
            w = w_refs[2 * li][e]
            b = w_refs[2 * li + 1][e]
            h = _bf16_dot(h, w) + b
            if acts_mid[li] == "gelu":
                h = _gelu(h)
        combined = combined + scores[:, e:e + 1] * h
    o_ref[...] = combined.astype(o_ref.dtype)


# ------------------------------ kernel wrappers ------------------------------

def _head_mask(D, H):
    hd = D // H
    g = jnp.arange(D) // hd
    return (g[:, None] == g[None, :]).astype(jnp.float32)          # (D, D) block-diag


def _torch_scramble(res, H):
    """Reproduce torch's (B,H,L,hd)->(B,L,D) reshape from the lane-dense result."""
    B, L, D = res.shape
    hd = D // H
    # TODO(synk): fold this + fc_out into the attention kernel epilogue to avoid
    # the extra HBM pass at production scale.
    return res.reshape(B, L, H, hd).transpose(0, 2, 1, 3).reshape(B * L, D)


def mlp_pallas(layers, x2d, softmax_out=False):
    n_lin = len(layers)
    acts = tuple(a for (_, _, a) in layers)
    M, din = x2d.shape
    dout = layers[-1][0].shape[1]
    TM = _row_tile(M)
    args = [x2d]
    in_specs = [pl.BlockSpec((TM, din), lambda i: (i, 0))]
    for (W, b, _) in layers:
        args += [W, b]
        in_specs += [pl.BlockSpec(W.shape, lambda i: (0, 0)),   # weights VMEM-resident
                     pl.BlockSpec(b.shape, lambda i: (0, 0))]
    return pl.pallas_call(
        functools.partial(_mlp_kernel, n_lin=n_lin, acts=acts,
                          softmax_out=softmax_out),
        grid=(M // TM,),
        in_specs=in_specs,
        out_specs=pl.BlockSpec((TM, dout), lambda i: (i, 0)),
        out_shape=jax.ShapeDtypeStruct((M, dout), x2d.dtype),
        compiler_params=_CPARAMS_1D,
    )(*args)


def self_attention_pallas(p, query):
    B, L, D = query.shape
    H = p["head"]
    mask = _head_mask(D, H)
    # TODO(synk): add a q-row tile grid axis (K/V blocks full via index_maps that
    # ignore it) + pl.CostEstimate once L reaches production scale (v7x 64 MiB VMEM).
    return pl.pallas_call(
        functools.partial(_self_attn_kernel, D=D),
        grid=(B,),
        in_specs=[
            pl.BlockSpec((1, L, D), lambda b: (b, 0, 0)),
            pl.BlockSpec((D, 3 * D), lambda b: (0, 0)),
            pl.BlockSpec((1, 3 * D), lambda b: (0, 0)),
            pl.BlockSpec((D, D), lambda b: (0, 0)),
        ],
        out_specs=pl.BlockSpec((1, L, D), lambda b: (b, 0, 0)),
        out_shape=jax.ShapeDtypeStruct((B, L, D), query.dtype),
        compiler_params=_CPARAMS_1D,
    )(query, p["Wqkv"], p["bqkv"], mask)


def cross_attention_pallas(p, query, input_fns):
    B, L, D = query.shape
    H = p["head"]
    mask = _head_mask(D, H)
    n_fns = len(input_fns)
    args = [query, p["Wq"], p["bq"], mask]
    in_specs = [
        pl.BlockSpec((1, L, D), lambda b: (b, 0, 0)),
        pl.BlockSpec((D, D), lambda b: (0, 0)),
        pl.BlockSpec((1, D), lambda b: (0, 0)),
        pl.BlockSpec((D, D), lambda b: (0, 0)),
    ]
    for i, f in enumerate(input_fns):
        Lk = f.shape[1]
        args += [f, p["Wkv"][i], p["bkv"][i]]
        in_specs += [
            pl.BlockSpec((1, Lk, D), lambda b: (b, 0, 0)),
            pl.BlockSpec((D, 2 * D), lambda b: (0, 0)),
            pl.BlockSpec((1, 2 * D), lambda b: (0, 0)),
        ]
    return pl.pallas_call(
        functools.partial(_cross_attn_kernel, D=D, n_fns=n_fns),
        grid=(B,),
        in_specs=in_specs,
        out_specs=pl.BlockSpec((1, L, D), lambda b: (b, 0, 0)),
        out_shape=jax.ShapeDtypeStruct((B, L, D), query.dtype),
        compiler_params=_CPARAMS_1D,
    )(*args)


def ffn_moe_pallas(Wo, bo, ffn, res2d, q2d, scores2d):
    M, D = res2d.shape
    E = ffn["E"]
    W0, b0 = ffn["W0"], ffn["b0"]
    mid = ffn["mid"]
    acts_mid = tuple(a for (_, _, a) in mid)
    dout = mid[-1][0].shape[2] if mid else W0.shape[1] // E
    TM = _row_tile(M)
    args = [res2d, q2d, scores2d, Wo, bo, W0, b0]
    in_specs = [
        pl.BlockSpec((TM, D), lambda i: (i, 0)),
        pl.BlockSpec((TM, q2d.shape[1]), lambda i: (i, 0)),
        pl.BlockSpec((TM, scores2d.shape[1]), lambda i: (i, 0)),
        pl.BlockSpec(Wo.shape, lambda i: (0, 0)),
        pl.BlockSpec(bo.shape, lambda i: (0, 0)),
        pl.BlockSpec(W0.shape, lambda i: (0, 0)),
        pl.BlockSpec(b0.shape, lambda i: (0, 0)),
    ]
    for (Ws, bs, _) in mid:
        args += [Ws, bs]
        in_specs += [pl.BlockSpec(Ws.shape, lambda i: (0, 0, 0)),
                     pl.BlockSpec(bs.shape, lambda i: (0, 0, 0))]
    return pl.pallas_call(
        functools.partial(_ffn_moe_kernel, E=E, n_mid=len(mid),
                          acts_mid=acts_mid),
        grid=(M // TM,),
        in_specs=in_specs,
        out_specs=pl.BlockSpec((TM, dout), lambda i: (i, 0)),
        out_shape=jax.ShapeDtypeStruct((M, dout), res2d.dtype),
        compiler_params=_CPARAMS_1D,
    )(*args)


# ------------------------------ module forward -------------------------------

def block_forward(p, scores2d, query, input_fns):
    B, L, D = query.shape
    H = p["cross"]["head"]
    # cross attention (matches torch: falls back to the fused-qkv path iff the
    # attention was built without input functions, exactly like the reference)
    if input_fns:
        res = cross_attention_pallas(p["cross"], query, input_fns)
    else:
        res = self_attention_pallas(p["cross"], query)
    res2d = _torch_scramble(res, H)            # torch's (B,H,L,hd)->(B,L,D) reshape
    q2d = ffn_moe_pallas(p["cross"]["Wo"], p["cross"]["bo"], p["ffn1"],
                         res2d, query.reshape(B * L, D), scores2d)
    query = q2d.reshape(B, L, D)
    # self attention
    res = self_attention_pallas(p["self"], query)
    res2d = _torch_scramble(res, p["self"]["head"])
    q2d = ffn_moe_pallas(p["self"]["Wo"], p["self"]["bo"], p["ffn2"],
                         res2d, query.reshape(B * L, D), scores2d)
    return q2d.reshape(B, L, D)


def gnot_forward(params, x, theta, input_functions=None):
    B, L, in_dim = x.shape
    scores2d = mlp_pallas(params["gating"], x.reshape(B * L, in_dim),
                          softmax_out=True)                       # (B*L, E)
    theta_exp = jnp.broadcast_to(theta[:, None, :], (B, L, theta.shape[-1]))
    xt = jnp.concatenate([x, theta_exp], axis=-1)
    query = mlp_pallas(params["x"], xt.reshape(B * L, xt.shape[-1]))
    D = query.shape[-1]
    query = query.reshape(B, L, D)
    temp_fns = []
    if input_functions is not None:
        for i, f in enumerate(input_functions):
            Bf, Lf, df = f.shape
            tf = mlp_pallas(params["input_func"][i], f.reshape(Bf * Lf, df))
            temp_fns.append(tf.reshape(Bf, Lf, D))
    for blk in params["blocks"]:
        query = block_forward(blk, scores2d, query, temp_fns)
    out = mlp_pallas(params["out"], query.reshape(B * L, D))
    return out.reshape(B, L, out.shape[-1])


# --------------------------------- init --------------------------------------

def _init_linear(key, din, dout, scale=0.1):
    k1, k2 = jax.random.split(key)
    W = jax.random.normal(k1, (din, dout), jnp.float32) * scale
    b = jax.random.normal(k2, (1, dout), jnp.float32) * scale
    return W, b


def init_mlp(key, num_layers, din, dh, dout):
    n_lin = num_layers + 1
    keys = jax.random.split(key, n_lin)
    layers = []
    W, b = _init_linear(keys[0], din, dh)
    layers.append((W, b, "gelu"))
    for i in range(num_layers - 1):
        W, b = _init_linear(keys[1 + i], dh, dh)
        layers.append((W, b, "gelu"))
    W, b = _init_linear(keys[-1], dh, dout)
    layers.append((W, b, None))
    return layers


def init_attention(key, D, head, n_input_fns):
    keys = jax.random.split(key, 2 + 2 * max(n_input_fns, 1))
    p = {"head": head}
    Wq, bq = _init_linear(keys[0], D, D)
    p["Wo"], p["bo"] = _init_linear(keys[1], D, D)
    if n_input_fns > 0:
        p["Wq"], p["bq"] = Wq, bq
        p["Wkv"], p["bkv"] = [], []
        for i in range(n_input_fns):
            Wk, bk = _init_linear(keys[2 + 2 * i], D, D)
            Wv, bv = _init_linear(keys[3 + 2 * i], D, D)
            p["Wkv"].append(jnp.concatenate([Wk, Wv], axis=1))
            p["bkv"].append(jnp.concatenate([bk, bv], axis=1))
    else:
        Wk, bk = _init_linear(keys[2], D, D)
        Wv, bv = _init_linear(keys[3], D, D)
        p["Wqkv"] = jnp.concatenate([Wq, Wk, Wv], axis=1)
        p["bqkv"] = jnp.concatenate([bq, bk, bv], axis=1)
    return p


def init_expert_stack(key, n_expert, num_layers, din, dh, dout):
    keys = jax.random.split(key, n_expert)
    experts = [init_mlp(keys[e], num_layers, din, dh, dout)
               for e in range(n_expert)]
    n_lin = len(experts[0])
    # First expert layer concatenated along dout -> one wide MXU matmul.
    W0 = jnp.concatenate([experts[e][0][0] for e in range(n_expert)], axis=1)
    b0 = jnp.concatenate([experts[e][0][1] for e in range(n_expert)], axis=1)
    mid = []
    for li in range(1, n_lin):
        Ws = jnp.stack([experts[e][li][0] for e in range(n_expert)], axis=0)
        bs = jnp.stack([experts[e][li][1] for e in range(n_expert)], axis=0)
        mid.append((Ws, bs, experts[0][li][2]))
    return {"E": n_expert, "W0": W0, "b0": b0, "mid": mid}


def init_block(key, D_attn, n_mlp_layers, Dh, Din_hidden,
               n_expert, n_head, n_input_fns):
    k = jax.random.split(key, 4)
    return {
        "cross": init_attention(k[0], D_attn, n_head, n_input_fns),
        "self": init_attention(k[1], D_attn, n_head, 0),
        "ffn1": init_expert_stack(k[2], n_expert, n_mlp_layers,
                                  Din_hidden, Dh, Dh),
        "ffn2": init_expert_stack(k[3], n_expert, n_mlp_layers,
                                  Din_hidden, Dh, Dh),
    }


def init_gnot(key, input_dim, theta_dim, input_func_dim, out_dim,
              n_attn_layers, n_attn_hidden_dim, n_mlp_num_layers,
              n_mlp_hidden_dim, n_input_hidden_dim, n_expert, n_head,
              n_input_functions):
    n_keys = 3 + n_input_functions + n_attn_layers
    keys = jax.random.split(key, n_keys)
    return {
        "x": init_mlp(keys[0], n_mlp_num_layers, input_dim + theta_dim,
                      n_input_hidden_dim, n_input_hidden_dim),
        "gating": init_mlp(keys[1], n_mlp_num_layers, input_dim,
                           n_mlp_hidden_dim, n_expert),
        "input_func": [init_mlp(keys[2 + i], n_mlp_num_layers, input_func_dim,
                                n_mlp_hidden_dim, n_input_hidden_dim)
                       for i in range(n_input_functions)],
        "blocks": [init_block(keys[2 + n_input_functions + j],
                              n_attn_hidden_dim, n_mlp_num_layers,
                              n_mlp_hidden_dim, n_input_hidden_dim,
                              n_expert, n_head, n_input_functions)
                   for j in range(n_attn_layers)],
        "out": init_mlp(keys[-1], n_mlp_num_layers, n_input_hidden_dim,
                        n_mlp_hidden_dim, out_dim),
    }


# ---------------------------------- main -------------------------------------

if __name__ == "__main__":
    input_dim = 4
    theta_dim = 4
    input_func_dim = 4
    out_dim = 8
    n_attn_layers = 2
    n_attn_hidden_dim = 32    # == n_mlp_hidden_dim == n_input_hidden_dim
    n_mlp_num_layers = 2
    n_mlp_hidden_dim = 32
    n_input_hidden_dim = 32
    n_expert = 2
    n_head = 4
    n_input_functions = 2
    B, L = 2, 8

    root = jax.random.PRNGKey(0)
    k_params, k_data = jax.random.split(root)
    params = init_gnot(k_params, input_dim, theta_dim, input_func_dim, out_dim,
                       n_attn_layers, n_attn_hidden_dim, n_mlp_num_layers,
                       n_mlp_hidden_dim, n_input_hidden_dim, n_expert, n_head,
                       n_input_functions)

    kx, kt, kf1, kf2 = jax.random.split(k_data, 4)
    x = jax.random.normal(kx, (B, L, input_dim), jnp.float32)
    theta = jax.random.normal(kt, (B, theta_dim), jnp.float32)
    input_functions = [
        jax.random.normal(kf1, (B, 8, input_func_dim), jnp.float32),
        jax.random.normal(kf2, (B, 16, input_func_dim), jnp.float32),
    ]

    forward = jax.jit(functools.partial(gnot_forward, params))
    out = forward(x, theta, input_functions)
    jax.block_until_ready(out)
    assert out.shape == (B, L, out_dim)
    assert bool(jnp.all(jnp.isfinite(out)))
    print("KERNEL_OK")
</pallas_src>

<mosaic_0001>
module attributes {stable_mosaic.version = 11 : i64} {
  func.func @_mlp_kernel(%arg0: i32, %arg1: memref<16x8xf32, #tpu.memory_space<vmem>>, %arg2: memref<8x32xf32, #tpu.memory_space<vmem>>, %arg3: memref<1x32xf32, #tpu.memory_space<vmem>>, %arg4: memref<32x32xf32, #tpu.memory_space<vmem>>, %arg5: memref<1x32xf32, #tpu.memory_space<vmem>>, %arg6: memref<32x32xf32, #tpu.memory_space<vmem>>, %arg7: memref<1x32xf32, #tpu.memory_space<vmem>>, %arg8: memref<16x32xf32, #tpu.memory_space<vmem>>) attributes {dimension_semantics = [#tpu.dimension_semantics<parallel>], iteration_bounds = array<i64: 1>, scalar_prefetch = 0 : i64, scratch_operands = 0 : i64, tpu.core_type = #tpu.core_type<tc>, window_params = [{transform_indices = @transform_0, window_bounds = array<i64: 16, 8>}, {pipeline_mode = #tpu.pipeline_mode<synchronous>, transform_indices = @transform_1, window_bounds = array<i64: 8, 32>}, {pipeline_mode = #tpu.pipeline_mode<synchronous>, transform_indices = @transform_2, window_bounds = array<i64: 1, 32>}, {pipeline_mode = #tpu.pipeline_mode<synchronous>, transform_indices = @transform_3, window_bounds = array<i64: 32, 32>}, {pipeline_mode = #tpu.pipeline_mode<synchronous>, transform_indices = @transform_4, window_bounds = array<i64: 1, 32>}, {pipeline_mode = #tpu.pipeline_mode<synchronous>, transform_indices = @transform_5, window_bounds = array<i64: 32, 32>}, {pipeline_mode = #tpu.pipeline_mode<synchronous>, transform_indices = @transform_6, window_bounds = array<i64: 1, 32>}, {transform_indices = @transform_7, window_bounds = array<i64: 16, 32>}]} {
    %c0 = arith.constant 0 : index
    %c0_0 = arith.constant 0 : index
    %0 = vector.load %arg1[%c0, %c0_0] : memref<16x8xf32, #tpu.memory_space<vmem>>, vector<16x8xf32>
    %c0_1 = arith.constant 0 : index
    %c0_2 = arith.constant 0 : index
    %1 = vector.load %arg2[%c0_1, %c0_2] : memref<8x32xf32, #tpu.memory_space<vmem>>, vector<8x32xf32>
    %c0_3 = arith.constant 0 : index
    %c0_4 = arith.constant 0 : index
    %2 = vector.load %arg3[%c0_3, %c0_4] : memref<1x32xf32, #tpu.memory_space<vmem>>, vector<1x32xf32>
    %3 = arith.truncf %0 : vector<16x8xf32> to vector<16x8xbf16>
    %4 = arith.truncf %1 : vector<8x32xf32> to vector<8x32xbf16>
    %cst = arith.constant dense<0.000000e+00> : vector<16x32xf32>
    %5 = tpu.matmul %3, %4, %cst {dimension_numbers = #tpu.dot_dimension_numbers<[1], [0], [0], [1], [0, 0, 1, 1], [], []>} : vector<16x8xbf16>, vector<8x32xbf16>, vector<16x32xf32> -> vector<16x32xf32>
    %6 = vector.broadcast %2 : vector<1x32xf32> to vector<16x32xf32>
    %7 = arith.addf %5, %6 : vector<16x32xf32>
    %cst_5 = arith.constant 5.000000e-01 : f32
    %8 = vector.broadcast %cst_5 : f32 to vector<16x32xf32>
    %9 = arith.mulf %8, %7 : vector<16x32xf32>
    %cst_6 = arith.constant 4.471500e-02 : f32
    %10 = vector.broadcast %cst_6 : f32 to vector<16x32xf32>
    %11 = arith.mulf %10, %7 : vector<16x32xf32>
    %12 = arith.mulf %11, %7 : vector<16x32xf32>
    %13 = arith.mulf %12, %7 : vector<16x32xf32>
    %14 = arith.addf %7, %13 : vector<16x32xf32>
    %cst_7 = arith.constant 0.797884583 : f32
    %15 = vector.broadcast %cst_7 : f32 to vector<16x32xf32>
    %16 = arith.mulf %15, %14 : vector<16x32xf32>
    %17 = math.tanh %16 : vector<16x32xf32>
    %cst_8 = arith.constant 1.000000e+00 : f32
    %18 = vector.broadcast %cst_8 : f32 to vector<16x32xf32>
    %19 = arith.addf %18, %17 : vector<16x32xf32>
    %20 = arith.mulf %9, %19 : vector<16x32xf32>
    %c0_9 = arith.constant 0 : index
    %c0_10 = arith.constant 0 : index
    %21 = vector.load %arg4[%c0_9, %c0_10] : memref<32x32xf32, #tpu.memory_space<vmem>>, vector<32x32xf32>
    %c0_11 = arith.constant 0 : index
    %c0_12 = arith.constant 0 : index
    %22 = vector.load %arg5[%c0_11, %c0_12] : memref<1x32xf32, #tpu.memory_space<vmem>>, vector<1x32xf32>
    %23 = arith.truncf %20 : vector<16x32xf32> to vector<16x32xbf16>
    %24 = arith.truncf %21 : vector<32x32xf32> to vector<32x32xbf16>
    %cst_13 = arith.constant dense<0.000000e+00> : vector<16x32xf32>
    %25 = tpu.matmul %23, %24, %cst_13 {dimension_numbers = #tpu.dot_dimension_numbers<[1], [0], [0], [1], [0, 0, 1, 1], [], []>} : vector<16x32xbf16>, vector<32x32xbf16>, vector<16x32xf32> -> vector<16x32xf32>
    %26 = vector.broadcast %22 : vector<1x32xf32> to vector<16x32xf32>
    %27 = arith.addf %25, %26 : vector<16x32xf32>
    %cst_14 = arith.constant 5.000000e-01 : f32
    %28 = vector.broadcast %cst_14 : f32 to vector<16x32xf32>
    %29 = arith.mulf %28, %27 : vector<16x32xf32>
    %cst_15 = arith.constant 4.471500e-02 : f32
    %30 = vector.broadcast %cst_15 : f32 to vector<16x32xf32>
    %31 = arith.mulf %30, %27 : vector<16x32xf32>
    %32 = arith.mulf %31, %27 : vector<16x32xf32>
    %33 = arith.mulf %32, %27 : vector<16x32xf32>
    %34 = arith.addf %27, %33 : vector<16x32xf32>
    %cst_16 = arith.constant 0.797884583 : f32
    %35 = vector.broadcast %cst_16 : f32 to vector<16x32xf32>
    %36 = arith.mulf %35, %34 : vector<16x32xf32>
    %37 = math.tanh %36 : vector<16x32xf32>
    %cst_17 = arith.constant 1.000000e+00 : f32
    %38 = vector.broadcast %cst_17 : f32 to vector<16x32xf32>
    %39 = arith.addf %38, %37 : vector<16x32xf32>
    %40 = arith.mulf %29, %39 : vector<16x32xf32>
    %c0_18 = arith.constant 0 : index
    %c0_19 = arith.constant 0 : index
    %41 = vector.load %arg6[%c0_18, %c0_19] : memref<32x32xf32, #tpu.memory_space<vmem>>, vector<32x32xf32>
    %c0_20 = arith.constant 0 : index
    %c0_21 = arith.constant 0 : index
    %42 = vector.load %arg7[%c0_20, %c0_21] : memref<1x32xf32, #tpu.memory_space<vmem>>, vector<1x32xf32>
    %43 = arith.truncf %40 : vector<16x32xf32> to vector<16x32xbf16>
    %44 = arith.truncf %41 : vector<32x32xf32> to vector<32x32xbf16>
    %cst_22 = arith.constant dense<0.000000e+00> : vector<16x32xf32>
    %45 = tpu.matmul %43, %44, %cst_22 {dimension_numbers = #tpu.dot_dimension_numbers<[1], [0], [0], [1], [0, 0, 1, 1], [], []>} : vector<16x32xbf16>, vector<32x32xbf16>, vector<16x32xf32> -> vector<16x32xf32>
    %46 = vector.broadcast %42 : vector<1x32xf32> to vector<16x32xf32>
    %47 = arith.addf %45, %46 : vector<16x32xf32>
    %c0_23 = arith.constant 0 : index
    %c0_24 = arith.constant 0 : index
    %48 = vector.load %arg8[%c0_23, %c0_24] : memref<16x32xf32, #tpu.memory_space<vmem>>, vector<16x32xf32>
    tpu.vector_store %arg8[%c0_23, %c0_24], %47 {strides = array<i32>} : memref<16x32xf32, #tpu.memory_space<vmem>>, vector<16x32xf32>,
    return
  }
  func.func @transform_0(%arg0: i32) -> (i32, i32) {
    %c0_i32 = arith.constant 0 : i32
    %c0_i32_0 = arith.constant 0 : i32
    return %arg0, %c0_i32 : i32, i32
  }
  func.func @transform_1(%arg0: i32) -> (i32, i32) {
    %c0_i32 = arith.constant 0 : i32
    %c0_i32_0 = arith.constant 0 : i32
    %c0_i32_1 = arith.constant 0 : i32
    return %c0_i32, %c0_i32_0 : i32, i32
  }
  func.func @transform_2(%arg0: i32) -> (i32, i32) {
    %c0_i32 = arith.constant 0 : i32
    %c0_i32_0 = arith.constant 0 : i32
    %c0_i32_1 = arith.constant 0 : i32
    return %c0_i32, %c0_i32_0 : i32, i32
  }
  func.func @transform_3(%arg0: i32) -> (i32, i32) {
    %c0_i32 = arith.constant 0 : i32
    %c0_i32_0 = arith.constant 0 : i32
    %c0_i32_1 = arith.constant 0 : i32
    return %c0_i32, %c0_i32_0 : i32, i32
  }
  func.func @transform_4(%arg0: i32) -> (i32, i32) {
    %c0_i32 = arith.constant 0 : i32
    %c0_i32_0 = arith.constant 0 : i32
    %c0_i32_1 = arith.constant 0 : i32
    return %c0_i32, %c0_i32_0 : i32, i32
  }
  func.func @transform_5(%arg0: i32) -> (i32, i32) {
    %c0_i32 = arith.constant 0 : i32
    %c0_i32_0 = arith.constant 0 : i32
    %c0_i32_1 = arith.constant 0 : i32
    return %c0_i32, %c0_i32_0 : i32, i32
  }
  func.func @transform_6(%arg0: i32) -> (i32, i32) {
    %c0_i32 = arith.constant 0 : i32
    %c0_i32_0 = arith.constant 0 : i32
    %c0_i32_1 = arith.constant 0 : i32
    return %c0_i32, %c0_i32_0 : i32, i32
  }
  func.func @transform_7(%arg0: i32) -> (i32, i32) {
    %c0_i32 = arith.constant 0 : i32
    %c0_i32_0 = arith.constant 0 : i32
    return %arg0, %c0_i32 : i32, i32
  }
}

module attributes {stable_mosaic.version = 11 : i64} {
  func.func @_mlp_kernel(%arg0: i32, %arg1: memref<16x4xf32, #tpu.memory_space<vmem>>, %arg2: memref<4x32xf32, #tpu.memory_space<vmem>>, %arg3: memref<1x32xf32, #tpu.memory_space<vmem>>, %arg4: memref<32x32xf32, #tpu.memory_space<vmem>>, %arg5: memref<1x32xf32, #tpu.memory_space<vmem>>, %arg6: memref<32x32xf32, #tpu.memory_space<vmem>>, %arg7: memref<1x32xf32, #tpu.memory_space<vmem>>, %arg8: memref<16x32xf32, #tpu.memory_space<vmem>>) attributes {dimension_semantics = [#tpu.dimension_semantics<parallel>], iteration_bounds = array<i64: 1>, scalar_prefetch = 0 : i64, scratch_operands = 0 : i64, tpu.core_type = #tpu.core_type<tc>, window_params = [{transform_indices = @transform_0, window_bounds = array<i64: 16, 4>}, {pipeline_mode = #tpu.pipeline_mode<synchronous>, transform_indices = @transform_1, window_bounds = array<i64: 4, 32>}, {pipeline_mode = #tpu.pipeline_mode<synchronous>, transform_indices = @transform_2, window_bounds = array<i64: 1, 32>}, {pipeline_mode = #tpu.pipeline_mode<synchronous>, transform_indices = @transform_3, window_bounds = array<i64: 32, 32>}, {pipeline_mode = #tpu.pipeline_mode<synchronous>, transform_indices = @transform_4, window_bounds = array<i64: 1, 32>}, {pipeline_mode = #tpu.pipeline_mode<synchronous>, transform_indices = @transform_5, window_bounds = array<i64: 32, 32>}, {pipeline_mode = #tpu.pipeline_mode<synchronous>, transform_indices = @transform_6, window_bounds = array<i64: 1, 32>}, {transform_indices = @transform_7, window_bounds = array<i64: 16, 32>}]} {
    %c0 = arith.constant 0 : index
    %c0_0 = arith.constant 0 : index
    %0 = vector.load %arg1[%c0, %c0_0] : memref<16x4xf32, #tpu.memory_space<vmem>>, vector<16x4xf32>
    %c0_1 = arith.constant 0 : index
    %c0_2 = arith.constant 0 : index
    %1 = vector.load %arg2[%c0_1, %c0_2] : memref<4x32xf32, #tpu.memory_space<vmem>>, vector<4x32xf32>
    %c0_3 = arith.constant 0 : index
    %c0_4 = arith.constant 0 : index
    %2 = vector.load %arg3[%c0_3, %c0_4] : memref<1x32xf32, #tpu.memory_space<vmem>>, vector<1x32xf32>
    %3 = arith.truncf %0 : vector<16x4xf32> to vector<16x4xbf16>
    %4 = arith.truncf %1 : vector<4x32xf32> to vector<4x32xbf16>
    %cst = arith.constant dense<0.000000e+00> : vector<16x32xf32>
    %5 = tpu.matmul %3, %4, %cst {dimension_numbers = #tpu.dot_dimension_numbers<[1], [0], [0], [1], [0, 0, 1, 1], [], []>} : vector<16x4xbf16>, vector<4x32xbf16>, vector<16x32xf32> -> vector<16x32xf32>
    %6 = vector.broadcast %2 : vector<1x32xf32> to vector<16x32xf32>
    %7 = arith.addf %5, %6 : vector<16x32xf32>
    %cst_5 = arith.constant 5.000000e-01 : f32
    %8 = vector.broadcast %cst_5 : f32 to vector<16x32xf32>
    %9 = arith.mulf %8, %7 : vector<16x32xf32>
    %cst_6 = arith.constant 4.471500e-02 : f32
    %10 = vector.broadcast %cst_6 : f32 to vector<16x32xf32>
    %11 = arith.mulf %10, %7 : vector<16x32xf32>
    %12 = arith.mulf %11, %7 : vector<16x32xf32>
    %13 = arith.mulf %12, %7 : vector<16x32xf32>
    %14 = arith.addf %7, %13 : vector<16x32xf32>
    %cst_7 = arith.constant 0.797884583 : f32
    %15 = vector.broadcast %cst_7 : f32 to vector<16x32xf32>
    %16 = arith.mulf %15, %14 : vector<16x32xf32>
    %17 = math.tanh %16 : vector<16x32xf32>
    %cst_8 = arith.constant 1.000000e+00 : f32
    %18 = vector.broadcast %cst_8 : f32 to vector<16x32xf32>
    %19 = arith.addf %18, %17 : vector<16x32xf32>
    %20 = arith.mulf %9, %19 : vector<16x32xf32>
    %c0_9 = arith.constant 0 : index
    %c0_10 = arith.constant 0 : index
    %21 = vector.load %arg4[%c0_9, %c0_10] : memref<32x32xf32, #tpu.memory_space<vmem>>, vector<32x32xf32>
    %c0_11 = arith.constant 0 : index
    %c0_12 = arith.constant 0 : index
    %22 = vector.load %arg5[%c0_11, %c0_12] : memref<1x32xf32, #tpu.memory_space<vmem>>, vector<1x32xf32>
    %23 = arith.truncf %20 : vector<16x32xf32> to vector<16x32xbf16>
    %24 = arith.truncf %21 : vector<32x32xf32> to vector<32x32xbf16>
    %cst_13 = arith.constant dense<0.000000e+00> : vector<16x32xf32>
    %25 = tpu.matmul %23, %24, %cst_13 {dimension_numbers = #tpu.dot_dimension_numbers<[1], [0], [0], [1], [0, 0, 1, 1], [], []>} : vector<16x32xbf16>, vector<32x32xbf16>, vector<16x32xf32> -> vector<16x32xf32>
    %26 = vector.broadcast %22 : vector<1x32xf32> to vector<16x32xf32>
    %27 = arith.addf %25, %26 : vector<16x32xf32>
    %cst_14 = arith.constant 5.000000e-01 : f32
    %28 = vector.broadcast %cst_14 : f32 to vector<16x32xf32>
    %29 = arith.mulf %28, %27 : vector<16x32xf32>
    %cst_15 = arith.constant 4.471500e-02 : f32
    %30 = vector.broadcast %cst_15 : f32 to vector<16x32xf32>
    %31 = arith.mulf %30, %27 : vector<16x32xf32>
    %32 = arith.mulf %31, %27 : vector<16x32xf32>
    %33 = arith.mulf %32, %27 : vector<16x32xf32>
    %34 = arith.addf %27, %33 : vector<16x32xf32>
    %cst_16 = arith.constant 0.797884583 : f32
    %35 = vector.broadcast %cst_16 : f32 to vector<16x32xf32>
    %36 = arith.mulf %35, %34 : vector<16x32xf32>
    %37 = math.tanh %36 : vector<16x32xf32>
    %cst_17 = arith.constant 1.000000e+00 : f32
    %38 = vector.broadcast %cst_17 : f32 to vector<16x32xf32>
    %39 = arith.addf %38, %37 : vector<16x32xf32>
    %40 = arith.mulf %29, %39 : vector<16x32xf32>
    %c0_18 = arith.constant 0 : index
    %c0_19 = arith.constant 0 : index
    %41 = vector.load %arg6[%c0_18, %c0_19] : memref<32x32xf32, #tpu.memory_space<vmem>>, vector<32x32xf32>
    %c0_20 = arith.constant 0 : index
    %c0_21 = arith.constant 0 : index
    %42 = vector.load %arg7[%c0_20, %c0_21] : memref<1x32xf32, #tpu.memory_space<vmem>>, vector<1x32xf32>
    %43 = arith.truncf %40 : vector<16x32xf32> to vector<16x32xbf16>
    %44 = arith.truncf %41 : vector<32x32xf32> to vector<32x32xbf16>
    %cst_22 = arith.constant dense<0.000000e+00> : vector<16x32xf32>
    %45 = tpu.matmul %43, %44, %cst_22 {dimension_numbers = #tpu.dot_dimension_numbers<[1], [0], [0], [1], [0, 0, 1, 1], [], []>} : vector<16x32xbf16>, vector<32x32xbf16>, vector<16x32xf32> -> vector<16x32xf32>
    %46 = vector.broadcast %42 : vector<1x32xf32> to vector<16x32xf32>
    %47 = arith.addf %45, %46 : vector<16x32xf32>
    %c0_23 = arith.constant 0 : index
    %c0_24 = arith.constant 0 : index
    %48 = vector.load %arg8[%c0_23, %c0_24] : memref<16x32xf32, #tpu.memory_space<vmem>>, vector<16x32xf32>
    tpu.vector_store %arg8[%c0_23, %c0_24], %47 {strides = array<i32>} : memref<16x32xf32, #tpu.memory_space<vmem>>, vector<16x32xf32>,
    return
  }
  func.func @transform_0(%arg0: i32) -> (i32, i32) {
    %c0_i32 = arith.constant 0 : i32
    %c0_i32_0 = arith.constant 0 : i32
    return %arg0, %c0_i32 : i32, i32
  }
  func.func @transform_1(%arg0: i32) -> (i32, i32) {
    %c0_i32 = arith.constant 0 : i32
    %c0_i32_0 = arith.constant 0 : i32
    %c0_i32_1 = arith.constant 0 : i32
    return %c0_i32, %c0_i32_0 : i32, i32
  }
  func.func @transform_2(%arg0: i32) -> (i32, i32) {
    %c0_i32 = arith.constant 0 : i32
    %c0_i32_0 = arith.constant 0 : i32
    %c0_i32_1 = arith.constant 0 : i32
    return %c0_i32, %c0_i32_0 : i32, i32
  }
  func.func @transform_3(%arg0: i32) -> (i32, i32) {
    %c0_i32 = arith.constant 0 : i32
    %c0_i32_0 = arith.constant 0 : i32
    %c0_i32_1 = arith.constant 0 : i32
    return %c0_i32, %c0_i32_0 : i32, i32
  }
  func.func @transform_4(%arg0: i32) -> (i32, i32) {
    %c0_i32 = arith.constant 0 : i32
    %c0_i32_0 = arith.constant 0 : i32
    %c0_i32_1 = arith.constant 0 : i32
    return %c0_i32, %c0_i32_0 : i32, i32
  }
  func.func @transform_5(%arg0: i32) -> (i32, i32) {
    %c0_i32 = arith.constant 0 : i32
    %c0_i32_0 = arith.constant 0 : i32
    %c0_i32_1 = arith.constant 0 : i32
    return %c0_i32, %c0_i32_0 : i32, i32
  }
  func.func @transform_6(%arg0: i32) -> (i32, i32) {
    %c0_i32 = arith.constant 0 : i32
    %c0_i32_0 = arith.constant 0 : i32
    %c0_i32_1 = arith.constant 0 : i32
    return %c0_i32, %c0_i32_0 : i32, i32
  }
  func.func @transform_7(%arg0: i32) -> (i32, i32) {
    %c0_i32 = arith.constant 0 : i32
    %c0_i32_0 = arith.constant 0 : i32
    return %arg0, %c0_i32 : i32, i32
  }
}

module attributes {stable_mosaic.version = 11 : i64} {
  func.func @_mlp_kernel(%arg0: i32, %arg1: memref<16x4xf32, #tpu.memory_space<vmem>>, %arg2: memref<4x32xf32, #tpu.memory_space<vmem>>, %arg3: memref<1x32xf32, #tpu.memory_space<vmem>>, %arg4: memref<32x32xf32, #tpu.memory_space<vmem>>, %arg5: memref<1x32xf32, #tpu.memory_space<vmem>>, %arg6: memref<32x2xf32, #tpu.memory_space<vmem>>, %arg7: memref<1x2xf32, #tpu.memory_space<vmem>>, %arg8: memref<16x2xf32, #tpu.memory_space<vmem>>) attributes {dimension_semantics = [#tpu.dimension_semantics<parallel>], iteration_bounds = array<i64: 1>, scalar_prefetch = 0 : i64, scratch_operands = 0 : i64, tpu.core_type = #tpu.core_type<tc>, window_params = [{transform_indices = @transform_0, window_bounds = array<i64: 16, 4>}, {pipeline_mode = #tpu.pipeline_mode<synchronous>, transform_indices = @transform_1, window_bounds = array<i64: 4, 32>}, {pipeline_mode = #tpu.pipeline_mode<synchronous>, transform_indices = @transform_2, window_bounds = array<i64: 1, 32>}, {pipeline_mode = #tpu.pipeline_mode<synchronous>, transform_indices = @transform_3, window_bounds = array<i64: 32, 32>}, {pipeline_mode = #tpu.pipeline_mode<synchronous>, transform_indices = @transform_4, window_bounds = array<i64: 1, 32>}, {pipeline_mode = #tpu.pipeline_mode<synchronous>, transform_indices = @transform_5, window_bounds = array<i64: 32, 2>}, {pipeline_mode = #tpu.pipeline_mode<synchronous>, transform_indices = @transform_6, window_bounds = array<i64: 1, 2>}, {transform_indices = @transform_7, window_bounds = array<i64: 16, 2>}]} {
    %c0 = arith.constant 0 : index
    %c0_0 = arith.constant 0 : index
    %0 = vector.load %arg1[%c0, %c0_0] : memref<16x4xf32, #tpu.memory_space<vmem>>, vector<16x4xf32>
    %c0_1 = arith.constant 0 : index
    %c0_2 = arith.constant 0 : index
    %1 = vector.load %arg2[%c0_1, %c0_2] : memref<4x32xf32, #tpu.memory_space<vmem>>, vector<4x32xf32>
    %c0_3 = arith.constant 0 : index
    %c0_4 = arith.constant 0 : index
    %2 = vector.load %arg3[%c0_3, %c0_4] : memref<1x32xf32, #tpu.memory_space<vmem>>, vector<1x32xf32>
    %3 = arith.truncf %0 : vector<16x4xf32> to vector<16x4xbf16>
    %4 = arith.truncf %1 : vector<4x32xf32> to vector<4x32xbf16>
    %cst = arith.constant dense<0.000000e+00> : vector<16x32xf32>
    %5 = tpu.matmul %3, %4, %cst {dimension_numbers = #tpu.dot_dimension_numbers<[1], [0], [0], [1], [0, 0, 1, 1], [], []>} : vector<16x4xbf16>, vector<4x32xbf16>, vector<16x32xf32> -> vector<16x32xf32>
    %6 = vector.broadcast %2 : vector<1x32xf32> to vector<16x32xf32>
    %7 = arith.addf %5, %6 : vector<16x32xf32>
    %cst_5 = arith.constant 5.000000e-01 : f32
    %8 = vector.broadcast %cst_5 : f32 to vector<16x32xf32>
    %9 = arith.mulf %8, %7 : vector<16x32xf32>
    %cst_6 = arith.constant 4.471500e-02 : f32
    %10 = vector.broadcast %cst_6 : f32 to vector<16x32xf32>
    %11 = arith.mulf %10, %7 : vector<16x32xf32>
    %12 = arith.mulf %11, %7 : vector<16x32xf32>
    %13 = arith.mulf %12, %7 : vector<16x32xf32>
    %14 = arith.addf %7, %13 : vector<16x32xf32>
    %cst_7 = arith.constant 0.797884583 : f32
    %15 = vector.broadcast %cst_7 : f32 to vector<16x32xf32>
    %16 = arith.mulf %15, %14 : vector<16x32xf32>
    %17 = math.tanh %16 : vector<16x32xf32>
    %cst_8 = arith.constant 1.000000e+00 : f32
    %18 = vector.broadcast %cst_8 : f32 to vector<16x32xf32>
    %19 = arith.addf %18, %17 : vector<16x32xf32>
    %20 = arith.mulf %9, %19 : vector<16x32xf32>
    %c0_9 = arith.constant 0 : index
    %c0_10 = arith.constant 0 : index
    %21 = vector.load %arg4[%c0_9, %c0_10] : memref<32x32xf32, #tpu.memory_space<vmem>>, vector<32x32xf32>
    %c0_11 = arith.constant 0 : index
    %c0_12 = arith.constant 0 : index
    %22 = vector.load %arg5[%c0_11, %c0_12] : memref<1x32xf32, #tpu.memory_space<vmem>>, vector<1x32xf32>
    %23 = arith.truncf %20 : vector<16x32xf32> to vector<16x32xbf16>
    %24 = arith.truncf %21 : vector<32x32xf32> to vector<32x32xbf16>
    %cst_13 = arith.constant dense<0.000000e+00> : vector<16x32xf32>
    %25 = tpu.matmul %23, %24, %cst_13 {dimension_numbers = #tpu.dot_dimension_numbers<[1], [0], [0], [1], [0, 0, 1, 1], [], []>} : vector<16x32xbf16>, vector<32x32xbf16>, vector<16x32xf32> -> vector<16x32xf32>
    %26 = vector.broadcast %22 : vector<1x32xf32> to vector<16x32xf32>
    %27 = arith.addf %25, %26 : vector<16x32xf32>
    %cst_14 = arith.constant 5.000000e-01 : f32
    %28 = vector.broadcast %cst_14 : f32 to vector<16x32xf32>
    %29 = arith.mulf %28, %27 : vector<16x32xf32>
    %cst_15 = arith.constant 4.471500e-02 : f32
    %30 = vector.broadcast %cst_15 : f32 to vector<16x32xf32>
    %31 = arith.mulf %30, %27 : vector<16x32xf32>
    %32 = arith.mulf %31, %27 : vector<16x32xf32>
    %33 = arith.mulf %32, %27 : vector<16x32xf32>
    %34 = arith.addf %27, %33 : vector<16x32xf32>
    %cst_16 = arith.constant 0.797884583 : f32
    %35 = vector.broadcast %cst_16 : f32 to vector<16x32xf32>
    %36 = arith.mulf %35, %34 : vector<16x32xf32>
    %37 = math.tanh %36 : vector<16x32xf32>
    %cst_17 = arith.constant 1.000000e+00 : f32
    %38 = vector.broadcast %cst_17 : f32 to vector<16x32xf32>
    %39 = arith.addf %38, %37 : vector<16x32xf32>
    %40 = arith.mulf %29, %39 : vector<16x32xf32>
    %c0_18 = arith.constant 0 : index
    %c0_19 = arith.constant 0 : index
    %41 = vector.load %arg6[%c0_18, %c0_19] : memref<32x2xf32, #tpu.memory_space<vmem>>, vector<32x2xf32>
    %c0_20 = arith.constant 0 : index
    %c0_21 = arith.constant 0 : index
    %42 = vector.load %arg7[%c0_20, %c0_21] : memref<1x2xf32, #tpu.memory_space<vmem>>, vector<1x2xf32>
    %43 = arith.truncf %40 : vector<16x32xf32> to vector<16x32xbf16>
    %44 = arith.truncf %41 : vector<32x2xf32> to vector<32x2xbf16>
    %cst_22 = arith.constant dense<0.000000e+00> : vector<16x2xf32>
    %45 = tpu.matmul %43, %44, %cst_22 {dimension_numbers = #tpu.dot_dimension_numbers<[1], [0], [0], [1], [0, 0, 1, 1], [], []>} : vector<16x32xbf16>, vector<32x2xbf16>, vector<16x2xf32> -> vector<16x2xf32>
    %46 = vector.broadcast %42 : vector<1x2xf32> to vector<16x2xf32>
    %47 = arith.addf %45, %46 : vector<16x2xf32>
    %cst_23 = arith.constant dense<0xFF800000> : vector<16xf32>
    %48 = vector.multi_reduction <maximumf>, %47, %cst_23 [1] : vector<16x2xf32> to vector<16xf32>
    %49 = vector.shape_cast %48 : vector<16xf32> to vector<16x1xf32>
    %50 = vector.broadcast %49 : vector<16x1xf32> to vector<16x2xf32>
    %51 = arith.subf %47, %50 : vector<16x2xf32>
    %52 = math.exp %51 : vector<16x2xf32>
    %cst_24 = arith.constant dense<0.000000e+00> : vector<16xf32>
    %53 = vector.multi_reduction <add>, %52, %cst_24 [1] : vector<16x2xf32> to vector<16xf32>
    %54 = vector.shape_cast %53 : vector<16xf32> to vector<16x1xf32>
    %55 = tpu.reciprocal %54 {approx = true} : vector<16x1xf32> -> vector<16x1xf32>
    %56 = vector.broadcast %55 : vector<16x1xf32> to vector<16x2xf32>
    %57 = arith.mulf %52, %56 : vector<16x2xf32>
    %c0_25 = arith.constant 0 : index
    %c0_26 = arith.constant 0 : index
    %58 = vector.load %arg8[%c0_25, %c0_26] : memref<16x2xf32, #tpu.memory_space<vmem>>, vector<16x2xf32>
    tpu.vector_store %arg8[%c0_25, %c0_26], %57 {strides = array<i32>} : memref<16x2xf32, #tpu.memory_space<vmem>>, vector<16x2xf32>,
    return
  }
  func.func @transform_0(%arg0: i32) -> (i32, i32) {
    %c0_i32 = arith.constant 0 : i32
    %c0_i32_0 = arith.constant 0 : i32
    return %arg0, %c0_i32 : i32, i32
  }
  func.func @transform_1(%arg0: i32) -> (i32, i32) {
    %c0_i32 = arith.constant 0 : i32
    %c0_i32_0 = arith.constant 0 : i32
    %c0_i32_1 = arith.constant 0 : i32
    return %c0_i32, %c0_i32_0 : i32, i32
  }
  func.func @transform_2(%arg0: i32) -> (i32, i32) {
    %c0_i32 = arith.constant 0 : i32
    %c0_i32_0 = arith.constant 0 : i32
    %c0_i32_1 = arith.constant 0 : i32
    return %c0_i32, %c0_i32_0 : i32, i32
  }
  func.func @transform_3(%arg0: i32) -> (i32, i32) {
    %c0_i32 = arith.constant 0 : i32
    %c0_i32_0 = arith.constant 0 : i32
    %c0_i32_1 = arith.constant 0 : i32
    return %c0_i32, %c0_i32_0 : i32, i32
  }
  func.func @transform_4(%arg0: i32) -> (i32, i32) {
    %c0_i32 = arith.constant 0 : i32
    %c0_i32_0 = arith.constant 0 : i32
    %c0_i32_1 = arith.constant 0 : i32
    return %c0_i32, %c0_i32_0 : i32, i32
  }
  func.func @transform_5(%arg0: i32) -> (i32, i32) {
    %c0_i32 = arith.constant 0 : i32
    %c0_i32_0 = arith.constant 0 : i32
    %c0_i32_1 = arith.constant 0 : i32
    return %c0_i32, %c0_i32_0 : i32, i32
  }
  func.func @transform_6(%arg0: i32) -> (i32, i32) {
    %c0_i32 = arith.constant 0 : i32
    %c0_i32_0 = arith.constant 0 : i32
    %c0_i32_1 = arith.constant 0 : i32
    return %c0_i32, %c0_i32_0 : i32, i32
  }
  func.func @transform_7(%arg0: i32) -> (i32, i32) {
    %c0_i32 = arith.constant 0 : i32
    %c0_i32_0 = arith.constant 0 : i32
    return %arg0, %c0_i32 : i32, i32
  }
}

module attributes {stable_mosaic.version = 11 : i64} {
  func.func @_mlp_kernel(%arg0: i32, %arg1: memref<32x4xf32, #tpu.memory_space<vmem>>, %arg2: memref<4x32xf32, #tpu.memory_space<vmem>>, %arg3: memref<1x32xf32, #tpu.memory_space<vmem>>, %arg4: memref<32x32xf32, #tpu.memory_space<vmem>>, %arg5: memref<1x32xf32, #tpu.memory_space<vmem>>, %arg6: memref<32x32xf32, #tpu.memory_space<vmem>>, %arg7: memref<1x32xf32, #tpu.memory_space<vmem>>, %arg8: memref<32x32xf32, #tpu.memory_space<vmem>>) attributes {dimension_semantics = [#tpu.dimension_semantics<parallel>], iteration_bounds = array<i64: 1>, scalar_prefetch = 0 : i64, scratch_operands = 0 : i64, tpu.core_type = #tpu.core_type<tc>, window_params = [{transform_indices = @transform_0, window_bounds = array<i64: 32, 4>}, {pipeline_mode = #tpu.pipeline_mode<synchronous>, transform_indices = @transform_1, window_bounds = array<i64: 4, 32>}, {pipeline_mode = #tpu.pipeline_mode<synchronous>, transform_indices = @transform_2, window_bounds = array<i64: 1, 32>}, {pipeline_mode = #tpu.pipeline_mode<synchronous>, transform_indices = @transform_3, window_bounds = array<i64: 32, 32>}, {pipeline_mode = #tpu.pipeline_mode<synchronous>, transform_indices = @transform_4, window_bounds = array<i64: 1, 32>}, {pipeline_mode = #tpu.pipeline_mode<synchronous>, transform_indices = @transform_5, window_bounds = array<i64: 32, 32>}, {pipeline_mode = #tpu.pipeline_mode<synchronous>, transform_indices = @transform_6, window_bounds = array<i64: 1, 32>}, {transform_indices = @transform_7, window_bounds = array<i64: 32, 32>}]} {
    %c0 = arith.constant 0 : index
    %c0_0 = arith.constant 0 : index
    %0 = vector.load %arg1[%c0, %c0_0] : memref<32x4xf32, #tpu.memory_space<vmem>>, vector<32x4xf32>
    %c0_1 = arith.constant 0 : index
    %c0_2 = arith.constant 0 : index
    %1 = vector.load %arg2[%c0_1, %c0_2] : memref<4x32xf32, #tpu.memory_space<vmem>>, vector<4x32xf32>
    %c0_3 = arith.constant 0 : index
    %c0_4 = arith.constant 0 : index
    %2 = vector.load %arg3[%c0_3, %c0_4] : memref<1x32xf32, #tpu.memory_space<vmem>>, vector<1x32xf32>
    %3 = arith.truncf %0 : vector<32x4xf32> to vector<32x4xbf16>
    %4 = arith.truncf %1 : vector<4x32xf32> to vector<4x32xbf16>
    %cst = arith.constant dense<0.000000e+00> : vector<32x32xf32>
    %5 = tpu.matmul %3, %4, %cst {dimension_numbers = #tpu.dot_dimension_numbers<[1], [0], [0], [1], [0, 0, 1, 1], [], []>} : vector<32x4xbf16>, vector<4x32xbf16>, vector<32x32xf32> -> vector<32x32xf32>
    %6 = vector.broadcast %2 : vector<1x32xf32> to vector<32x32xf32>
    %7 = arith.addf %5, %6 : vector<32x32xf32>
    %cst_5 = arith.constant 5.000000e-01 : f32
    %8 = vector.broadcast %cst_5 : f32 to vector<32x32xf32>
    %9 = arith.mulf %8, %7 : vector<32x32xf32>
    %cst_6 = arith.constant 4.471500e-02 : f32
    %10 = vector.broadcast %cst_6 : f32 to vector<32x32xf32>
    %11 = arith.mulf %10, %7 : vector<32x32xf32>
    %12 = arith.mulf %11, %7 : vector<32x32xf32>
    %13 = arith.mulf %12, %7 : vector<32x32xf32>
    %14 = arith.addf %7, %13 : vector<32x32xf32>
    %cst_7 = arith.constant 0.797884583 : f32
    %15 = vector.broadcast %cst_7 : f32 to vector<32x32xf32>
    %16 = arith.mulf %15, %14 : vector<32x32xf32>
    %17 = math.tanh %16 : vector<32x32xf32>
    %cst_8 = arith.constant 1.000000e+00 : f32
    %18 = vector.broadcast %cst_8 : f32 to vector<32x32xf32>
    %19 = arith.addf %18, %17 : vector<32x32xf32>
    %20 = arith.mulf %9, %19 : vector<32x32xf32>
    %c0_9 = arith.constant 0 : index
    %c0_10 = arith.constant 0 : index
    %21 = vector.load %arg4[%c0_9, %c0_10] : memref<32x32xf32, #tpu.memory_space<vmem>>, vector<32x32xf32>
    %c0_11 = arith.constant 0 : index
    %c0_12 = arith.constant 0 : index
    %22 = vector.load %arg5[%c0_11, %c0_12] : memref<1x32xf32, #tpu.memory_space<vmem>>, vector<1x32xf32>
    %23 = arith.truncf %20 : vector<32x32xf32> to vector<32x32xbf16>
    %24 = arith.truncf %21 : vector<32x32xf32> to vector<32x32xbf16>
    %cst_13 = arith.constant dense<0.000000e+00> : vector<32x32xf32>
    %25 = tpu.matmul %23, %24, %cst_13 {dimension_numbers = #tpu.dot_dimension_numbers<[1], [0], [0], [1], [0, 0, 1, 1], [], []>} : vector<32x32xbf16>, vector<32x32xbf16>, vector<32x32xf32> -> vector<32x32xf32>
    %26 = vector.broadcast %22 : vector<1x32xf32> to vector<32x32xf32>
    %27 = arith.addf %25, %26 : vector<32x32xf32>
    %cst_14 = arith.constant 5.000000e-01 : f32
    %28 = vector.broadcast %cst_14 : f32 to vector<32x32xf32>
    %29 = arith.mulf %28, %27 : vector<32x32xf32>
    %cst_15 = arith.constant 4.471500e-02 : f32
    %30 = vector.broadcast %cst_15 : f32 to vector<32x32xf32>
    %31 = arith.mulf %30, %27 : vector<32x32xf32>
    %32 = arith.mulf %31, %27 : vector<32x32xf32>
    %33 = arith.mulf %32, %27 : vector<32x32xf32>
    %34 = arith.addf %27, %33 : vector<32x32xf32>
    %cst_16 = arith.constant 0.797884583 : f32
    %35 = vector.broadcast %cst_16 : f32 to vector<32x32xf32>
    %36 = arith.mulf %35, %34 : vector<32x32xf32>
    %37 = math.tanh %36 : vector<32x32xf32>
    %cst_17 = arith.constant 1.000000e+00 : f32
    %38 = vector.broadcast %cst_17 : f32 to vector<32x32xf32>
    %39 = arith.addf %38, %37 : vector<32x32xf32>
    %40 = arith.mulf %29, %39 : vector<32x32xf32>
    %c0_18 = arith.constant 0 : index
    %c0_19 = arith.constant 0 : index
    %41 = vector.load %arg6[%c0_18, %c0_19] : memref<32x32xf32, #tpu.memory_space<vmem>>, vector<32x32xf32>
    %c0_20 = arith.constant 0 : index
    %c0_21 = arith.constant 0 : index
    %42 = vector.load %arg7[%c0_20, %c0_21] : memref<1x32xf32, #tpu.memory_space<vmem>>, vector<1x32xf32>
    %43 = arith.truncf %40 : vector<32x32xf32> to vector<32x32xbf16>
    %44 = arith.truncf %41 : vector<32x32xf32> to vector<32x32xbf16>
    %cst_22 = arith.constant dense<0.000000e+00> : vector<32x32xf32>
    %45 = tpu.matmul %43, %44, %cst_22 {dimension_numbers = #tpu.dot_dimension_numbers<[1], [0], [0], [1], [0, 0, 1, 1], [], []>} : vector<32x32xbf16>, vector<32x32xbf16>, vector<32x32xf32> -> vector<32x32xf32>
    %46 = vector.broadcast %42 : vector<1x32xf32> to vector<32x32xf32>
    %47 = arith.addf %45, %46 : vector<32x32xf32>
    %c0_23 = arith.constant 0 : index
    %c0_24 = arith.constant 0 : index
    %48 = vector.load %arg8[%c0_23, %c0_24] : memref<32x32xf32, #tpu.memory_space<vmem>>, vector<32x32xf32>
    tpu.vector_store %arg8[%c0_23, %c0_24], %47 {strides = array<i32>} : memref<32x32xf32, #tpu.memory_space<vmem>>, vector<32x32xf32>,
    return
  }
  func.func @transform_0(%arg0: i32) -> (i32, i32) {
    %c0_i32 = arith.constant 0 : i32
    %c0_i32_0 = arith.constant 0 : i32
    return %arg0, %c0_i32 : i32, i32
  }
  func.func @transform_1(%arg0: i32) -> (i32, i32) {
    %c0_i32 = arith.constant 0 : i32
    %c0_i32_0 = arith.constant 0 : i32
    %c0_i32_1 = arith.constant 0 : i32
    return %c0_i32, %c0_i32_0 : i32, i32
  }
  func.func @transform_2(%arg0: i32) -> (i32, i32) {
    %c0_i32 = arith.constant 0 : i32
    %c0_i32_0 = arith.constant 0 : i32
    %c0_i32_1 = arith.constant 0 : i32
    return %c0_i32, %c0_i32_0 : i32, i32
  }
  func.func @transform_3(%arg0: i32) -> (i32, i32) {
    %c0_i32 = arith.constant 0 : i32
    %c0_i32_0 = arith.constant 0 : i32
    %c0_i32_1 = arith.constant 0 : i32
    return %c0_i32, %c0_i32_0 : i32, i32
  }
  func.func @transform_4(%arg0: i32) -> (i32, i32) {
    %c0_i32 = arith.constant 0 : i32
    %c0_i32_0 = arith.constant 0 : i32
    %c0_i32_1 = arith.constant 0 : i32
    return %c0_i32, %c0_i32_0 : i32, i32
  }
  func.func @transform_5(%arg0: i32) -> (i32, i32) {
    %c0_i32 = arith.constant 0 : i32
    %c0_i32_0 = arith.constant 0 : i32
    %c0_i32_1 = arith.constant 0 : i32
    return %c0_i32, %c0_i32_0 : i32, i32
  }
  func.func @transform_6(%arg0: i32) -> (i32, i32) {
    %c0_i32 = arith.constant 0 : i32
    %c0_i32_0 = arith.constant 0 : i32
    %c0_i32_1 = arith.constant 0 : i32
    return %c0_i32, %c0_i32_0 : i32, i32
  }
  func.func @transform_7(%arg0: i32) -> (i32, i32) {
    %c0_i32 = arith.constant 0 : i32
    %c0_i32_0 = arith.constant 0 : i32
    return %arg0, %c0_i32 : i32, i32
  }
}

module attributes {stable_mosaic.version = 11 : i64} {
  func.func @_cross_attn_kernel(%arg0: i32, %arg1: memref<1x8x32xf32, #tpu.memory_space<vmem>>, %arg2: memref<32x32xf32, #tpu.memory_space<vmem>>, %arg3: memref<1x32xf32, #tpu.memory_space<vmem>>, %arg4: memref<32x32xf32, #tpu.memory_space<vmem>>, %arg5: memref<1x8x32xf32, #tpu.memory_space<vmem>>, %arg6: memref<32x64xf32, #tpu.memory_space<vmem>>, %arg7: memref<1x64xf32, #tpu.memory_space<vmem>>, %arg8: memref<1x16x32xf32, #tpu.memory_space<vmem>>, %arg9: memref<32x64xf32, #tpu.memory_space<vmem>>, %arg10: memref<1x64xf32, #tpu.memory_space<vmem>>, %arg11: memref<1x8x32xf32, #tpu.memory_space<vmem>>) attributes {dimension_semantics = [#tpu.dimension_semantics<parallel>], iteration_bounds = array<i64: 2>, scalar_prefetch = 0 : i64, scratch_operands = 0 : i64, tpu.core_type = #tpu.core_type<tc>, window_params = [{transform_indices = @transform_0, window_bounds = array<i64: 1, 8, 32>}, {pipeline_mode = #tpu.pipeline_mode<synchronous>, transform_indices = @transform_1, window_bounds = array<i64: 32, 32>}, {pipeline_mode = #tpu.pipeline_mode<synchronous>, transform_indices = @transform_2, window_bounds = array<i64: 1, 32>}, {pipeline_mode = #tpu.pipeline_mode<synchronous>, transform_indices = @transform_3, window_bounds = array<i64: 32, 32>}, {transform_indices = @transform_4, window_bounds = array<i64: 1, 8, 32>}, {pipeline_mode = #tpu.pipeline_mode<synchronous>, transform_indices = @transform_5, window_bounds = array<i64: 32, 64>}, {pipeline_mode = #tpu.pipeline_mode<synchronous>, transform_indices = @transform_6, window_bounds = array<i64: 1, 64>}, {transform_indices = @transform_7, window_bounds = array<i64: 1, 16, 32>}, {pipeline_mode = #tpu.pipeline_mode<synchronous>, transform_indices = @transform_8, window_bounds = array<i64: 32, 64>}, {pipeline_mode = #tpu.pipeline_mode<synchronous>, transform_indices = @transform_9, window_bounds = array<i64: 1, 64>}, {transform_indices = @transform_10, window_bounds = array<i64: 1, 8, 32>}]} {
    %c0 = arith.constant 0 : index
    %c0_0 = arith.constant 0 : index
    %c0_1 = arith.constant 0 : index
    %0 = vector.load %arg1[%c0, %c0_0, %c0_1] : memref<1x8x32xf32, #tpu.memory_space<vmem>>, vector<1x8x32xf32>
    %1 = vector.shape_cast %0 : vector<1x8x32xf32> to vector<8x32xf32>
    %c0_2 = arith.constant 0 : index
    %c0_3 = arith.constant 0 : index
    %2 = vector.load %arg4[%c0_2, %c0_3] : memref<32x32xf32, #tpu.memory_space<vmem>>, vector<32x32xf32>
    %c0_4 = arith.constant 0 : index
    %c0_5 = arith.constant 0 : index
    %3 = vector.load %arg2[%c0_4, %c0_5] : memref<32x32xf32, #tpu.memory_space<vmem>>, vector<32x32xf32>
    %4 = arith.truncf %1 : vector<8x32xf32> to vector<8x32xbf16>
    %5 = arith.truncf %3 : vector<32x32xf32> to vector<32x32xbf16>
    %cst = arith.constant dense<0.000000e+00> : vector<8x32xf32>
    %6 = tpu.matmul %4, %5, %cst {dimension_numbers = #tpu.dot_dimension_numbers<[1], [0], [0], [1], [0, 0, 1, 1], [], []>} : vector<8x32xbf16>, vector<32x32xbf16>, vector<8x32xf32> -> vector<8x32xf32>
    %c0_6 = arith.constant 0 : index
    %c0_7 = arith.constant 0 : index
    %7 = vector.load %arg3[%c0_6, %c0_7] : memref<1x32xf32, #tpu.memory_space<vmem>>, vector<1x32xf32>
    %8 = vector.broadcast %7 : vector<1x32xf32> to vector<8x32xf32>
    %9 = arith.addf %6, %8 : vector<8x32xf32>
    %cst_8 = arith.constant dense<0xFF800000> : vector<8xf32>
    %10 = vector.multi_reduction <maximumf>, %9, %cst_8 [1] : vector<8x32xf32> to vector<8xf32>
    %11 = vector.shape_cast %10 : vector<8xf32> to vector<8x1xf32>
    %12 = vector.broadcast %11 : vector<8x1xf32> to vector<8x32xf32>
    %13 = arith.subf %9, %12 : vector<8x32xf32>
    %14 = math.exp %13 : vector<8x32xf32>
    %cst_9 = arith.constant dense<0.000000e+00> : vector<8x32xf32>
    %15 = tpu.matmul %14, %2, %cst_9 {dimension_numbers = #tpu.dot_dimension_numbers<[1], [0], [0], [1], [0, 0, 1, 1], [], []>} : vector<8x32xf32>, vector<32x32xf32>, vector<8x32xf32> -> vector<8x32xf32>
    %16 = tpu.reciprocal %15 {approx = true} : vector<8x32xf32> -> vector<8x32xf32>
    %17 = arith.mulf %14, %16 : vector<8x32xf32>
    %cst_10 = arith.constant 0.000000e+00 : f32
    %18 = vector.broadcast %cst_10 : f32 to vector<8x32xf32>
    %c0_11 = arith.constant 0 : index
    %c0_12 = arith.constant 0 : index
    %c0_13 = arith.constant 0 : index
    %19 = vector.load %arg5[%c0_11, %c0_12, %c0_13] : memref<1x8x32xf32, #tpu.memory_space<vmem>>, vector<1x8x32xf32>
    %20 = vector.shape_cast %19 : vector<1x8x32xf32> to vector<8x32xf32>
    %c0_14 = arith.constant 0 : index
    %c0_15 = arith.constant 0 : index
    %21 = vector.load %arg6[%c0_14, %c0_15] : memref<32x64xf32, #tpu.memory_space<vmem>>, vector<32x64xf32>
    %22 = arith.truncf %20 : vector<8x32xf32> to vector<8x32xbf16>
    %23 = arith.truncf %21 : vector<32x64xf32> to vector<32x64xbf16>
    %cst_16 = arith.constant dense<0.000000e+00> : vector<8x64xf32>
    %24 = tpu.matmul %22, %23, %cst_16 {dimension_numbers = #tpu.dot_dimension_numbers<[1], [0], [0], [1], [0, 0, 1, 1], [], []>} : vector<8x32xbf16>, vector<32x64xbf16>, vector<8x64xf32> -> vector<8x64xf32>
    %c0_17 = arith.constant 0 : index
    %c0_18 = arith.constant 0 : index
    %25 = vector.load %arg7[%c0_17, %c0_18] : memref<1x64xf32, #tpu.memory_space<vmem>>, vector<1x64xf32>
    %26 = vector.broadcast %25 : vector<1x64xf32> to vector<8x64xf32>
    %27 = arith.addf %24, %26 : vector<8x64xf32>
    %28 = vector.extract_strided_slice %27 {offsets = [0, 0], sizes = [8, 32], strides = [1, 1]} : vector<8x64xf32> to vector<8x32xf32>
    %29 = vector.extract_strided_slice %27 {offsets = [0, 32], sizes = [8, 32], strides = [1, 1]} : vector<8x64xf32> to vector<8x32xf32>
    %cst_19 = arith.constant dense<0xFF800000> : vector<8xf32>
    %30 = vector.multi_reduction <maximumf>, %28, %cst_19 [1] : vector<8x32xf32> to vector<8xf32>
    %31 = vector.shape_cast %30 : vector<8xf32> to vector<8x1xf32>
    %32 = vector.broadcast %31 : vector<8x1xf32> to vector<8x32xf32>
    %33 = arith.subf %28, %32 : vector<8x32xf32>
    %34 = math.exp %33 : vector<8x32xf32>
    %cst_20 = arith.constant dense<0.000000e+00> : vector<8x32xf32>
    %35 = tpu.matmul %34, %2, %cst_20 {dimension_numbers = #tpu.dot_dimension_numbers<[1], [0], [0], [1], [0, 0, 1, 1], [], []>} : vector<8x32xf32>, vector<32x32xf32>, vector<8x32xf32> -> vector<8x32xf32>
    %36 = tpu.reciprocal %35 {approx = true} : vector<8x32xf32> -> vector<8x32xf32>
    %37 = arith.mulf %34, %36 : vector<8x32xf32>
    %cst_21 = arith.constant dense<0.000000e+00> : vector<32xf32>
    %38 = vector.multi_reduction <add>, %37, %cst_21 [0] : vector<8x32xf32> to vector<32xf32>
    %39 = vector.shape_cast %38 : vector<32xf32> to vector<1x32xf32>
    %40 = vector.broadcast %39 : vector<1x32xf32> to vector<8x32xf32>
    %41 = arith.mulf %17, %40 : vector<8x32xf32>
    %cst_22 = arith.constant dense<0.000000e+00> : vector<8x32xf32>
    %42 = tpu.matmul %41, %2, %cst_22 {dimension_numbers = #tpu.dot_dimension_numbers<[1], [0], [0], [1], [0, 0, 1, 1], [], []>} : vector<8x32xf32>, vector<32x32xf32>, vector<8x32xf32> -> vector<8x32xf32>
    %43 = tpu.reciprocal %42 {approx = true} : vector<8x32xf32> -> vector<8x32xf32>
    %44 = tpu.transpose %37, [1, 0] : vector<8x32xf32> -> vector<32x8xf32>
    %45 = arith.truncf %44 : vector<32x8xf32> to vector<32x8xbf16>
    %46 = arith.truncf %29 : vector<8x32xf32> to vector<8x32xbf16>
    %cst_23 = arith.constant dense<0.000000e+00> : vector<32x32xf32>
    %47 = tpu.matmul %45, %46, %cst_23 {dimension_numbers = #tpu.dot_dimension_numbers<[1], [0], [0], [1], [0, 0, 1, 1], [], []>} : vector<32x8xbf16>, vector<8x32xbf16>, vector<32x32xf32> -> vector<32x32xf32>
    %48 = arith.mulf %47, %2 : vector<32x32xf32>
    %49 = arith.truncf %17 : vector<8x32xf32> to vector<8x32xbf16>
    %50 = arith.truncf %48 : vector<32x32xf32> to vector<32x32xbf16>
    %cst_24 = arith.constant dense<0.000000e+00> : vector<8x32xf32>
    %51 = tpu.matmul %49, %50, %cst_24 {dimension_numbers = #tpu.dot_dimension_numbers<[1], [0], [0], [1], [0, 0, 1, 1], [], []>} : vector<8x32xbf16>, vector<32x32xbf16>, vector<8x32xf32> -> vector<8x32xf32>
    %52 = arith.mulf %43, %51 : vector<8x32xf32>
    %53 = arith.addf %18, %52 : vector<8x32xf32>
    %c0_25 = arith.constant 0 : index
    %c0_26 = arith.constant 0 : index
    %c0_27 = arith.constant 0 : index
    %54 = vector.load %arg8[%c0_25, %c0_26, %c0_27] : memref<1x16x32xf32, #tpu.memory_space<vmem>>, vector<1x16x32xf32>
    %55 = vector.shape_cast %54 : vector<1x16x32xf32> to vector<16x32xf32>
    %c0_28 = arith.constant 0 : index
    %c0_29 = arith.constant 0 : index
    %56 = vector.load %arg9[%c0_28, %c0_29] : memref<32x64xf32, #tpu.memory_space<vmem>>, vector<32x64xf32>
    %57 = arith.truncf %55 : vector<16x32xf32> to vector<16x32xbf16>
    %58 = arith.truncf %56 : vector<32x64xf32> to vector<32x64xbf16>
    %cst_30 = arith.constant dense<0.000000e+00> : vector<16x64xf32>
    %59 = tpu.matmul %57, %58, %cst_30 {dimension_numbers = #tpu.dot_dimension_numbers<[1], [0], [0], [1], [0, 0, 1, 1], [], []>} : vector<16x32xbf16>, vector<32x64xbf16>, vector<16x64xf32> -> vector<16x64xf32>
    %c0_31 = arith.constant 0 : index
    %c0_32 = arith.constant 0 : index
    %60 = vector.load %arg10[%c0_31, %c0_32] : memref<1x64xf32, #tpu.memory_space<vmem>>, vector<1x64xf32>
    %61 = vector.broadcast %60 : vector<1x64xf32> to vector<16x64xf32>
    %62 = arith.addf %59, %61 : vector<16x64xf32>
    %63 = vector.extract_strided_slice %62 {offsets = [0, 0], sizes = [16, 32], strides = [1, 1]} : vector<16x64xf32> to vector<16x32xf32>
    %64 = vector.extract_strided_slice %62 {offsets = [0, 32], sizes = [16, 32], strides = [1, 1]} : vector<16x64xf32> to vector<16x32xf32>
    %cst_33 = arith.constant dense<0xFF800000> : vector<16xf32>
    %65 = vector.multi_reduction <maximumf>, %63, %cst_33 [1] : vector<16x32xf32> to vector<16xf32>
    %66 = vector.shape_cast %65 : vector<16xf32> to vector<16x1xf32>
    %67 = vector.broadcast %66 : vector<16x1xf32> to vector<16x32xf32>
    %68 = arith.subf %63, %67 : vector<16x32xf32>
    %69 = math.exp %68 : vector<16x32xf32>
    %cst_34 = arith.constant dense<0.000000e+00> : vector<16x32xf32>
    %70 = tpu.matmul %69, %2, %cst_34 {dimension_numbers = #tpu.dot_dimension_numbers<[1], [0], [0], [1], [0, 0, 1, 1], [], []>} : vector<16x32xf32>, vector<32x32xf32>, vector<16x32xf32> -> vector<16x32xf32>
    %71 = tpu.reciprocal %70 {approx = true} : vector<16x32xf32> -> vector<16x32xf32>
    %72 = arith.mulf %69, %71 : vector<16x32xf32>
    %cst_35 = arith.constant dense<0.000000e+00> : vector<32xf32>
    %73 = vector.multi_reduction <add>, %72, %cst_35 [0] : vector<16x32xf32> to vector<32xf32>
    %74 = vector.shape_cast %73 : vector<32xf32> to vector<1x32xf32>
    %75 = vector.broadcast %74 : vector<1x32xf32> to vector<8x32xf32>
    %76 = arith.mulf %17, %75 : vector<8x32xf32>
    %cst_36 = arith.constant dense<0.000000e+00> : vector<8x32xf32>
    %77 = tpu.matmul %76, %2, %cst_36 {dimension_numbers = #tpu.dot_dimension_numbers<[1], [0], [0], [1], [0, 0, 1, 1], [], []>} : vector<8x32xf32>, vector<32x32xf32>, vector<8x32xf32> -> vector<8x32xf32>
    %78 = tpu.reciprocal %77 {approx = true} : vector<8x32xf32> -> vector<8x32xf32>
    %79 = tpu.transpose %72, [1, 0] : vector<16x32xf32> -> vector<32x16xf32>
    %80 = arith.truncf %79 : vector<32x16xf32> to vector<32x16xbf16>
    %81 = arith.truncf %64 : vector<16x32xf32> to vector<16x32xbf16>
    %cst_37 = arith.constant dense<0.000000e+00> : vector<32x32xf32>
    %82 = tpu.matmul %80, %81, %cst_37 {dimension_numbers = #tpu.dot_dimension_numbers<[1], [0], [0], [1], [0, 0, 1, 1], [], []>} : vector<32x16xbf16>, vector<16x32xbf16>, vector<32x32xf32> -> vector<32x32xf32>
    %83 = arith.mulf %82, %2 : vector<32x32xf32>
    %84 = arith.truncf %17 : vector<8x32xf32> to vector<8x32xbf16>
    %85 = arith.truncf %83 : vector<32x32xf32> to vector<32x32xbf16>
    %cst_38 = arith.constant dense<0.000000e+00> : vector<8x32xf32>
    %86 = tpu.matmul %84, %85, %cst_38 {dimension_numbers = #tpu.dot_dimension_numbers<[1], [0], [0], [1], [0, 0, 1, 1], [], []>} : vector<8x32xbf16>, vector<32x32xbf16>, vector<8x32xf32> -> vector<8x32xf32>
    %87 = arith.mulf %78, %86 : vector<8x32xf32>
    %88 = arith.addf %53, %87 : vector<8x32xf32>
    %cst_39 = arith.constant 5.000000e-01 : f32
    %89 = vector.broadcast %cst_39 : f32 to vector<8x32xf32>
    %90 = arith.mulf %88, %89 : vector<8x32xf32>
    %91 = arith.addf %17, %90 : vector<8x32xf32>
    %c0_40 = arith.constant 0 : index
    %c0_41 = arith.constant 0 : index
    %c0_42 = arith.constant 0 : index
    %92 = vector.load %arg11[%c0_40, %c0_41, %c0_42] : memref<1x8x32xf32, #tpu.memory_space<vmem>>, vector<1x8x32xf32>
    %93 = vector.shape_cast %92 : vector<1x8x32xf32> to vector<8x32xf32>
    %94 = vector.shape_cast %91 : vector<8x32xf32> to vector<1x8x32xf32>
    tpu.vector_store %arg11[%c0_40, %c0_41, %c0_42], %94 {strides = array<i32>} : memref<1x8x32xf32, #tpu.memory_space<vmem>>, vector<1x8x32xf32>,
    return
  }
  func.func @transform_0(%arg0: i32) -> (i32, i32, i32) {
    %c0_i32 = arith.constant 0 : i32
    %c0_i32_0 = arith.constant 0 : i32
    %c0_i32_1 = arith.constant 0 : i32
    return %arg0, %c0_i32, %c0_i32_0 : i32, i32, i32
  }
  func.func @transform_1(%arg0: i32) -> (i32, i32) {
    %c0_i32 = arith.constant 0 : i32
    %c0_i32_0 = arith.constant 0 : i32
    %c0_i32_1 = arith.constant 0 : i32
    return %c0_i32, %c0_i32_0 : i32, i32
  }
  func.func @transform_2(%arg0: i32) -> (i32, i32) {
    %c0_i32 = arith.constant 0 : i32
    %c0_i32_0 = arith.constant 0 : i32
    %c0_i32_1 = arith.constant 0 : i32
    return %c0_i32, %c0_i32_0 : i32, i32
  }
  func.func @transform_3(%arg0: i32) -> (i32, i32) {
    %c0_i32 = arith.constant 0 : i32
    %c0_i32_0 = arith.constant 0 : i32
    %c0_i32_1 = arith.constant 0 : i32
    return %c0_i32, %c0_i32_0 : i32, i32
  }
  func.func @transform_4(%arg0: i32) -> (i32, i32, i32) {
    %c0_i32 = arith.constant 0 : i32
    %c0_i32_0 = arith.constant 0 : i32
    %c0_i32_1 = arith.constant 0 : i32
    return %arg0, %c0_i32, %c0_i32_0 : i32, i32, i32
  }
  func.func @transform_5(%arg0: i32) -> (i32, i32) {
    %c0_i32 = arith.constant 0 : i32
    %c0_i32_0 = arith.constant 0 : i32
    %c0_i32_1 = arith.constant 0 : i32
    return %c0_i32, %c0_i32_0 : i32, i32
  }
  func.func @transform_6(%arg0: i32) -> (i32, i32) {
    %c0_i32 = arith.constant 0 : i32
    %c0_i32_0 = arith.constant 0 : i32
    %c0_i32_1 = arith.constant 0 : i32
    return %c0_i32, %c0_i32_0 : i32, i32
  }
  func.func @transform_7(%arg0: i32) -> (i32, i32, i32) {
    %c0_i32 = arith.constant 0 : i32
    %c0_i32_0 = arith.constant 0 : i32
    %c0_i32_1 = arith.constant 0 : i32
    return %arg0, %c0_i32, %c0_i32_0 : i32, i32, i32
  }
  func.func @transform_8(%arg0: i32) -> (i32, i32) {
    %c0_i32 = arith.constant 0 : i32
    %c0_i32_0 = arith.constant 0 : i32
    %c0_i32_1 = arith.constant 0 : i32
    return %c0_i32, %c0_i32_0 : i32, i32
  }
  func.func @transform_9(%arg0: i32) -> (i32, i32) {
    %c0_i32 = arith.constant 0 : i32
    %c0_i32_0 = arith.constant 0 : i32
    %c0_i32_1 = arith.constant 0 : i32
    return %c0_i32, %c0_i32_0 : i32, i32
  }
  func.func @transform_10(%arg0: i32) -> (i32, i32, i32) {
    %c0_i32 = arith.constant 0 : i32
    %c0_i32_0 = arith.constant 0 : i32
    %c0_i32_1 = arith.constant 0 : i32
    return %arg0, %c0_i32, %c0_i32_0 : i32, i32, i32
  }
}

module attributes {stable_mosaic.version = 11 : i64} {
  func.func @_ffn_moe_kernel(%arg0: i32, %arg1: memref<16x32xf32, #tpu.memory_space<vmem>>, %arg2: memref<16x32xf32, #tpu.memory_space<vmem>>, %arg3: memref<16x2xf32, #tpu.memory_space<vmem>>, %arg4: memref<32x32xf32, #tpu.memory_space<vmem>>, %arg5: memref<1x32xf32, #tpu.memory_space<vmem>>, %arg6: memref<32x64xf32, #tpu.memory_space<vmem>>, %arg7: memref<1x64xf32, #tpu.memory_space<vmem>>, %arg8: memref<2x32x32xf32, #tpu.memory_space<vmem>>, %arg9: memref<2x1x32xf32, #tpu.memory_space<vmem>>, %arg10: memref<2x32x32xf32, #tpu.memory_space<vmem>>, %arg11: memref<2x1x32xf32, #tpu.memory_space<vmem>>, %arg12: memref<16x32xf32, #tpu.memory_space<vmem>>) attributes {dimension_semantics = [#tpu.dimension_semantics<parallel>], iteration_bounds = array<i64: 1>, scalar_prefetch = 0 : i64, scratch_operands = 0 : i64, tpu.core_type = #tpu.core_type<tc>, window_params = [{transform_indices = @transform_0, window_bounds = array<i64: 16, 32>}, {transform_indices = @transform_1, window_bounds = array<i64: 16, 32>}, {transform_indices = @transform_2, window_bounds = array<i64: 16, 2>}, {pipeline_mode = #tpu.pipeline_mode<synchronous>, transform_indices = @transform_3, window_bounds = array<i64: 32, 32>}, {pipeline_mode = #tpu.pipeline_mode<synchronous>, transform_indices = @transform_4, window_bounds = array<i64: 1, 32>}, {pipeline_mode = #tpu.pipeline_mode<synchronous>, transform_indices = @transform_5, window_bounds = array<i64: 32, 64>}, {pipeline_mode = #tpu.pipeline_mode<synchronous>, transform_indices = @transform_6, window_bounds = array<i64: 1, 64>}, {pipeline_mode = #tpu.pipeline_mode<synchronous>, transform_indices = @transform_7, window_bounds = array<i64: 2, 32, 32>}, {pipeline_mode = #tpu.pipeline_mode<synchronous>, transform_indices = @transform_8, window_bounds = array<i64: 2, 1, 32>}, {pipeline_mode = #tpu.pipeline_mode<synchronous>, transform_indices = @transform_9, window_bounds = array<i64: 2, 32, 32>}, {pipeline_mode = #tpu.pipeline_mode<synchronous>, transform_indices = @transform_10, window_bounds = array<i64: 2, 1, 32>}, {transform_indices = @transform_11, window_bounds = array<i64: 16, 32>}]} {
    %c0 = arith.constant 0 : index
    %c0_0 = arith.constant 0 : index
    %0 = vector.load %arg1[%c0, %c0_0] : memref<16x32xf32, #tpu.memory_space<vmem>>, vector<16x32xf32>
    %c0_1 = arith.constant 0 : index
    %c0_2 = arith.constant 0 : index
    %1 = vector.load %arg4[%c0_1, %c0_2] : memref<32x32xf32, #tpu.memory_space<vmem>>, vector<32x32xf32>
    %2 = arith.truncf %0 : vector<16x32xf32> to vector<16x32xbf16>
    %3 = arith.truncf %1 : vector<32x32xf32> to vector<32x32xbf16>
    %cst = arith.constant dense<0.000000e+00> : vector<16x32xf32>
    %4 = tpu.matmul %2, %3, %cst {dimension_numbers = #tpu.dot_dimension_numbers<[1], [0], [0], [1], [0, 0, 1, 1], [], []>} : vector<16x32xbf16>, vector<32x32xbf16>, vector<16x32xf32> -> vector<16x32xf32>
    %c0_3 = arith.constant 0 : index
    %c0_4 = arith.constant 0 : index
    %5 = vector.load %arg5[%c0_3, %c0_4] : memref<1x32xf32, #tpu.memory_space<vmem>>, vector<1x32xf32>
    %6 = vector.broadcast %5 : vector<1x32xf32> to vector<16x32xf32>
    %7 = arith.addf %4, %6 : vector<16x32xf32>
    %c0_5 = arith.constant 0 : index
    %c0_6 = arith.constant 0 : index
    %8 = vector.load %arg6[%c0_5, %c0_6] : memref<32x64xf32, #tpu.memory_space<vmem>>, vector<32x64xf32>
    %9 = arith.truncf %7 : vector<16x32xf32> to vector<16x32xbf16>
    %10 = arith.truncf %8 : vector<32x64xf32> to vector<32x64xbf16>
    %cst_7 = arith.constant dense<0.000000e+00> : vector<16x64xf32>
    %11 = tpu.matmul %9, %10, %cst_7 {dimension_numbers = #tpu.dot_dimension_numbers<[1], [0], [0], [1], [0, 0, 1, 1], [], []>} : vector<16x32xbf16>, vector<32x64xbf16>, vector<16x64xf32> -> vector<16x64xf32>
    %c0_8 = arith.constant 0 : index
    %c0_9 = arith.constant 0 : index
    %12 = vector.load %arg7[%c0_8, %c0_9] : memref<1x64xf32, #tpu.memory_space<vmem>>, vector<1x64xf32>
    %13 = vector.broadcast %12 : vector<1x64xf32> to vector<16x64xf32>
    %14 = arith.addf %11, %13 : vector<16x64xf32>
    %cst_10 = arith.constant 5.000000e-01 : f32
    %15 = vector.broadcast %cst_10 : f32 to vector<16x64xf32>
    %16 = arith.mulf %15, %14 : vector<16x64xf32>
    %cst_11 = arith.constant 4.471500e-02 : f32
    %17 = vector.broadcast %cst_11 : f32 to vector<16x64xf32>
    %18 = arith.mulf %17, %14 : vector<16x64xf32>
    %19 = arith.mulf %18, %14 : vector<16x64xf32>
    %20 = arith.mulf %19, %14 : vector<16x64xf32>
    %21 = arith.addf %14, %20 : vector<16x64xf32>
    %cst_12 = arith.constant 0.797884583 : f32
    %22 = vector.broadcast %cst_12 : f32 to vector<16x64xf32>
    %23 = arith.mulf %22, %21 : vector<16x64xf32>
    %24 = math.tanh %23 : vector<16x64xf32>
    %cst_13 = arith.constant 1.000000e+00 : f32
    %25 = vector.broadcast %cst_13 : f32 to vector<16x64xf32>
    %26 = arith.addf %25, %24 : vector<16x64xf32>
    %27 = arith.mulf %16, %26 : vector<16x64xf32>
    %c0_14 = arith.constant 0 : index
    %c0_15 = arith.constant 0 : index
    %28 = vector.load %arg3[%c0_14, %c0_15] : memref<16x2xf32, #tpu.memory_space<vmem>>, vector<16x2xf32>
    %c0_16 = arith.constant 0 : index
    %c0_17 = arith.constant 0 : index
    %29 = vector.load %arg2[%c0_16, %c0_17] : memref<16x32xf32, #tpu.memory_space<vmem>>, vector<16x32xf32>
    %30 = vector.extract_strided_slice %27 {offsets = [0, 0], sizes = [16, 32], strides = [1, 1]} : vector<16x64xf32> to vector<16x32xf32>
    %c0_18 = arith.constant 0 : index
    %c0_19 = arith.constant 0 : index
    %c0_20 = arith.constant 0 : index
    %31 = vector.load %arg8[%c0_18, %c0_19, %c0_20] : memref<2x32x32xf32, #tpu.memory_space<vmem>>, vector<1x32x32xf32>
    %32 = vector.shape_cast %31 : vector<1x32x32xf32> to vector<32x32xf32>
    %c0_21 = arith.constant 0 : index
    %c0_22 = arith.constant 0 : index
    %c0_23 = arith.constant 0 : index
    %33 = vector.load %arg9[%c0_21, %c0_22, %c0_23] : memref<2x1x32xf32, #tpu.memory_space<vmem>>, vector<1x1x32xf32>
    %34 = vector.shape_cast %33 : vector<1x1x32xf32> to vector<1x32xf32>
    %35 = arith.truncf %30 : vector<16x32xf32> to vector<16x32xbf16>
    %36 = arith.truncf %32 : vector<32x32xf32> to vector<32x32xbf16>
    %cst_24 = arith.constant dense<0.000000e+00> : vector<16x32xf32>
    %37 = tpu.matmul %35, %36, %cst_24 {dimension_numbers = #tpu.dot_dimension_numbers<[1], [0], [0], [1], [0, 0, 1, 1], [], []>} : vector<16x32xbf16>, vector<32x32xbf16>, vector<16x32xf32> -> vector<16x32xf32>
    %38 = vector.broadcast %34 : vector<1x32xf32> to vector<16x32xf32>
    %39 = arith.addf %37, %38 : vector<16x32xf32>
    %cst_25 = arith.constant 5.000000e-01 : f32
    %40 = vector.broadcast %cst_25 : f32 to vector<16x32xf32>
    %41 = arith.mulf %40, %39 : vector<16x32xf32>
    %cst_26 = arith.constant 4.471500e-02 : f32
    %42 = vector.broadcast %cst_26 : f32 to vector<16x32xf32>
    %43 = arith.mulf %42, %39 : vector<16x32xf32>
    %44 = arith.mulf %43, %39 : vector<16x32xf32>
    %45 = arith.mulf %44, %39 : vector<16x32xf32>
    %46 = arith.addf %39, %45 : vector<16x32xf32>
    %cst_27 = arith.constant 0.797884583 : f32
    %47 = vector.broadcast %cst_27 : f32 to vector<16x32xf32>
    %48 = arith.mulf %47, %46 : vector<16x32xf32>
    %49 = math.tanh %48 : vector<16x32xf32>
    %cst_28 = arith.constant 1.000000e+00 : f32
    %50 = vector.broadcast %cst_28 : f32 to vector<16x32xf32>
    %51 = arith.addf %50, %49 : vector<16x32xf32>
    %52 = arith.mulf %41, %51 : vector<16x32xf32>
    %c0_29 = arith.constant 0 : index
    %c0_30 = arith.constant 0 : index
    %c0_31 = arith.constant 0 : index
    %53 = vector.load %arg10[%c0_29, %c0_30, %c0_31] : memref<2x32x32xf32, #tpu.memory_space<vmem>>, vector<1x32x32xf32>
    %54 = vector.shape_cast %53 : vector<1x32x32xf32> to vector<32x32xf32>
    %c0_32 = arith.constant 0 : index
    %c0_33 = arith.constant 0 : index
    %c0_34 = arith.constant 0 : index
    %55 = vector.load %arg11[%c0_32, %c0_33, %c0_34] : memref<2x1x32xf32, #tpu.memory_space<vmem>>, vector<1x1x32xf32>
    %56 = vector.shape_cast %55 : vector<1x1x32xf32> to vector<1x32xf32>
    %57 = arith.truncf %52 : vector<16x32xf32> to vector<16x32xbf16>
    %58 = arith.truncf %54 : vector<32x32xf32> to vector<32x32xbf16>
    %cst_35 = arith.constant dense<0.000000e+00> : vector<16x32xf32>
    %59 = tpu.matmul %57, %58, %cst_35 {dimension_numbers = #tpu.dot_dimension_numbers<[1], [0], [0], [1], [0, 0, 1, 1], [], []>} : vector<16x32xbf16>, vector<32x32xbf16>, vector<16x32xf32> -> vector<16x32xf32>
    %60 = vector.broadcast %56 : vector<1x32xf32> to vector<16x32xf32>
    %61 = arith.addf %59, %60 : vector<16x32xf32>
    %62 = vector.extract_strided_slice %28 {offsets = [0, 0], sizes = [16, 1], strides = [1, 1]} : vector<16x2xf32> to vector<16x1xf32>
    %63 = vector.broadcast %62 : vector<16x1xf32> to vector<16x32xf32>
    %64 = arith.mulf %63, %61 : vector<16x32xf32>
    %65 = arith.addf %29, %64 : vector<16x32xf32>
    %66 = vector.extract_strided_slice %27 {offsets = [0, 32], sizes = [16, 32], strides = [1, 1]} : vector<16x64xf32> to vector<16x32xf32>
    %c1 = arith.constant 1 : index
    %c0_36 = arith.constant 0 : index
    %c0_37 = arith.constant 0 : index
    %67 = vector.load %arg8[%c1, %c0_36, %c0_37] : memref<2x32x32xf32, #tpu.memory_space<vmem>>, vector<1x32x32xf32>
    %68 = vector.shape_cast %67 : vector<1x32x32xf32> to vector<32x32xf32>
    %c1_38 = arith.constant 1 : index
    %c0_39 = arith.constant 0 : index
    %c0_40 = arith.constant 0 : index
    %69 = vector.load %arg9[%c1_38, %c0_39, %c0_40] : memref<2x1x32xf32, #tpu.memory_space<vmem>>, vector<1x1x32xf32>
    %70 = vector.shape_cast %69 : vector<1x1x32xf32> to vector<1x32xf32>
    %71 = arith.truncf %66 : vector<16x32xf32> to vector<16x32xbf16>
    %72 = arith.truncf %68 : vector<32x32xf32> to vector<32x32xbf16>
    %cst_41 = arith.constant dense<0.000000e+00> : vector<16x32xf32>
    %73 = tpu.matmul %71, %72, %cst_41 {dimension_numbers = #tpu.dot_dimension_numbers<[1], [0], [0], [1], [0, 0, 1, 1], [], []>} : vector<16x32xbf16>, vector<32x32xbf16>, vector<16x32xf32> -> vector<16x32xf32>
    %74 = vector.broadcast %70 : vector<1x32xf32> to vector<16x32xf32>
    %75 = arith.addf %73, %74 : vector<16x32xf32>
    %cst_42 = arith.constant 5.000000e-01 : f32
    %76 = vector.broadcast %cst_42 : f32 to vector<16x32xf32>
    %77 = arith.mulf %76, %75 : vector<16x32xf32>
    %cst_43 = arith.constant 4.471500e-02 : f32
    %78 = vector.broadcast %cst_43 : f32 to vector<16x32xf32>
    %79 = arith.mulf %78, %75 : vector<16x32xf32>
    %80 = arith.mulf %79, %75 : vector<16x32xf32>
    %81 = arith.mulf %80, %75 : vector<16x32xf32>
    %82 = arith.addf %75, %81 : vector<16x32xf32>
    %cst_44 = arith.constant 0.797884583 : f32
    %83 = vector.broadcast %cst_44 : f32 to vector<16x32xf32>
    %84 = arith.mulf %83, %82 : vector<16x32xf32>
    %85 = math.tanh %84 : vector<16x32xf32>
    %cst_45 = arith.constant 1.000000e+00 : f32
    %86 = vector.broadcast %cst_45 : f32 to vector<16x32xf32>
    %87 = arith.addf %86, %85 : vector<16x32xf32>
    %88 = arith.mulf %77, %87 : vector<16x32xf32>
    %c1_46 = arith.constant 1 : index
    %c0_47 = arith.constant 0 : index
    %c0_48 = arith.constant 0 : index
    %89 = vector.load %arg10[%c1_46, %c0_47, %c0_48] : memref<2x32x32xf32, #tpu.memory_space<vmem>>, vector<1x32x32xf32>
    %90 = vector.shape_cast %89 : vector<1x32x32xf32> to vector<32x32xf32>
    %c1_49 = arith.constant 1 : index
    %c0_50 = arith.constant 0 : index
    %c0_51 = arith.constant 0 : index
    %91 = vector.load %arg11[%c1_49, %c0_50, %c0_51] : memref<2x1x32xf32, #tpu.memory_space<vmem>>, vector<1x1x32xf32>
    %92 = vector.shape_cast %91 : vector<1x1x32xf32> to vector<1x32xf32>
    %93 = arith.truncf %88 : vector<16x32xf32> to vector<16x32xbf16>
    %94 = arith.truncf %90 : vector<32x32xf32> to vector<32x32xbf16>
    %cst_52 = arith.constant dense<0.000000e+00> : vector<16x32xf32>
    %95 = tpu.matmul %93, %94, %cst_52 {dimension_numbers = #tpu.dot_dimension_numbers<[1], [0], [0], [1], [0, 0, 1, 1], [], []>} : vector<16x32xbf16>, vector<32x32xbf16>, vector<16x32xf32> -> vector<16x32xf32>
    %96 = vector.broadcast %92 : vector<1x32xf32> to vector<16x32xf32>
    %97 = arith.addf %95, %96 : vector<16x32xf32>
    %98 = vector.extract_strided_slice %28 {offsets = [0, 1], sizes = [16, 1], strides = [1, 1]} : vector<16x2xf32> to vector<16x1xf32>
    %99 = vector.broadcast %98 : vector<16x1xf32> to vector<16x32xf32>
    %100 = arith.mulf %99, %97 : vector<16x32xf32>
    %101 = arith.addf %65, %100 : vector<16x32xf32>
    %c0_53 = arith.constant 0 : index
    %c0_54 = arith.constant 0 : index
    %102 = vector.load %arg12[%c0_53, %c0_54] : memref<16x32xf32, #tpu.memory_space<vmem>>, vector<16x32xf32>
    tpu.vector_store %arg12[%c0_53, %c0_54], %101 {strides = array<i32>} : memref<16x32xf32, #tpu.memory_space<vmem>>, vector<16x32xf32>,
    return
  }
  func.func @transform_0(%arg0: i32) -> (i32, i32) {
    %c0_i32 = arith.constant 0 : i32
    %c0_i32_0 = arith.constant 0 : i32
    return %arg0, %c0_i32 : i32, i32
  }
  func.func @transform_1(%arg0: i32) -> (i32, i32) {
    %c0_i32 = arith.constant 0 : i32
    %c0_i32_0 = arith.constant 0 : i32
    return %arg0, %c0_i32 : i32, i32
  }
  func.func @transform_2(%arg0: i32) -> (i32, i32) {
    %c0_i32 = arith.constant 0 : i32
    %c0_i32_0 = arith.constant 0 : i32
    return %arg0, %c0_i32 : i32, i32
  }
  func.func @transform_3(%arg0: i32) -> (i32, i32) {
    %c0_i32 = arith.constant 0 : i32
    %c0_i32_0 = arith.constant 0 : i32
    %c0_i32_1 = arith.constant 0 : i32
    return %c0_i32, %c0_i32_0 : i32, i32
  }
  func.func @transform_4(%arg0: i32) -> (i32, i32) {
    %c0_i32 = arith.constant 0 : i32
    %c0_i32_0 = arith.constant 0 : i32
    %c0_i32_1 = arith.constant 0 : i32
    return %c0_i32, %c0_i32_0 : i32, i32
  }
  func.func @transform_5(%arg0: i32) -> (i32, i32) {
    %c0_i32 = arith.constant 0 : i32
    %c0_i32_0 = arith.constant 0 : i32
    %c0_i32_1 = arith.constant 0 : i32
    return %c0_i32, %c0_i32_0 : i32, i32
  }
  func.func @transform_6(%arg0: i32) -> (i32, i32) {
    %c0_i32 = arith.constant 0 : i32
    %c0_i32_0 = arith.constant 0 : i32
    %c0_i32_1 = arith.constant 0 : i32
    return %c0_i32, %c0_i32_0 : i32, i32
  }
  func.func @transform_7(%arg0: i32) -> (i32, i32, i32) {
    %c0_i32 = arith.constant 0 : i32
    %c0_i32_0 = arith.constant 0 : i32
    %c0_i32_1 = arith.constant 0 : i32
    %c0_i32_2 = arith.constant 0 : i32
    return %c0_i32, %c0_i32_0, %c0_i32_1 : i32, i32, i32
  }
  func.func @transform_8(%arg0: i32) -> (i32, i32, i32) {
    %c0_i32 = arith.constant 0 : i32
    %c0_i32_0 = arith.constant 0 : i32
    %c0_i32_1 = arith.constant 0 : i32
    %c0_i32_2 = arith.constant 0 : i32
    return %c0_i32, %c0_i32_0, %c0_i32_1 : i32, i32, i32
  }
  func.func @transform_9(%arg0: i32) -> (i32, i32, i32) {
    %c0_i32 = arith.constant 0 : i32
    %c0_i32_0 = arith.constant 0 : i32
    %c0_i32_1 = arith.constant 0 : i32
    %c0_i32_2 = arith.constant 0 : i32
    return %c0_i32, %c0_i32_0, %c0_i32_1 : i32, i32, i32
  }
  func.func @transform_10(%arg0: i32) -> (i32, i32, i32) {
    %c0_i32 = arith.constant 0 : i32
    %c0_i32_0 = arith.constant 0 : i32
    %c0_i32_1 = arith.constant 0 : i32
    %c0_i32_2 = arith.constant 0 : i32
    return %c0_i32, %c0_i32_0, %c0_i32_1 : i32, i32, i32
  }
  func.func @transform_11(%arg0: i32) -> (i32, i32) {
    %c0_i32 = arith.constant 0 : i32
    %c0_i32_0 = arith.constant 0 : i32
    return %arg0, %c0_i32 : i32, i32
  }
}

module attributes {stable_mosaic.version = 11 : i64} {
  func.func @_self_attn_kernel(%arg0: i32, %arg1: memref<1x8x32xf32, #tpu.memory_space<vmem>>, %arg2: memref<32x96xf32, #tpu.memory_space<vmem>>, %arg3: memref<1x96xf32, #tpu.memory_space<vmem>>, %arg4: memref<32x32xf32, #tpu.memory_space<vmem>>, %arg5: memref<1x8x32xf32, #tpu.memory_space<vmem>>) attributes {dimension_semantics = [#tpu.dimension_semantics<parallel>], iteration_bounds = array<i64: 2>, scalar_prefetch = 0 : i64, scratch_operands = 0 : i64, tpu.core_type = #tpu.core_type<tc>, window_params = [{transform_indices = @transform_0, window_bounds = array<i64: 1, 8, 32>}, {pipeline_mode = #tpu.pipeline_mode<synchronous>, transform_indices = @transform_1, window_bounds = array<i64: 32, 96>}, {pipeline_mode = #tpu.pipeline_mode<synchronous>, transform_indices = @transform_2, window_bounds = array<i64: 1, 96>}, {pipeline_mode = #tpu.pipeline_mode<synchronous>, transform_indices = @transform_3, window_bounds = array<i64: 32, 32>}, {transform_indices = @transform_4, window_bounds = array<i64: 1, 8, 32>}]} {
    %c0 = arith.constant 0 : index
    %c0_0 = arith.constant 0 : index
    %c0_1 = arith.constant 0 : index
    %0 = vector.load %arg1[%c0, %c0_0, %c0_1] : memref<1x8x32xf32, #tpu.memory_space<vmem>>, vector<1x8x32xf32>
    %1 = vector.shape_cast %0 : vector<1x8x32xf32> to vector<8x32xf32>
    %c0_2 = arith.constant 0 : index
    %c0_3 = arith.constant 0 : index
    %2 = vector.load %arg4[%c0_2, %c0_3] : memref<32x32xf32, #tpu.memory_space<vmem>>, vector<32x32xf32>
    %c0_4 = arith.constant 0 : index
    %c0_5 = arith.constant 0 : index
    %3 = vector.load %arg2[%c0_4, %c0_5] : memref<32x96xf32, #tpu.memory_space<vmem>>, vector<32x96xf32>
    %4 = arith.truncf %1 : vector<8x32xf32> to vector<8x32xbf16>
    %5 = arith.truncf %3 : vector<32x96xf32> to vector<32x96xbf16>
    %cst = arith.constant dense<0.000000e+00> : vector<8x96xf32>
    %6 = tpu.matmul %4, %5, %cst {dimension_numbers = #tpu.dot_dimension_numbers<[1], [0], [0], [1], [0, 0, 1, 1], [], []>} : vector<8x32xbf16>, vector<32x96xbf16>, vector<8x96xf32> -> vector<8x96xf32>
    %c0_6 = arith.constant 0 : index
    %c0_7 = arith.constant 0 : index
    %7 = vector.load %arg3[%c0_6, %c0_7] : memref<1x96xf32, #tpu.memory_space<vmem>>, vector<1x96xf32>
    %8 = vector.broadcast %7 : vector<1x96xf32> to vector<8x96xf32>
    %9 = arith.addf %6, %8 : vector<8x96xf32>
    %10 = vector.extract_strided_slice %9 {offsets = [0, 0], sizes = [8, 32], strides = [1, 1]} : vector<8x96xf32> to vector<8x32xf32>
    %11 = vector.extract_strided_slice %9 {offsets = [0, 32], sizes = [8, 32], strides = [1, 1]} : vector<8x96xf32> to vector<8x32xf32>
    %12 = vector.extract_strided_slice %9 {offsets = [0, 64], sizes = [8, 32], strides = [1, 1]} : vector<8x96xf32> to vector<8x32xf32>
    %cst_8 = arith.constant dense<0xFF800000> : vector<8xf32>
    %13 = vector.multi_reduction <maximumf>, %10, %cst_8 [1] : vector<8x32xf32> to vector<8xf32>
    %14 = vector.shape_cast %13 : vector<8xf32> to vector<8x1xf32>
    %15 = vector.broadcast %14 : vector<8x1xf32> to vector<8x32xf32>
    %16 = arith.subf %10, %15 : vector<8x32xf32>
    %17 = math.exp %16 : vector<8x32xf32>
    %cst_9 = arith.constant dense<0.000000e+00> : vector<8x32xf32>
    %18 = tpu.matmul %17, %2, %cst_9 {dimension_numbers = #tpu.dot_dimension_numbers<[1], [0], [0], [1], [0, 0, 1, 1], [], []>} : vector<8x32xf32>, vector<32x32xf32>, vector<8x32xf32> -> vector<8x32xf32>
    %19 = tpu.reciprocal %18 {approx = true} : vector<8x32xf32> -> vector<8x32xf32>
    %20 = arith.mulf %17, %19 : vector<8x32xf32>
    %cst_10 = arith.constant dense<0xFF800000> : vector<8xf32>
    %21 = vector.multi_reduction <maximumf>, %11, %cst_10 [1] : vector<8x32xf32> to vector<8xf32>
    %22 = vector.shape_cast %21 : vector<8xf32> to vector<8x1xf32>
    %23 = vector.broadcast %22 : vector<8x1xf32> to vector<8x32xf32>
    %24 = arith.subf %11, %23 : vector<8x32xf32>
    %25 = math.exp %24 : vector<8x32xf32>
    %cst_11 = arith.constant dense<0.000000e+00> : vector<8x32xf32>
    %26 = tpu.matmul %25, %2, %cst_11 {dimension_numbers = #tpu.dot_dimension_numbers<[1], [0], [0], [1], [0, 0, 1, 1], [], []>} : vector<8x32xf32>, vector<32x32xf32>, vector<8x32xf32> -> vector<8x32xf32>
    %27 = tpu.reciprocal %26 {approx = true} : vector<8x32xf32> -> vector<8x32xf32>
    %28 = arith.mulf %25, %27 : vector<8x32xf32>
    %cst_12 = arith.constant dense<0.000000e+00> : vector<32xf32>
    %29 = vector.multi_reduction <add>, %28, %cst_12 [0] : vector<8x32xf32> to vector<32xf32>
    %30 = vector.shape_cast %29 : vector<32xf32> to vector<1x32xf32>
    %31 = vector.broadcast %30 : vector<1x32xf32> to vector<8x32xf32>
    %32 = arith.mulf %20, %31 : vector<8x32xf32>
    %cst_13 = arith.constant dense<0.000000e+00> : vector<8x32xf32>
    %33 = tpu.matmul %32, %2, %cst_13 {dimension_numbers = #tpu.dot_dimension_numbers<[1], [0], [0], [1], [0, 0, 1, 1], [], []>} : vector<8x32xf32>, vector<32x32xf32>, vector<8x32xf32> -> vector<8x32xf32>
    %34 = tpu.reciprocal %33 {approx = true} : vector<8x32xf32> -> vector<8x32xf32>
    %35 = tpu.transpose %28, [1, 0] : vector<8x32xf32> -> vector<32x8xf32>
    %36 = arith.truncf %35 : vector<32x8xf32> to vector<32x8xbf16>
    %37 = arith.truncf %12 : vector<8x32xf32> to vector<8x32xbf16>
    %cst_14 = arith.constant dense<0.000000e+00> : vector<32x32xf32>
    %38 = tpu.matmul %36, %37, %cst_14 {dimension_numbers = #tpu.dot_dimension_numbers<[1], [0], [0], [1], [0, 0, 1, 1], [], []>} : vector<32x8xbf16>, vector<8x32xbf16>, vector<32x32xf32> -> vector<32x32xf32>
    %39 = arith.mulf %38, %2 : vector<32x32xf32>
    %40 = arith.truncf %20 : vector<8x32xf32> to vector<8x32xbf16>
    %41 = arith.truncf %39 : vector<32x32xf32> to vector<32x32xbf16>
    %cst_15 = arith.constant dense<0.000000e+00> : vector<8x32xf32>
    %42 = tpu.matmul %40, %41, %cst_15 {dimension_numbers = #tpu.dot_dimension_numbers<[1], [0], [0], [1], [0, 0, 1, 1], [], []>} : vector<8x32xbf16>, vector<32x32xbf16>, vector<8x32xf32> -> vector<8x32xf32>
    %43 = arith.mulf %34, %42 : vector<8x32xf32>
    %44 = arith.addf %20, %43 : vector<8x32xf32>
    %c0_16 = arith.constant 0 : index
    %c0_17 = arith.constant 0 : index
    %c0_18 = arith.constant 0 : index
    %45 = vector.load %arg5[%c0_16, %c0_17, %c0_18] : memref<1x8x32xf32, #tpu.memory_space<vmem>>, vector<1x8x32xf32>
    %46 = vector.shape_cast %45 : vector<1x8x32xf32> to vector<8x32xf32>
    %47 = vector.shape_cast %44 : vector<8x32xf32> to vector<1x8x32xf32>
    tpu.vector_store %arg5[%c0_16, %c0_17, %c0_18], %47 {strides = array<i32>} : memref<1x8x32xf32, #tpu.memory_space<vmem>>, vector<1x8x32xf32>,
    return
  }
  func.func @transform_0(%arg0: i32) -> (i32, i32, i32) {
    %c0_i32 = arith.constant 0 : i32
    %c0_i32_0 = arith.constant 0 : i32
    %c0_i32_1 = arith.constant 0 : i32
    return %arg0, %c0_i32, %c0_i32_0 : i32, i32, i32
  }
  func.func @transform_1(%arg0: i32) -> (i32, i32) {
    %c0_i32 = arith.constant 0 : i32
    %c0_i32_0 = arith.constant 0 : i32
    %c0_i32_1 = arith.constant 0 : i32
    return %c0_i32, %c0_i32_0 : i32, i32
  }
  func.func @transform_2(%arg0: i32) -> (i32, i32) {
    %c0_i32 = arith.constant 0 : i32
    %c0_i32_0 = arith.constant 0 : i32
    %c0_i32_1 = arith.constant 0 : i32
    return %c0_i32, %c0_i32_0 : i32, i32
  }
  func.func @transform_3(%arg0: i32) -> (i32, i32) {
    %c0_i32 = arith.constant 0 : i32
    %c0_i32_0 = arith.constant 0 : i32
    %c0_i32_1 = arith.constant 0 : i32
    return %c0_i32, %c0_i32_0 : i32, i32
  }
  func.func @transform_4(%arg0: i32) -> (i32, i32, i32) {
    %c0_i32 = arith.constant 0 : i32
    %c0_i32_0 = arith.constant 0 : i32
    %c0_i32_1 = arith.constant 0 : i32
    return %arg0, %c0_i32, %c0_i32_0 : i32, i32, i32
  }
}

module attributes {stable_mosaic.version = 11 : i64} {
  func.func @_cross_attn_kernel(%arg0: i32, %arg1: memref<1x8x32xf32, #tpu.memory_space<vmem>>, %arg2: memref<32x32xf32, #tpu.memory_space<vmem>>, %arg3: memref<1x32xf32, #tpu.memory_space<vmem>>, %arg4: memref<32x32xf32, #tpu.memory_space<vmem>>, %arg5: memref<1x8x32xf32, #tpu.memory_space<vmem>>, %arg6: memref<32x64xf32, #tpu.memory_space<vmem>>, %arg7: memref<1x64xf32, #tpu.memory_space<vmem>>, %arg8: memref<1x16x32xf32, #tpu.memory_space<vmem>>, %arg9: memref<32x64xf32, #tpu.memory_space<vmem>>, %arg10: memref<1x64xf32, #tpu.memory_space<vmem>>, %arg11: memref<1x8x32xf32, #tpu.memory_space<vmem>>) attributes {dimension_semantics = [#tpu.dimension_semantics<parallel>], iteration_bounds = array<i64: 2>, scalar_prefetch = 0 : i64, scratch_operands = 0 : i64, tpu.core_type = #tpu.core_type<tc>, window_params = [{transform_indices = @transform_0, window_bounds = array<i64: 1, 8, 32>}, {pipeline_mode = #tpu.pipeline_mode<synchronous>, transform_indices = @transform_1, window_bounds = array<i64: 32, 32>}, {pipeline_mode = #tpu.pipeline_mode<synchronous>, transform_indices = @transform_2, window_bounds = array<i64: 1, 32>}, {pipeline_mode = #tpu.pipeline_mode<synchronous>, transform_indices = @transform_3, window_bounds = array<i64: 32, 32>}, {transform_indices = @transform_4, window_bounds = array<i64: 1, 8, 32>}, {pipeline_mode = #tpu.pipeline_mode<synchronous>, transform_indices = @transform_5, window_bounds = array<i64: 32, 64>}, {pipeline_mode = #tpu.pipeline_mode<synchronous>, transform_indices = @transform_6, window_bounds = array<i64: 1, 64>}, {transform_indices = @transform_7, window_bounds = array<i64: 1, 16, 32>}, {pipeline_mode = #tpu.pipeline_mode<synchronous>, transform_indices = @transform_8, window_bounds = array<i64: 32, 64>}, {pipeline_mode = #tpu.pipeline_mode<synchronous>, transform_indices = @transform_9, window_bounds = array<i64: 1, 64>}, {transform_indices = @transform_10, window_bounds = array<i64: 1, 8, 32>}]} {
    %c0 = arith.constant 0 : index
    %c0_0 = arith.constant 0 : index
    %c0_1 = arith.constant 0 : index
    %0 = vector.load %arg1[%c0, %c0_0, %c0_1] : memref<1x8x32xf32, #tpu.memory_space<vmem>>, vector<1x8x32xf32>
    %1 = vector.shape_cast %0 : vector<1x8x32xf32> to vector<8x32xf32>
    %c0_2 = arith.constant 0 : index
    %c0_3 = arith.constant 0 : index
    %2 = vector.load %arg4[%c0_2, %c0_3] : memref<32x32xf32, #tpu.memory_space<vmem>>, vector<32x32xf32>
    %c0_4 = arith.constant 0 : index
    %c0_5 = arith.constant 0 : index
    %3 = vector.load %arg2[%c0_4, %c0_5] : memref<32x32xf32, #tpu.memory_space<vmem>>, vector<32x32xf32>
    %4 = arith.truncf %1 : vector<8x32xf32> to vector<8x32xbf16>
    %5 = arith.truncf %3 : vector<32x32xf32> to vector<32x32xbf16>
    %cst = arith.constant dense<0.000000e+00> : vector<8x32xf32>
    %6 = tpu.matmul %4, %5, %cst {dimension_numbers = #tpu.dot_dimension_numbers<[1], [0], [0], [1], [0, 0, 1, 1], [], []>} : vector<8x32xbf16>, vector<32x32xbf16>, vector<8x32xf32> -> vector<8x32xf32>
    %c0_6 = arith.constant 0 : index
    %c0_7 = arith.constant 0 : index
    %7 = vector.load %arg3[%c0_6, %c0_7] : memref<1x32xf32, #tpu.memory_space<vmem>>, vector<1x32xf32>
    %8 = vector.broadcast %7 : vector<1x32xf32> to vector<8x32xf32>
    %9 = arith.addf %6, %8 : vector<8x32xf32>
    %cst_8 = arith.constant dense<0xFF800000> : vector<8xf32>
    %10 = vector.multi_reduction <maximumf>, %9, %cst_8 [1] : vector<8x32xf32> to vector<8xf32>
    %11 = vector.shape_cast %10 : vector<8xf32> to vector<8x1xf32>
    %12 = vector.broadcast %11 : vector<8x1xf32> to vector<8x32xf32>
    %13 = arith.subf %9, %12 : vector<8x32xf32>
    %14 = math.exp %13 : vector<8x32xf32>
    %cst_9 = arith.constant dense<0.000000e+00> : vector<8x32xf32>
    %15 = tpu.matmul %14, %2, %cst_9 {dimension_numbers = #tpu.dot_dimension_numbers<[1], [0], [0], [1], [0, 0, 1, 1], [], []>} : vector<8x32xf32>, vector<32x32xf32>, vector<8x32xf32> -> vector<8x32xf32>
    %16 = tpu.reciprocal %15 {approx = true} : vector<8x32xf32> -> vector<8x32xf32>
    %17 = arith.mulf %14, %16 : vector<8x32xf32>
    %cst_10 = arith.constant 0.000000e+00 : f32
    %18 = vector.broadcast %cst_10 : f32 to vector<8x32xf32>
    %c0_11 = arith.constant 0 : index
    %c0_12 = arith.constant 0 : index
    %c0_13 = arith.constant 0 : index
    %19 = vector.load %arg5[%c0_11, %c0_12, %c0_13] : memref<1x8x32xf32, #tpu.memory_space<vmem>>, vector<1x8x32xf32>
    %20 = vector.shape_cast %19 : vector<1x8x32xf32> to vector<8x32xf32>
    %c0_14 = arith.constant 0 : index
    %c0_15 = arith.constant 0 : index
    %21 = vector.load %arg6[%c0_14, %c0_15] : memref<32x64xf32, #tpu.memory_space<vmem>>, vector<32x64xf32>
    %22 = arith.truncf %20 : vector<8x32xf32> to vector<8x32xbf16>
    %23 = arith.truncf %21 : vector<32x64xf32> to vector<32x64xbf16>
    %cst_16 = arith.constant dense<0.000000e+00> : vector<8x64xf32>
    %24 = tpu.matmul %22, %23, %cst_16 {dimension_numbers = #tpu.dot_dimension_numbers<[1], [0], [0], [1], [0, 0, 1, 1], [], []>} : vector<8x32xbf16>, vector<32x64xbf16>, vector<8x64xf32> -> vector<8x64xf32>
    %c0_17 = arith.constant 0 : index
    %c0_18 = arith.constant 0 : index
    %25 = vector.load %arg7[%c0_17, %c0_18] : memref<1x64xf32, #tpu.memory_space<vmem>>, vector<1x64xf32>
    %26 = vector.broadcast %25 : vector<1x64xf32> to vector<8x64xf32>
    %27 = arith.addf %24, %26 : vector<8x64xf32>
    %28 = vector.extract_strided_slice %27 {offsets = [0, 0], sizes = [8, 32], strides = [1, 1]} : vector<8x64xf32> to vector<8x32xf32>
    %29 = vector.extract_strided_slice %27 {offsets = [0, 32], sizes = [8, 32], strides = [1, 1]} : vector<8x64xf32> to vector<8x32xf32>
    %cst_19 = arith.constant dense<0xFF800000> : vector<8xf32>
    %30 = vector.multi_reduction <maximumf>, %28, %cst_19 [1] : vector<8x32xf32> to vector<8xf32>
    %31 = vector.shape_cast %30 : vector<8xf32> to vector<8x1xf32>
    %32 = vector.broadcast %31 : vector<8x1xf32> to vector<8x32xf32>
    %33 = arith.subf %28, %32 : vector<8x32xf32>
    %34 = math.exp %33 : vector<8x32xf32>
    %cst_20 = arith.constant dense<0.000000e+00> : vector<8x32xf32>
    %35 = tpu.matmul %34, %2, %cst_20 {dimension_numbers = #tpu.dot_dimension_numbers<[1], [0], [0], [1], [0, 0, 1, 1], [], []>} : vector<8x32xf32>, vector<32x32xf32>, vector<8x32xf32> -> vector<8x32xf32>
    %36 = tpu.reciprocal %35 {approx = true} : vector<8x32xf32> -> vector<8x32xf32>
    %37 = arith.mulf %34, %36 : vector<8x32xf32>
    %cst_21 = arith.constant dense<0.000000e+00> : vector<32xf32>
    %38 = vector.multi_reduction <add>, %37, %cst_21 [0] : vector<8x32xf32> to vector<32xf32>
    %39 = vector.shape_cast %38 : vector<32xf32> to vector<1x32xf32>
    %40 = vector.broadcast %39 : vector<1x32xf32> to vector<8x32xf32>
    %41 = arith.mulf %17, %40 : vector<8x32xf32>
    %cst_22 = arith.constant dense<0.000000e+00> : vector<8x32xf32>
    %42 = tpu.matmul %41, %2, %cst_22 {dimension_numbers = #tpu.dot_dimension_numbers<[1], [0], [0], [1], [0, 0, 1, 1], [], []>} : vector<8x32xf32>, vector<32x32xf32>, vector<8x32xf32> -> vector<8x32xf32>
    %43 = tpu.reciprocal %42 {approx = true} : vector<8x32xf32> -> vector<8x32xf32>
    %44 = tpu.transpose %37, [1, 0] : vector<8x32xf32> -> vector<32x8xf32>
    %45 = arith.truncf %44 : vector<32x8xf32> to vector<32x8xbf16>
    %46 = arith.truncf %29 : vector<8x32xf32> to vector<8x32xbf16>
    %cst_23 = arith.constant dense<0.000000e+00> : vector<32x32xf32>
    %47 = tpu.matmul %45, %46, %cst_23 {dimension_numbers = #tpu.dot_dimension_numbers<[1], [0], [0], [1], [0, 0, 1, 1], [], []>} : vector<32x8xbf16>, vector<8x32xbf16>, vector<32x32xf32> -> vector<32x32xf32>
    %48 = arith.mulf %47, %2 : vector<32x32xf32>
    %49 = arith.truncf %17 : vector<8x32xf32> to vector<8x32xbf16>
    %50 = arith.truncf %48 : vector<32x32xf32> to vector<32x32xbf16>
    %cst_24 = arith.constant dense<0.000000e+00> : vector<8x32xf32>
    %51 = tpu.matmul %49, %50, %cst_24 {dimension_numbers = #tpu.dot_dimension_numbers<[1], [0], [0], [1], [0, 0, 1, 1], [], []>} : vector<8x32xbf16>, vector<32x32xbf16>, vector<8x32xf32> -> vector<8x32xf32>
    %52 = arith.mulf %43, %51 : vector<8x32xf32>
    %53 = arith.addf %18, %52 : vector<8x32xf32>
    %c0_25 = arith.constant 0 : index
    %c0_26 = arith.constant 0 : index
    %c0_27 = arith.constant 0 : index
    %54 = vector.load %arg8[%c0_25, %c0_26, %c0_27] : memref<1x16x32xf32, #tpu.memory_space<vmem>>, vector<1x16x32xf32>
    %55 = vector.shape_cast %54 : vector<1x16x32xf32> to vector<16x32xf32>
    %c0_28 = arith.constant 0 : index
    %c0_29 = arith.constant 0 : index
    %56 = vector.load %arg9[%c0_28, %c0_29] : memref<32x64xf32, #tpu.memory_space<vmem>>, vector<32x64xf32>
    %57 = arith.truncf %55 : vector<16x32xf32> to vector<16x32xbf16>
    %58 = arith.truncf %56 : vector<32x64xf32> to vector<32x64xbf16>
    %cst_30 = arith.constant dense<0.000000e+00> : vector<16x64xf32>
    %59 = tpu.matmul %57, %58, %cst_30 {dimension_numbers = #tpu.dot_dimension_numbers<[1], [0], [0], [1], [0, 0, 1, 1], [], []>} : vector<16x32xbf16>, vector<32x64xbf16>, vector<16x64xf32> -> vector<16x64xf32>
    %c0_31 = arith.constant 0 : index
    %c0_32 = arith.constant 0 : index
    %60 = vector.load %arg10[%c0_31, %c0_32] : memref<1x64xf32, #tpu.memory_space<vmem>>, vector<1x64xf32>
    %61 = vector.broadcast %60 : vector<1x64xf32> to vector<16x64xf32>
    %62 = arith.addf %59, %61 : vector<16x64xf32>
    %63 = vector.extract_strided_slice %62 {offsets = [0, 0], sizes = [16, 32], strides = [1, 1]} : vector<16x64xf32> to vector<16x32xf32>
    %64 = vector.extract_strided_slice %62 {offsets = [0, 32], sizes = [16, 32], strides = [1, 1]} : vector<16x64xf32> to vector<16x32xf32>
    %cst_33 = arith.constant dense<0xFF800000> : vector<16xf32>
    %65 = vector.multi_reduction <maximumf>, %63, %cst_33 [1] : vector<16x32xf32> to vector<16xf32>
    %66 = vector.shape_cast %65 : vector<16xf32> to vector<16x1xf32>
    %67 = vector.broadcast %66 : vector<16x1xf32> to vector<16x32xf32>
    %68 = arith.subf %63, %67 : vector<16x32xf32>
    %69 = math.exp %68 : vector<16x32xf32>
    %cst_34 = arith.constant dense<0.000000e+00> : vector<16x32xf32>
    %70 = tpu.matmul %69, %2, %cst_34 {dimension_numbers = #tpu.dot_dimension_numbers<[1], [0], [0], [1], [0, 0, 1, 1], [], []>} : vector<16x32xf32>, vector<32x32xf32>, vector<16x32xf32> -> vector<16x32xf32>
    %71 = tpu.reciprocal %70 {approx = true} : vector<16x32xf32> -> vector<16x32xf32>
    %72 = arith.mulf %69, %71 : vector<16x32xf32>
    %cst_35 = arith.constant dense<0.000000e+00> : vector<32xf32>
    %73 = vector.multi_reduction <add>, %72, %cst_35 [0] : vector<16x32xf32> to vector<32xf32>
    %74 = vector.shape_cast %73 : vector<32xf32> to vector<1x32xf32>
    %75 = vector.broadcast %74 : vector<1x32xf32> to vector<8x32xf32>
    %76 = arith.mulf %17, %75 : vector<8x32xf32>
    %cst_36 = arith.constant dense<0.000000e+00> : vector<8x32xf32>
    %77 = tpu.matmul %76, %2, %cst_36 {dimension_numbers = #tpu.dot_dimension_numbers<[1], [0], [0], [1], [0, 0, 1, 1], [], []>} : vector<8x32xf32>, vector<32x32xf32>, vector<8x32xf32> -> vector<8x32xf32>
    %78 = tpu.reciprocal %77 {approx = true} : vector<8x32xf32> -> vector<8x32xf32>
    %79 = tpu.transpose %72, [1, 0] : vector<16x32xf32> -> vector<32x16xf32>
    %80 = arith.truncf %79 : vector<32x16xf32> to vector<32x16xbf16>
    %81 = arith.truncf %64 : vector<16x32xf32> to vector<16x32xbf16>
    %cst_37 = arith.constant dense<0.000000e+00> : vector<32x32xf32>
    %82 = tpu.matmul %80, %81, %cst_37 {dimension_numbers = #tpu.dot_dimension_numbers<[1], [0], [0], [1], [0, 0, 1, 1], [], []>} : vector<32x16xbf16>, vector<16x32xbf16>, vector<32x32xf32> -> vector<32x32xf32>
    %83 = arith.mulf %82, %2 : vector<32x32xf32>
    %84 = arith.truncf %17 : vector<8x32xf32> to vector<8x32xbf16>
    %85 = arith.truncf %83 : vector<32x32xf32> to vector<32x32xbf16>
    %cst_38 = arith.constant dense<0.000000e+00> : vector<8x32xf32>
    %86 = tpu.matmul %84, %85, %cst_38 {dimension_numbers = #tpu.dot_dimension_numbers<[1], [0], [0], [1], [0, 0, 1, 1], [], []>} : vector<8x32xbf16>, vector<32x32xbf16>, vector<8x32xf32> -> vector<8x32xf32>
    %87 = arith.mulf %78, %86 : vector<8x32xf32>
    %88 = arith.addf %53, %87 : vector<8x32xf32>
    %cst_39 = arith.constant 5.000000e-01 : f32
    %89 = vector.broadcast %cst_39 : f32 to vector<8x32xf32>
    %90 = arith.mulf %88, %89 : vector<8x32xf32>
    %91 = arith.addf %17, %90 : vector<8x32xf32>
    %c0_40 = arith.constant 0 : index
    %c0_41 = arith.constant 0 : index
    %c0_42 = arith.constant 0 : index
    %92 = vector.load %arg11[%c0_40, %c0_41, %c0_42] : memref<1x8x32xf32, #tpu.memory_space<vmem>>, vector<1x8x32xf32>
    %93 = vector.shape_cast %92 : vector<1x8x32xf32> to vector<8x32xf32>
    %94 = vector.shape_cast %91 : vector<8x32xf32> to vector<1x8x32xf32>
    tpu.vector_store %arg11[%c0_40, %c0_41, %c0_42], %94 {strides = array<i32>} : memref<1x8x32xf32, #tpu.memory_space<vmem>>, vector<1x8x32xf32>,
    return
  }
  func.func @transform_0(%arg0: i32) -> (i32, i32, i32) {
    %c0_i32 = arith.constant 0 : i32
    %c0_i32_0 = arith.constant 0 : i32
    %c0_i32_1 = arith.constant 0 : i32
    return %arg0, %c0_i32, %c0_i32_0 : i32, i32, i32
  }
  func.func @transform_1(%arg0: i32) -> (i32, i32) {
    %c0_i32 = arith.constant 0 : i32
    %c0_i32_0 = arith.constant 0 : i32
    %c0_i32_1 = arith.constant 0 : i32
    return %c0_i32, %c0_i32_0 : i32, i32
  }
  func.func @transform_2(%arg0: i32) -> (i32, i32) {
    %c0_i32 = arith.constant 0 : i32
    %c0_i32_0 = arith.constant 0 : i32
    %c0_i32_1 = arith.constant 0 : i32
    return %c0_i32, %c0_i32_0 : i32, i32
  }
  func.func @transform_3(%arg0: i32) -> (i32, i32) {
    %c0_i32 = arith.constant 0 : i32
    %c0_i32_0 = arith.constant 0 : i32
    %c0_i32_1 = arith.constant 0 : i32
    return %c0_i32, %c0_i32_0 : i32, i32
  }
  func.func @transform_4(%arg0: i32) -> (i32, i32, i32) {
    %c0_i32 = arith.constant 0 : i32
    %c0_i32_0 = arith.constant 0 : i32
    %c0_i32_1 = arith.constant 0 : i32
    return %arg0, %c0_i32, %c0_i32_0 : i32, i32, i32
  }
  func.func @transform_5(%arg0: i32) -> (i32, i32) {
    %c0_i32 = arith.constant 0 : i32
    %c0_i32_0 = arith.constant 0 : i32
    %c0_i32_1 = arith.constant 0 : i32
    return %c0_i32, %c0_i32_0 : i32, i32
  }
  func.func @transform_6(%arg0: i32) -> (i32, i32) {
    %c0_i32 = arith.constant 0 : i32
    %c0_i32_0 = arith.constant 0 : i32
    %c0_i32_1 = arith.constant 0 : i32
    return %c0_i32, %c0_i32_0 : i32, i32
  }
  func.func @transform_7(%arg0: i32) -> (i32, i32, i32) {
    %c0_i32 = arith.constant 0 : i32
    %c0_i32_0 = arith.constant 0 : i32
    %c0_i32_1 = arith.constant 0 : i32
    return %arg0, %c0_i32, %c0_i32_0 : i32, i32, i32
  }
  func.func @transform_8(%arg0: i32) -> (i32, i32) {
    %c0_i32 = arith.constant 0 : i32
    %c0_i32_0 = arith.constant 0 : i32
    %c0_i32_1 = arith.constant 0 : i32
    return %c0_i32, %c0_i32_0 : i32, i32
  }
  func.func @transform_9(%arg0: i32) -> (i32, i32) {
    %c0_i32 = arith.constant 0 : i32
    %c0_i32_0 = arith.constant 0 : i32
    %c0_i32_1 = arith.constant 0 : i32
    return %c0_i32, %c0_i32_0 : i32, i32
  }
  func.func @transform_10(%arg0: i32) -> (i32, i32, i32) {
    %c0_i32 = arith.constant 0 : i32
    %c0_i32_0 = arith.constant 0 : i32
    %c0_i32_1 = arith.constant 0 : i32
    return %arg0, %c0_i32, %c0_i32_0 : i32, i32, i32
  }
}

module attributes {stable_mosaic.version = 11 : i64} {
  func.func @_mlp_kernel(%arg0: i32, %arg1: memref<16x32xf32, #tpu.memory_space<vmem>>, %arg2: memref<32x32xf32, #tpu.memory_space<vmem>>, %arg3: memref<1x32xf32, #tpu.memory_space<vmem>>, %arg4: memref<32x32xf32, #tpu.memory_space<vmem>>, %arg5: memref<1x32xf32, #tpu.memory_space<vmem>>, %arg6: memref<32x8xf32, #tpu.memory_space<vmem>>, %arg7: memref<1x8xf32, #tpu.memory_space<vmem>>, %arg8: memref<16x8xf32, #tpu.memory_space<vmem>>) attributes {dimension_semantics = [#tpu.dimension_semantics<parallel>], iteration_bounds = array<i64: 1>, scalar_prefetch = 0 : i64, scratch_operands = 0 : i64, tpu.core_type = #tpu.core_type<tc>, window_params = [{transform_indices = @transform_0, window_bounds = array<i64: 16, 32>}, {pipeline_mode = #tpu.pipeline_mode<synchronous>, transform_indices = @transform_1, window_bounds = array<i64: 32, 32>}, {pipeline_mode = #tpu.pipeline_mode<synchronous>, transform_indices = @transform_2, window_bounds = array<i64: 1, 32>}, {pipeline_mode = #tpu.pipeline_mode<synchronous>, transform_indices = @transform_3, window_bounds = array<i64: 32, 32>}, {pipeline_mode = #tpu.pipeline_mode<synchronous>, transform_indices = @transform_4, window_bounds = array<i64: 1, 32>}, {pipeline_mode = #tpu.pipeline_mode<synchronous>, transform_indices = @transform_5, window_bounds = array<i64: 32, 8>}, {pipeline_mode = #tpu.pipeline_mode<synchronous>, transform_indices = @transform_6, window_bounds = array<i64: 1, 8>}, {transform_indices = @transform_7, window_bounds = array<i64: 16, 8>}]} {
    %c0 = arith.constant 0 : index
    %c0_0 = arith.constant 0 : index
    %0 = vector.load %arg1[%c0, %c0_0] : memref<16x32xf32, #tpu.memory_space<vmem>>, vector<16x32xf32>
    %c0_1 = arith.constant 0 : index
    %c0_2 = arith.constant 0 : index
    %1 = vector.load %arg2[%c0_1, %c0_2] : memref<32x32xf32, #tpu.memory_space<vmem>>, vector<32x32xf32>
    %c0_3 = arith.constant 0 : index
    %c0_4 = arith.constant 0 : index
    %2 = vector.load %arg3[%c0_3, %c0_4] : memref<1x32xf32, #tpu.memory_space<vmem>>, vector<1x32xf32>
    %3 = arith.truncf %0 : vector<16x32xf32> to vector<16x32xbf16>
    %4 = arith.truncf %1 : vector<32x32xf32> to vector<32x32xbf16>
    %cst = arith.constant dense<0.000000e+00> : vector<16x32xf32>
    %5 = tpu.matmul %3, %4, %cst {dimension_numbers = #tpu.dot_dimension_numbers<[1], [0], [0], [1], [0, 0, 1, 1], [], []>} : vector<16x32xbf16>, vector<32x32xbf16>, vector<16x32xf32> -> vector<16x32xf32>
    %6 = vector.broadcast %2 : vector<1x32xf32> to vector<16x32xf32>
    %7 = arith.addf %5, %6 : vector<16x32xf32>
    %cst_5 = arith.constant 5.000000e-01 : f32
    %8 = vector.broadcast %cst_5 : f32 to vector<16x32xf32>
    %9 = arith.mulf %8, %7 : vector<16x32xf32>
    %cst_6 = arith.constant 4.471500e-02 : f32
    %10 = vector.broadcast %cst_6 : f32 to vector<16x32xf32>
    %11 = arith.mulf %10, %7 : vector<16x32xf32>
    %12 = arith.mulf %11, %7 : vector<16x32xf32>
    %13 = arith.mulf %12, %7 : vector<16x32xf32>
    %14 = arith.addf %7, %13 : vector<16x32xf32>
    %cst_7 = arith.constant 0.797884583 : f32
    %15 = vector.broadcast %cst_7 : f32 to vector<16x32xf32>
    %16 = arith.mulf %15, %14 : vector<16x32xf32>
    %17 = math.tanh %16 : vector<16x32xf32>
    %cst_8 = arith.constant 1.000000e+00 : f32
    %18 = vector.broadcast %cst_8 : f32 to vector<16x32xf32>
    %19 = arith.addf %18, %17 : vector<16x32xf32>
    %20 = arith.mulf %9, %19 : vector<16x32xf32>
    %c0_9 = arith.constant 0 : index
    %c0_10 = arith.constant 0 : index
    %21 = vector.load %arg4[%c0_9, %c0_10] : memref<32x32xf32, #tpu.memory_space<vmem>>, vector<32x32xf32>
    %c0_11 = arith.constant 0 : index
    %c0_12 = arith.constant 0 : index
    %22 = vector.load %arg5[%c0_11, %c0_12] : memref<1x32xf32, #tpu.memory_space<vmem>>, vector<1x32xf32>
    %23 = arith.truncf %20 : vector<16x32xf32> to vector<16x32xbf16>
    %24 = arith.truncf %21 : vector<32x32xf32> to vector<32x32xbf16>
    %cst_13 = arith.constant dense<0.000000e+00> : vector<16x32xf32>
    %25 = tpu.matmul %23, %24, %cst_13 {dimension_numbers = #tpu.dot_dimension_numbers<[1], [0], [0], [1], [0, 0, 1, 1], [], []>} : vector<16x32xbf16>, vector<32x32xbf16>, vector<16x32xf32> -> vector<16x32xf32>
    %26 = vector.broadcast %22 : vector<1x32xf32> to vector<16x32xf32>
    %27 = arith.addf %25, %26 : vector<16x32xf32>
    %cst_14 = arith.constant 5.000000e-01 : f32
    %28 = vector.broadcast %cst_14 : f32 to vector<16x32xf32>
    %29 = arith.mulf %28, %27 : vector<16x32xf32>
    %cst_15 = arith.constant 4.471500e-02 : f32
    %30 = vector.broadcast %cst_15 : f32 to vector<16x32xf32>
    %31 = arith.mulf %30, %27 : vector<16x32xf32>
    %32 = arith.mulf %31, %27 : vector<16x32xf32>
    %33 = arith.mulf %32, %27 : vector<16x32xf32>
    %34 = arith.addf %27, %33 : vector<16x32xf32>
    %cst_16 = arith.constant 0.797884583 : f32
    %35 = vector.broadcast %cst_16 : f32 to vector<16x32xf32>
    %36 = arith.mulf %35, %34 : vector<16x32xf32>
    %37 = math.tanh %36 : vector<16x32xf32>
    %cst_17 = arith.constant 1.000000e+00 : f32
    %38 = vector.broadcast %cst_17 : f32 to vector<16x32xf32>
    %39 = arith.addf %38, %37 : vector<16x32xf32>
    %40 = arith.mulf %29, %39 : vector<16x32xf32>
    %c0_18 = arith.constant 0 : index
    %c0_19 = arith.constant 0 : index
    %41 = vector.load %arg6[%c0_18, %c0_19] : memref<32x8xf32, #tpu.memory_space<vmem>>, vector<32x8xf32>
    %c0_20 = arith.constant 0 : index
    %c0_21 = arith.constant 0 : index
    %42 = vector.load %arg7[%c0_20, %c0_21] : memref<1x8xf32, #tpu.memory_space<vmem>>, vector<1x8xf32>
    %43 = arith.truncf %40 : vector<16x32xf32> to vector<16x32xbf16>
    %44 = arith.truncf %41 : vector<32x8xf32> to vector<32x8xbf16>
    %cst_22 = arith.constant dense<0.000000e+00> : vector<16x8xf32>
    %45 = tpu.matmul %43, %44, %cst_22 {dimension_numbers = #tpu.dot_dimension_numbers<[1], [0], [0], [1], [0, 0, 1, 1], [], []>} : vector<16x32xbf16>, vector<32x8xbf16>, vector<16x8xf32> -> vector<16x8xf32>
    %46 = vector.broadcast %42 : vector<1x8xf32> to vector<16x8xf32>
    %47 = arith.addf %45, %46 : vector<16x8xf32>
    %c0_23 = arith.constant 0 : index
    %c0_24 = arith.constant 0 : index
    %48 = vector.load %arg8[%c0_23, %c0_24] : memref<16x8xf32, #tpu.memory_space<vmem>>, vector<16x8xf32>
    tpu.vector_store %arg8[%c0_23, %c0_24], %47 {strides = array<i32>} : memref<16x8xf32, #tpu.memory_space<vmem>>, vector<16x8xf32>,
    return
  }
  func.func @transform_0(%arg0: i32) -> (i32, i32) {
    %c0_i32 = arith.constant 0 : i32
    %c0_i32_0 = arith.constant 0 : i32
    return %arg0, %c0_i32 : i32, i32
  }
  func.func @transform_1(%arg0: i32) -> (i32, i32) {
    %c0_i32 = arith.constant 0 : i32
    %c0_i32_0 = arith.constant 0 : i32
    %c0_i32_1 = arith.constant 0 : i32
    return %c0_i32, %c0_i32_0 : i32, i32
  }
  func.func @transform_2(%arg0: i32) -> (i32, i32) {
    %c0_i32 = arith.constant 0 : i32
    %c0_i32_0 = arith.constant 0 : i32
    %c0_i32_1 = arith.constant 0 : i32
    return %c0_i32, %c0_i32_0 : i32, i32
  }
  func.func @transform_3(%arg0: i32) -> (i32, i32) {
    %c0_i32 = arith.constant 0 : i32
    %c0_i32_0 = arith.constant 0 : i32
    %c0_i32_1 = arith.constant 0 : i32
    return %c0_i32, %c0_i32_0 : i32, i32
  }
  func.func @transform_4(%arg0: i32) -> (i32, i32) {
    %c0_i32 = arith.constant 0 : i32
    %c0_i32_0 = arith.constant 0 : i32
    %c0_i32_1 = arith.constant 0 : i32
    return %c0_i32, %c0_i32_0 : i32, i32
  }
  func.func @transform_5(%arg0: i32) -> (i32, i32) {
    %c0_i32 = arith.constant 0 : i32
    %c0_i32_0 = arith.constant 0 : i32
    %c0_i32_1 = arith.constant 0 : i32
    return %c0_i32, %c0_i32_0 : i32, i32
  }
  func.func @transform_6(%arg0: i32) -> (i32, i32) {
    %c0_i32 = arith.constant 0 : i32
    %c0_i32_0 = arith.constant 0 : i32
    %c0_i32_1 = arith.constant 0 : i32
    return %c0_i32, %c0_i32_0 : i32, i32
  }
  func.func @transform_7(%arg0: i32) -> (i32, i32) {
    %c0_i32 = arith.constant 0 : i32
    %c0_i32_0 = arith.constant 0 : i32
    return %arg0, %c0_i32 : i32, i32
  }
}

</mosaic_0001>

<bundles_post_ra>
// kernel: gnot_forward.14
= control target key start
LH: loop header
LB: loop body
LE: loop exit
PB: predicated region body
PF: predicated region fallthrough
CT: control target
= control target key end

     0   :  { %12 = vsyncpa [#allocation3], 0  ;;  %s339_s0 = inlined_call_operand.vmem [shape: f32[16,8], index: 0, kind: input, shape index: {}]   ;;  %s340_s1 = inlined_call_operand.vmem [shape: f32[8,32], index: 1, kind: input, shape index: {}]   ;;  %s341_s2 = inlined_call_operand.vmem [shape: f32[1,32], index: 2, kind: input, shape index: {}]   ;;  %s342_s3 = inlined_call_operand.hbm [shape: f32[32,32], index: 3, kind: input, shape index: {}]   ;;  %s343_s4 = inlined_call_operand.vmem [shape: f32[1,32], index: 4, kind: input, shape index: {}]   ;;  %s344_s5 = inlined_call_operand.hbm [shape: f32[32,32], index: 5, kind: input, shape index: {}]   ;;  %s345_s6 = inlined_call_operand.vmem [shape: f32[1,32], index: 6, kind: input, shape index: {}]   ;;  %s346_s7 = inlined_call_operand.vmem [shape: f32[16,32], index: 7, kind: output, shape index: {}]  }
   0x1   :  { %s24_s26 = sshll.u32 %s342_s3, 4  ;;  %s25_s26 = int_to_ptr.hbm [resolvable:$true] %s24_s26 }
   0x2   :  { %13 = vsyncpa [#allocation5], 0  ;;  %s261_s27 = smov [#allocation2]   ;;  %s39_s8 = sshll.u32 %s344_s5, 4  ;;  %s40_s8 = int_to_ptr.hbm [resolvable:$true] %s39_s8 }
   0x3   :  { %s26_s28 = sshll.u32 %s261_s27, 4  ;;  %s262_s9 = smov 128   ;;  %s27_s28 = int_to_ptr.vmem [resolvable:$true] %s26_s28 }
   0x4   :  { %s263_s10 = smov 8   ;;  %s264_s11 = smov [#allocation4]  }
   0x5   :  { %32 = dma.hbm_to_vmem [thread:$0]  %s25_s26, 512, %s27_s28, [#allocation3], %s262_s9, %s262_s9, %s263_s10  }
   0x6   :  { %s41_s12 = sshll.u32 %s264_s11, 4  ;;  %s42_s12 = int_to_ptr.vmem [resolvable:$true] %s41_s12 }
   0x7   :  { %47 = dma.hbm_to_vmem [thread:$0]  %s40_s8, 512, %s42_s12, [#allocation5], %s262_s9, %s262_s9, %s263_s10  }
   0x8   :  { %257 = dma.done.wait [#allocation3], 512  }
   0x9   :  { %258 = vsyncadd [#allocation3], 4294966784 }
   0xa   :  { %259 = dma.done.wait [#allocation5], 512  }
   0xb   :  { %260 = vsyncadd [#allocation5], 4294966784  ;;  %v61_v0 = vld [vmem:[%s340_s1] sm:$0xff]  ;;  %vm72_vm0 = vcmask 1043456   ;;  %v60_v2 = vld [vmem:[%s339_s0 + $0x8] sm:$0xff]  ;;  %vm68_vm1 = vcmask 64512  }
   0xc   :  { %v59_v1 = vld [vmem:[%s339_s0] sm:$0xff]  ;;  %v64_v3 = vpack.c.bf16 %v61_v0, %v61_v0  ;;  %v110_v6 = vld [vmem:[#allocation2 + $0x10] sm:$0xff]  ;;  %v111_v7 = vld [vmem:[#allocation2 + $0x18] sm:$0xff]  ;;  %vm119_vm2 = vcmask 261120  }
   0xd   :  { %v63_v5 = vpack.c.bf16 %v60_v2, %v59_v1  ;;  %v108_v8 = vld [vmem:[#allocation2] sm:$0xff]  ;;  %v115_v9 = vpack.c.bf16 %v111_v7, %v110_v6  ;;  %v109_v10 = vld [vmem:[#allocation2 + $0x8] sm:$0xff]  ;;  %v157_v36 = vld [vmem:[#allocation4 + $0x10] sm:$0xff] }
   0xe   :  { %v74_v4 = vsel %vm72_vm0, %v64_v3, 0  ;;  %v114_v11 = vpack.c.bf16 %v109_v10, %v108_v8  ;;  %v198_v12 = vld [vmem:[%s341_s2] ss:$0 sm:$0xff]  ;;  %v158_v37 = vld [vmem:[#allocation4 + $0x18] sm:$0xff]  ;;  %v156_v40 = vld [vmem:[#allocation4 + $0x8] sm:$0xff] }
   0xf   :  { %83 = vmatpush.bf16.msra.mxu0 %v74_v4  ;;  %129 = vmatpush.bf16.msra.mxu1 %v115_v9  ;;  %v155_v38 = vld [vmem:[#allocation4] sm:$0xff]  ;;  %v162_v39 = vpack.c.bf16 %v158_v37, %v157_v36 }
  0x10   :  { %v161_v41 = vpack.c.bf16 %v156_v40, %v155_v38  ;;  %v199_v42 = vld [vmem:[%s343_s4] ss:$0 sm:$0xff] }
  0x11   :  { %175 = vmatpush.bf16.msra.mxu2 %v162_v39  ;;  %v200_v2 = vld [vmem:[%s345_s6] ss:$0 sm:$0xff] }
  0x12   :  { %191 = vmatmul.msk.bf16.vlgmr.msra.gmra.mxu0 %vm68_vm1, %v63_v5 }
  0x13   :  { %130 = vmatpush.bf16.msra.mxu1 %v114_v11 }
  0x15   :  { %176 = vmatpush.bf16.msra.mxu2 %v161_v41 }
  0x8f   :  { %v85_v13 = vpop.f32.mrf.mxu0 }
  0x90   :  { %v86_v14 = vadd.f32 %v198_v12, %v85_v13 }
  0x92   :  { %v92_v15 = vmul.f32 0.044715, %v86_v14  ;;  %v90_v30 = vmul.f32 0.5, %v86_v14 }
  0x94   :  { %v94_v16 = vmul.f32 %v92_v15, %v86_v14 }
  0x96   :  { %v96_v17 = vmul.f32 %v94_v16, %v86_v14 }
  0x97   :  { %v87_v18 = vpop.f32.mrf.mxu0 }
  0x98   :  { %v88_v19 = vadd.f32 %v198_v12, %v87_v18  ;;  %v98_v20 = vadd.f32 %v96_v17, %v86_v14 }
  0x9a   :  { %v93_v21 = vmul.f32 0.044715, %v88_v19  ;;  %v100_v23 = vmul.f32 0.7978846, %v98_v20  ;;  %v91_v31 = vmul.f32 0.5, %v88_v19 }
  0x9c   :  { %v95_v22 = vmul.f32 %v93_v21, %v88_v19  ;;  %201 = vtanh.f32 %v100_v23 }
  0x9e   :  { %v97_v24 = vmul.f32 %v95_v22, %v88_v19 }
  0xa0   :  { %v99_v25 = vadd.f32 %v97_v24, %v88_v19 }
  0xa2   :  { %v101_v26 = vmul.f32 0.7978846, %v99_v25  ;;  %v202_v27 = vpop.eup %201 }
  0xa3   :  { %v104_v28 = vadd.f32 1.0, %v202_v27 }
  0xa4   :  { %203 = vtanh.f32 %v101_v26 }
  0xa5   :  { %v106_v33 = vmul.f32 %v104_v28, %v90_v30 }
  0xaa   :  { %v204_v29 = vpop.eup %203 }
  0xab   :  { %v105_v32 = vadd.f32 1.0, %v204_v29 }
  0xad   :  { %v107_v34 = vmul.f32 %v105_v32, %v91_v31 }
  0xaf   :  { %v113_v35 = vpack.c.bf16 %v107_v34, %v106_v33 }
  0xb1   :  { %192 = vmatmul.msk.bf16.vlgmr.msra.gmra.mxu1 %vm119_vm2, %v113_v35 }
 0x12e   :  { %v132_v43 = vpop.f32.mrf.mxu1 }
 0x12f   :  { %v133_v44 = vadd.f32 %v199_v42, %v132_v43 }
 0x131   :  { %v139_v45 = vmul.f32 0.044715, %v133_v44  ;;  %v137_v60 = vmul.f32 0.5, %v133_v44 }
 0x133   :  { %v141_v46 = vmul.f32 %v139_v45, %v133_v44 }
 0x135   :  { %v143_v47 = vmul.f32 %v141_v46, %v133_v44 }
 0x136   :  { %v134_v48 = vpop.f32.mrf.mxu1 }
 0x137   :  { %v135_v49 = vadd.f32 %v199_v42, %v134_v48  ;;  %v145_v50 = vadd.f32 %v143_v47, %v133_v44 }
 0x139   :  { %v140_v51 = vmul.f32 0.044715, %v135_v49  ;;  %v147_v53 = vmul.f32 0.7978846, %v145_v50  ;;  %v138_v61 = vmul.f32 0.5, %v135_v49 }
 0x13b   :  { %v142_v52 = vmul.f32 %v140_v51, %v135_v49  ;;  %205 = vtanh.f32 %v147_v53 }
 0x13d   :  { %v144_v54 = vmul.f32 %v142_v52, %v135_v49 }
 0x13f   :  { %v146_v55 = vadd.f32 %v144_v54, %v135_v49 }
 0x141   :  { %v148_v56 = vmul.f32 0.7978846, %v146_v55  ;;  %v206_v57 = vpop.eup %205 }
 0x142   :  { %v151_v58 = vadd.f32 1.0, %v206_v57 }
 0x143   :  { %207 = vtanh.f32 %v148_v56 }
 0x144   :  { %v153_v63 = vmul.f32 %v151_v58, %v137_v60 }
 0x149   :  { %v208_v59 = vpop.eup %207 }
 0x14a   :  { %v152_v62 = vadd.f32 1.0, %v208_v59 }
 0x14c   :  { %v154_v0 = vmul.f32 %v152_v62, %v138_v61 }
 0x14e   :  { %v160_v1 = vpack.c.bf16 %v154_v0, %v153_v63 }
 0x150   :  { %193 = vmatmul.msk.bf16.vlgmr.msra.gmra.mxu2 %vm119_vm2, %v160_v1 }
 0x1d3   :  { %v178_v3 = vpop.f32.mrf.mxu2 }
 0x1d4   :  { %v179_v4 = vadd.f32 %v200_v2, %v178_v3 }
 0x1d6   :  { %183 = vst.msk [vmem:[%s346_s7] sm:$0xff] %vm119_vm2, %v179_v4 }
 0x1db   :  { %v180_v5 = vpop.f32.mrf.mxu2 }
 0x1dc   :  { %v181_v6 = vadd.f32 %v200_v2, %v180_v5 }
 0x1de   :  { %184 = vst.msk [vmem:[%s346_s7 + $0x8] sm:$0xff] %vm119_vm2, %v181_v6 }
 0x1df   :  { %189 = vsyncpa [#allocation3], 1 }
 0x1e0   :  { %190 = vsyncpa [#allocation5], 1 }

// kernel: gnot_forward.15
= control target key start
LH: loop header
LB: loop body
LE: loop exit
PB: predicated region body
PF: predicated region fallthrough
CT: control target
= control target key end

     0   :  { %12 = vsyncpa [#allocation3], 0  ;;  %s339_s0 = inlined_call_operand.vmem [shape: f32[16,4], index: 0, kind: input, shape index: {}]   ;;  %s340_s1 = inlined_call_operand.vmem [shape: f32[4,32], index: 1, kind: input, shape index: {}]   ;;  %s341_s2 = inlined_call_operand.vmem [shape: f32[1,32], index: 2, kind: input, shape index: {}]   ;;  %s342_s3 = inlined_call_operand.hbm [shape: f32[32,32], index: 3, kind: input, shape index: {}]   ;;  %s343_s4 = inlined_call_operand.vmem [shape: f32[1,32], index: 4, kind: input, shape index: {}]   ;;  %s344_s5 = inlined_call_operand.hbm [shape: f32[32,32], index: 5, kind: input, shape index: {}]   ;;  %s345_s6 = inlined_call_operand.vmem [shape: f32[1,32], index: 6, kind: input, shape index: {}]   ;;  %s346_s7 = inlined_call_operand.vmem [shape: f32[16,32], index: 7, kind: output, shape index: {}]  }
   0x1   :  { %s24_s26 = sshll.u32 %s342_s3, 4  ;;  %s25_s26 = int_to_ptr.hbm [resolvable:$true] %s24_s26 }
   0x2   :  { %13 = vsyncpa [#allocation5], 0  ;;  %s261_s27 = smov [#allocation2]   ;;  %s39_s8 = sshll.u32 %s344_s5, 4  ;;  %s40_s8 = int_to_ptr.hbm [resolvable:$true] %s39_s8 }
   0x3   :  { %s26_s28 = sshll.u32 %s261_s27, 4  ;;  %s262_s9 = smov 128   ;;  %s27_s28 = int_to_ptr.vmem [resolvable:$true] %s26_s28 }
   0x4   :  { %s263_s10 = smov 8   ;;  %s264_s11 = smov [#allocation4]  }
   0x5   :  { %32 = dma.hbm_to_vmem [thread:$0]  %s25_s26, 512, %s27_s28, [#allocation3], %s262_s9, %s262_s9, %s263_s10  }
   0x6   :  { %s41_s12 = sshll.u32 %s264_s11, 4  ;;  %s42_s12 = int_to_ptr.vmem [resolvable:$true] %s41_s12 }
   0x7   :  { %47 = dma.hbm_to_vmem [thread:$0]  %s40_s8, 512, %s42_s12, [#allocation5], %s262_s9, %s262_s9, %s263_s10  }
   0x8   :  { %257 = dma.done.wait [#allocation3], 512  }
   0x9   :  { %258 = vsyncadd [#allocation3], 4294966784 }
   0xa   :  { %259 = dma.done.wait [#allocation5], 512  }
   0xb   :  { %260 = vsyncadd [#allocation5], 4294966784  ;;  %v61_v0 = vld [vmem:[%s340_s1] sm:$0xf]  ;;  %vm72_vm0 = vcmask 1041408   ;;  %v60_v2 = vld [vmem:[%s339_s0 + $0x8] sm:$0xff] }
   0xc   :  { %v59_v1 = vld [vmem:[%s339_s0] sm:$0xff]  ;;  %v64_v3 = vpack.c.bf16 %v61_v0, %v61_v0  ;;  %vm68_vm1 = vcmask 31744   ;;  %v110_v6 = vld [vmem:[#allocation2 + $0x10] sm:$0xff]  ;;  %v111_v7 = vld [vmem:[#allocation2 + $0x18] sm:$0xff]  ;;  %vm119_vm2 = vcmask 261120  }
   0xd   :  { %v63_v5 = vpack.c.bf16 %v60_v2, %v59_v1  ;;  %v108_v8 = vld [vmem:[#allocation2] sm:$0xff]  ;;  %v115_v9 = vpack.c.bf16 %v111_v7, %v110_v6  ;;  %v109_v10 = vld [vmem:[#allocation2 + $0x8] sm:$0xff]  ;;  %v157_v36 = vld [vmem:[#allocation4 + $0x10] sm:$0xff] }
   0xe   :  { %v74_v4 = vsel %vm72_vm0, %v64_v3, 0  ;;  %v114_v11 = vpack.c.bf16 %v109_v10, %v108_v8  ;;  %v198_v12 = vld [vmem:[%s341_s2] ss:$0 sm:$0xff]  ;;  %v158_v37 = vld [vmem:[#allocation4 + $0x18] sm:$0xff]  ;;  %v156_v40 = vld [vmem:[#allocation4 + $0x8] sm:$0xff] }
   0xf   :  { %83 = vmatpush.bf16.msra.mxu0 %v74_v4  ;;  %129 = vmatpush.bf16.msra.mxu1 %v115_v9  ;;  %v155_v38 = vld [vmem:[#allocation4] sm:$0xff]  ;;  %v162_v39 = vpack.c.bf16 %v158_v37, %v157_v36 }
  0x10   :  { %v161_v41 = vpack.c.bf16 %v156_v40, %v155_v38  ;;  %v199_v42 = vld [vmem:[%s343_s4] ss:$0 sm:$0xff] }
  0x11   :  { %175 = vmatpush.bf16.msra.mxu2 %v162_v39  ;;  %v200_v2 = vld [vmem:[%s345_s6] ss:$0 sm:$0xff] }
  0x12   :  { %191 = vmatmul.msk.bf16.vlgmr.msra.gmra.mxu0 %vm68_vm1, %v63_v5 }
  0x13   :  { %130 = vmatpush.bf16.msra.mxu1 %v114_v11 }
  0x15   :  { %176 = vmatpush.bf16.msra.mxu2 %v161_v41 }
  0x8f   :  { %v85_v13 = vpop.f32.mrf.mxu0 }
  0x90   :  { %v86_v14 = vadd.f32 %v198_v12, %v85_v13 }
  0x92   :  { %v92_v15 = vmul.f32 0.044715, %v86_v14  ;;  %v90_v30 = vmul.f32 0.5, %v86_v14 }
  0x94   :  { %v94_v16 = vmul.f32 %v92_v15, %v86_v14 }
  0x96   :  { %v96_v17 = vmul.f32 %v94_v16, %v86_v14 }
  0x97   :  { %v87_v18 = vpop.f32.mrf.mxu0 }
  0x98   :  { %v88_v19 = vadd.f32 %v198_v12, %v87_v18  ;;  %v98_v20 = vadd.f32 %v96_v17, %v86_v14 }
  0x9a   :  { %v93_v21 = vmul.f32 0.044715, %v88_v19  ;;  %v100_v23 = vmul.f32 0.7978846, %v98_v20  ;;  %v91_v31 = vmul.f32 0.5, %v88_v19 }
  0x9c   :  { %v95_v22 = vmul.f32 %v93_v21, %v88_v19  ;;  %201 = vtanh.f32 %v100_v23 }
  0x9e   :  { %v97_v24 = vmul.f32 %v95_v22, %v88_v19 }
  0xa0   :  { %v99_v25 = vadd.f32 %v97_v24, %v88_v19 }
  0xa2   :  { %v101_v26 = vmul.f32 0.7978846, %v99_v25  ;;  %v202_v27 = vpop.eup %201 }
  0xa3   :  { %v104_v28 = vadd.f32 1.0, %v202_v27 }
  0xa4   :  { %203 = vtanh.f32 %v101_v26 }
  0xa5   :  { %v106_v33 = vmul.f32 %v104_v28, %v90_v30 }
  0xaa   :  { %v204_v29 = vpop.eup %203 }
  0xab   :  { %v105_v32 = vadd.f32 1.0, %v204_v29 }
  0xad   :  { %v107_v34 = vmul.f32 %v105_v32, %v91_v31 }
  0xaf   :  { %v113_v35 = vpack.c.bf16 %v107_v34, %v106_v33 }
  0xb1   :  { %192 = vmatmul.msk.bf16.vlgmr.msra.gmra.mxu1 %vm119_vm2, %v113_v35 }
 0x12e   :  { %v132_v43 = vpop.f32.mrf.mxu1 }
 0x12f   :  { %v133_v44 = vadd.f32 %v199_v42, %v132_v43 }
 0x131   :  { %v139_v45 = vmul.f32 0.044715, %v133_v44  ;;  %v137_v60 = vmul.f32 0.5, %v133_v44 }
 0x133   :  { %v141_v46 = vmul.f32 %v139_v45, %v133_v44 }
 0x135   :  { %v143_v47 = vmul.f32 %v141_v46, %v133_v44 }
 0x136   :  { %v134_v48 = vpop.f32.mrf.mxu1 }
 0x137   :  { %v135_v49 = vadd.f32 %v199_v42, %v134_v48  ;;  %v145_v50 = vadd.f32 %v143_v47, %v133_v44 }
 0x139   :  { %v140_v51 = vmul.f32 0.044715, %v135_v49  ;;  %v147_v53 = vmul.f32 0.7978846, %v145_v50  ;;  %v138_v61 = vmul.f32 0.5, %v135_v49 }
 0x13b   :  { %v142_v52 = vmul.f32 %v140_v51, %v135_v49  ;;  %205 = vtanh.f32 %v147_v53 }
 0x13d   :  { %v144_v54 = vmul.f32 %v142_v52, %v135_v49 }
 0x13f   :  { %v146_v55 = vadd.f32 %v144_v54, %v135_v49 }
 0x141   :  { %v148_v56 = vmul.f32 0.7978846, %v146_v55  ;;  %v206_v57 = vpop.eup %205 }
 0x142   :  { %v151_v58 = vadd.f32 1.0, %v206_v57 }
 0x143   :  { %207 = vtanh.f32 %v148_v56 }
 0x144   :  { %v153_v63 = vmul.f32 %v151_v58, %v137_v60 }
 0x149   :  { %v208_v59 = vpop.eup %207 }
 0x14a   :  { %v152_v62 = vadd.f32 1.0, %v208_v59 }
 0x14c   :  { %v154_v0 = vmul.f32 %v152_v62, %v138_v61 }
 0x14e   :  { %v160_v1 = vpack.c.bf16 %v154_v0, %v153_v63 }
 0x150   :  { %193 = vmatmul.msk.bf16.vlgmr.msra.gmra.mxu2 %vm119_vm2, %v160_v1 }
 0x1d3   :  { %v178_v3 = vpop.f32.mrf.mxu2 }
 0x1d4   :  { %v179_v4 = vadd.f32 %v200_v2, %v178_v3 }
 0x1d6   :  { %183 = vst.msk [vmem:[%s346_s7] sm:$0xff] %vm119_vm2, %v179_v4 }
 0x1db   :  { %v180_v5 = vpop.f32.mrf.mxu2 }
 0x1dc   :  { %v181_v6 = vadd.f32 %v200_v2, %v180_v5 }
 0x1de   :  { %184 = vst.msk [vmem:[%s346_s7 + $0x8] sm:$0xff] %vm119_vm2, %v181_v6 }
 0x1df   :  { %189 = vsyncpa [#allocation3], 1 }
 0x1e0   :  { %190 = vsyncpa [#allocation5], 1 }

// kernel: gnot_forward.13
= control target key start
LH: loop header
LB: loop body
LE: loop exit
PB: predicated region body
PF: predicated region fallthrough
CT: control target
= control target key end

     0   :  { %12 = vsyncpa [#allocation3], 0  ;;  %s244_s27 = smov [#allocation2]   ;;  %s341_s0 = inlined_call_operand.vmem [shape: f32[16,4], index: 0, kind: input, shape index: {}]   ;;  %s342_s1 = inlined_call_operand.vmem [shape: f32[4,32], index: 1, kind: input, shape index: {}]   ;;  %s343_s2 = inlined_call_operand.hbm [shape: f32[1,32], index: 2, kind: input, shape index: {}]   ;;  %s344_s3 = inlined_call_operand.vmem [shape: f32[32,32], index: 3, kind: input, shape index: {}]   ;;  %s345_s4 = inlined_call_operand.vmem [shape: f32[1,32], index: 4, kind: input, shape index: {}]   ;;  %s346_s5 = inlined_call_operand.vmem [shape: f32[32,2], index: 5, kind: input, shape index: {}]   ;;  %s347_s6 = inlined_call_operand.vmem [shape: f32[1,2], index: 6, kind: input, shape index: {}]   ;;  %s348_s7 = inlined_call_operand.vmem [shape: f32[16,2], index: 7, kind: output, shape index: {}]  }
   0x1   :  { %s22_s26 = sshll.u32 %s343_s2, 4  ;;  %s24_s28 = sshll.u32 %s244_s27, 4  ;;  %s23_s26 = int_to_ptr.hbm [resolvable:$true] %s22_s26  ;;  %s25_s28 = int_to_ptr.vmem [resolvable:$true] %s24_s28 }
   0x2   :  { %27 = dma.hbm_to_vmem [thread:$0]  %s23_s26, 16, %s25_s28, [#allocation3]  }
   0x3   :  { %242 = dma.done.wait [#allocation3], 16  }
   0x4   :  { %243 = vsyncadd [#allocation3], 4294967280  ;;  %v43_v0 = vld [vmem:[%s342_s1] sm:$0xf]  ;;  %vm54_vm0 = vcmask 1041408   ;;  %v42_v2 = vld [vmem:[%s341_s0 + $0x8] sm:$0xff] }
   0x5   :  { %v41_v1 = vld [vmem:[%s341_s0] sm:$0xff]  ;;  %v46_v3 = vpack.c.bf16 %v43_v0, %v43_v0  ;;  %vm50_vm1 = vcmask 31744   ;;  %v92_v6 = vld [vmem:[%s344_s3 + $0x10] sm:$0xff]  ;;  %v93_v7 = vld [vmem:[%s344_s3 + $0x18] sm:$0xff]  ;;  %vm101_vm2 = vcmask 261120   ;;  %vm165_vm3 = vcmask 15360  }
   0x6   :  { %v45_v5 = vpack.c.bf16 %v42_v2, %v41_v1  ;;  %v90_v8 = vld [vmem:[%s344_s3] sm:$0xff]  ;;  %v97_v9 = vpack.c.bf16 %v93_v7, %v92_v6  ;;  %v91_v10 = vld [vmem:[%s344_s3 + $0x8] sm:$0xff]  ;;  %v139_v36 = vld [vmem:[%s346_s5 + $0x10] sm:$0xff] }
   0x7   :  { %v56_v4 = vsel %vm54_vm0, %v46_v3, 0  ;;  %v96_v11 = vpack.c.bf16 %v91_v10, %v90_v8  ;;  %v199_v12 = vld [vmem:[#allocation2] ss:$0 sm:$0xff]  ;;  %v140_v37 = vld [vmem:[%s346_s5 + $0x18] sm:$0xff]  ;;  %v138_v40 = vld [vmem:[%s346_s5 + $0x8] sm:$0xff] }
   0x8   :  { %65 = vmatpush.bf16.msra.mxu0 %v56_v4  ;;  %111 = vmatpush.bf16.msra.mxu1 %v97_v9  ;;  %v137_v38 = vld [vmem:[%s346_s5] sm:$0xff]  ;;  %v144_v39 = vpack.c.bf16 %v140_v37, %v139_v36 }
   0x9   :  { %v143_v41 = vpack.c.bf16 %v138_v40, %v137_v38  ;;  %v200_v42 = vld [vmem:[%s345_s4] ss:$0 sm:$0xff] }
   0xa   :  { %157 = vmatpush.bf16.msra.mxu2 %v144_v39  ;;  %v201_v2 = vld [vmem:[%s347_s6] ss:$0 sm:$0xff] }
   0xb   :  { %195 = vmatmul.msk.bf16.vlgmr.msra.gmra.mxu0 %vm50_vm1, %v45_v5 }
   0xc   :  { %112 = vmatpush.bf16.msra.mxu1 %v96_v11 }
   0xe   :  { %158 = vmatpush.bf16.msra.mxu2 %v143_v41 }
  0x88   :  { %v67_v13 = vpop.f32.mrf.mxu0 }
  0x89   :  { %v68_v14 = vadd.f32 %v199_v12, %v67_v13 }
  0x8b   :  { %v74_v15 = vmul.f32 0.044715, %v68_v14  ;;  %v72_v30 = vmul.f32 0.5, %v68_v14 }
  0x8d   :  { %v76_v16 = vmul.f32 %v74_v15, %v68_v14 }
  0x8f   :  { %v78_v17 = vmul.f32 %v76_v16, %v68_v14 }
  0x90   :  { %v69_v18 = vpop.f32.mrf.mxu0 }
  0x91   :  { %v70_v19 = vadd.f32 %v199_v12, %v69_v18  ;;  %v80_v20 = vadd.f32 %v78_v17, %v68_v14 }
  0x93   :  { %v75_v21 = vmul.f32 0.044715, %v70_v19  ;;  %v82_v23 = vmul.f32 0.7978846, %v80_v20  ;;  %v73_v31 = vmul.f32 0.5, %v70_v19 }
  0x95   :  { %v77_v22 = vmul.f32 %v75_v21, %v70_v19  ;;  %202 = vtanh.f32 %v82_v23 }
  0x97   :  { %v79_v24 = vmul.f32 %v77_v22, %v70_v19 }
  0x99   :  { %v81_v25 = vadd.f32 %v79_v24, %v70_v19 }
  0x9b   :  { %v83_v26 = vmul.f32 0.7978846, %v81_v25  ;;  %v203_v27 = vpop.eup %202 }
  0x9c   :  { %v86_v28 = vadd.f32 1.0, %v203_v27 }
  0x9d   :  { %204 = vtanh.f32 %v83_v26 }
  0x9e   :  { %v88_v33 = vmul.f32 %v86_v28, %v72_v30 }
  0xa3   :  { %v205_v29 = vpop.eup %204 }
  0xa4   :  { %v87_v32 = vadd.f32 1.0, %v205_v29 }
  0xa6   :  { %v89_v34 = vmul.f32 %v87_v32, %v73_v31 }
  0xa8   :  { %v95_v35 = vpack.c.bf16 %v89_v34, %v88_v33 }
  0xaa   :  { %196 = vmatmul.msk.bf16.vlgmr.msra.gmra.mxu1 %vm101_vm2, %v95_v35 }
 0x127   :  { %v114_v43 = vpop.f32.mrf.mxu1 }
 0x128   :  { %v115_v44 = vadd.f32 %v200_v42, %v114_v43 }
 0x12a   :  { %v121_v45 = vmul.f32 0.044715, %v115_v44  ;;  %v119_v60 = vmul.f32 0.5, %v115_v44 }
 0x12c   :  { %v123_v46 = vmul.f32 %v121_v45, %v115_v44 }
 0x12e   :  { %v125_v47 = vmul.f32 %v123_v46, %v115_v44 }
 0x12f   :  { %v116_v48 = vpop.f32.mrf.mxu1 }
 0x130   :  { %v117_v49 = vadd.f32 %v200_v42, %v116_v48  ;;  %v127_v50 = vadd.f32 %v125_v47, %v115_v44 }
 0x132   :  { %v122_v51 = vmul.f32 0.044715, %v117_v49  ;;  %v129_v53 = vmul.f32 0.7978846, %v127_v50  ;;  %v120_v61 = vmul.f32 0.5, %v117_v49 }
 0x134   :  { %v124_v52 = vmul.f32 %v122_v51, %v117_v49  ;;  %206 = vtanh.f32 %v129_v53 }
 0x136   :  { %v126_v54 = vmul.f32 %v124_v52, %v117_v49 }
 0x138   :  { %v128_v55 = vadd.f32 %v126_v54, %v117_v49 }
 0x13a   :  { %v130_v56 = vmul.f32 0.7978846, %v128_v55  ;;  %v207_v57 = vpop.eup %206 }
 0x13b   :  { %v133_v58 = vadd.f32 1.0, %v207_v57 }
 0x13c   :  { %208 = vtanh.f32 %v130_v56 }
 0x13d   :  { %v135_v63 = vmul.f32 %v133_v58, %v119_v60 }
 0x142   :  { %v209_v59 = vpop.eup %208 }
 0x143   :  { %v134_v62 = vadd.f32 1.0, %v209_v59 }
 0x145   :  { %v136_v0 = vmul.f32 %v134_v62, %v120_v61 }
 0x147   :  { %v142_v1 = vpack.c.bf16 %v136_v0, %v135_v63 }
 0x149   :  { %197 = vmatmul.msk.bf16.vlgmr.msra.gmra.mxu2 %vm101_vm2, %v142_v1 }
 0x1cc   :  { %v160_v3 = vpop.f32.mrf.mxu2 }
 0x1cd   :  { %v161_v4 = vadd.f32 %v201_v2, %v160_v3 }
 0x1cf   :  { %v166_v5 = vsel %vm165_vm3, %v161_v4, -inf }
 0x1d0   :  { %167 = vmax.xlane.f32.xlu0 %v166_v5 }
 0x1d4   :  { %v162_v6 = vpop.f32.mrf.mxu2 }
 0x1d5   :  { %v163_v7 = vadd.f32 %v201_v2, %v162_v6 }
 0x1d7   :  { %v169_v8 = vsel %vm165_vm3, %v163_v7, -inf }
 0x1d8   :  { %170 = vmax.xlane.f32.xlu0 %v169_v8 }
 0x243   :  { %v168_v9 = vpop.xlane.xlu0 %167 }
 0x244   :  { %v172_v10 = vsub.f32 %v161_v4, %v168_v9 }
 0x246   :  { %v174_v11 = vmul.f32 1.442695, %v172_v10 }
 0x248   :  { %210 = vpow2.f32 %v174_v11 }
 0x24b   :  { %v171_v12 = vpop.xlane.xlu0 %170 }
 0x24c   :  { %v173_v13 = vsub.f32 %v163_v7, %v171_v12 }
 0x24e   :  { %v211_v14 = vpop.eup %210  ;;  %v176_v15 = vmul.f32 1.442695, %v173_v13 }
 0x24f   :  { %v178_v16 = vsel %vm165_vm3, %v211_v14, 0.0 }
 0x250   :  { %212 = vpow2.f32 %v176_v15  ;;  %179 = vadd.xlane.f32.xlu1 %v178_v16 }
 0x256   :  { %v213_v17 = vpop.eup %212 }
 0x257   :  { %v181_v18 = vsel %vm165_vm3, %v213_v17, 0.0 }
 0x258   :  { %182 = vadd.xlane.f32.xlu1 %v181_v18 }
 0x2c3   :  { %v180_v19 = vpop.xlane.xlu1 %179 }
 0x2c4   :  { %214 = vrcp.f32 %v180_v19 }
 0x2ca   :  { %v215_v20 = vpop.eup %214 }
 0x2cb   :  { %v186_v21 = vmul.f32 %v215_v20, %v211_v14  ;;  %v183_v22 = vpop.xlane.xlu1 %182 }
 0x2cc   :  { %216 = vrcp.f32 %v183_v22 }
 0x2cd   :  { %188 = vst.msk [vmem:[%s348_s7] sm:$0xff] %vm165_vm3, %v186_v21 }
 0x2d2   :  { %v217_v23 = vpop.eup %216 }
 0x2d3   :  { %v187_v24 = vmul.f32 %v217_v23, %v213_v17 }
 0x2d5   :  { %189 = vst.msk [vmem:[%s348_s7 + $0x8] sm:$0xff] %vm165_vm3, %v187_v24 }
 0x2d6   :  { %194 = vsyncpa [#allocation3], 1 }

// kernel: gnot_forward.16
= control target key start
LH: loop header
LB: loop body
LE: loop exit
PB: predicated region body
PF: predicated region fallthrough
CT: control target
= control target key end

     0   :  { %12 = vsyncpa [#allocation3], 0  ;;  %s484_s0 = inlined_call_operand.vmem [shape: f32[32,4], index: 0, kind: input, shape index: {}]   ;;  %s485_s1 = inlined_call_operand.vmem [shape: f32[4,32], index: 1, kind: input, shape index: {}]   ;;  %s486_s2 = inlined_call_operand.hbm [shape: f32[1,32], index: 2, kind: input, shape index: {}]   ;;  %s487_s3 = inlined_call_operand.vmem [shape: f32[32,32], index: 3, kind: input, shape index: {}]   ;;  %s488_s4 = inlined_call_operand.hbm [shape: f32[1,32], index: 4, kind: input, shape index: {}]   ;;  %s489_s5 = inlined_call_operand.vmem [shape: f32[32,32], index: 5, kind: input, shape index: {}]   ;;  %s490_s6 = inlined_call_operand.hbm [shape: f32[1,32], index: 6, kind: input, shape index: {}]   ;;  %s491_s7 = inlined_call_operand.vmem [shape: f32[32,32], index: 7, kind: output, shape index: {}]  }
   0x1   :  { %13 = vsyncpa [#allocation5], 0  ;;  %s36_s26 = sshll.u32 %s488_s4, 4  ;;  %s373_s27 = smov [#allocation4]   ;;  %s37_s26 = int_to_ptr.hbm [resolvable:$true] %s36_s26 }
   0x2   :  { %s38_s28 = sshll.u32 %s373_s27, 4  ;;  %s23_s8 = sshll.u32 %s486_s2, 4  ;;  %s39_s28 = int_to_ptr.vmem [resolvable:$true] %s38_s28  ;;  %s24_s8 = int_to_ptr.hbm [resolvable:$true] %s23_s8 }
   0x3   :  { %41 = dma.hbm_to_vmem [thread:$0]  %s37_s26, 16, %s39_s28, [#allocation5]  }
   0x4   :  { %s374_s9 = smov [#allocation2]   ;;  %s49_s13 = sshll.u32 %s490_s6, 4  ;;  %s50_s13 = int_to_ptr.hbm [resolvable:$true] %s49_s13 }
   0x5   :  { %s25_s10 = sshll.u32 %s374_s9, 4  ;;  %s375_s4 = smov [#allocation6]   ;;  %s26_s10 = int_to_ptr.vmem [resolvable:$true] %s25_s10 }
   0x6   :  { %28 = dma.hbm_to_vmem [thread:$0]  %s24_s8, 16, %s26_s10, [#allocation3]  }
   0x7   :  { %s51_s14 = sshll.u32 %s375_s4, 4  ;;  %s52_s14 = int_to_ptr.vmem [resolvable:$true] %s51_s14 }
   0x8   :  { %54 = dma.hbm_to_vmem [thread:$0]  %s50_s13, 16, %s52_s14, [#allocation5]  }
   0x9   :  { %369 = dma.done.wait [#allocation3], 16  }
   0xa   :  { %370 = vsyncadd [#allocation3], 4294967280 }
   0xb   :  { %371 = dma.done.wait [#allocation5], 32  }
   0xc   :  { %372 = vsyncadd [#allocation5], 4294967264  ;;  %v72_v0 = vld [vmem:[%s485_s1] sm:$0xf]  ;;  %vm87_vm0 = vcmask 1041408   ;;  %v69_v2 = vld [vmem:[%s484_s0 + $0x8] sm:$0xff] }
   0xd   :  { %v68_v1 = vld [vmem:[%s484_s0] sm:$0xff]  ;;  %v76_v3 = vpack.c.bf16 %v72_v0, %v72_v0  ;;  %vm80_vm1 = vcmask 31744   ;;  %v70_v6 = vld [vmem:[%s484_s0 + $0x10] sm:$0xff]  ;;  %v71_v7 = vld [vmem:[%s484_s0 + $0x18] sm:$0xff]  ;;  %vm158_vm2 = vcmask 261120  }
   0xe   :  { %v74_v5 = vpack.c.bf16 %v69_v2, %v68_v1  ;;  %v75_v8 = vpack.c.bf16 %v71_v7, %v70_v6  ;;  %v148_v9 = vld [vmem:[%s487_s3 + $0x10] sm:$0xff]  ;;  %v149_v10 = vld [vmem:[%s487_s3 + $0x18] sm:$0xff]  ;;  %v146_v12 = vld [vmem:[%s487_s3] sm:$0xff] }
   0xf   :  { %v89_v4 = vsel %vm87_vm0, %v76_v3, 0  ;;  %v154_v11 = vpack.c.bf16 %v149_v10, %v148_v9  ;;  %v147_v13 = vld [vmem:[%s487_s3 + $0x8] sm:$0xff]  ;;  %v278_v14 = vld [vmem:[#allocation2] ss:$0 sm:$0xff]  ;;  %v222_v62 = vld [vmem:[%s489_s5 + $0x10] sm:$0xff] }
  0x10   :  { %98 = vmatpush.bf16.msra.mxu0 %v89_v4  ;;  %v153_v15 = vpack.c.bf16 %v147_v13, %v146_v12  ;;  %v223_v63 = vld [vmem:[%s489_s5 + $0x18] sm:$0xff]  ;;  %v220_v1 = vld [vmem:[%s489_s5] sm:$0xff]  ;;  %v221_v2 = vld [vmem:[%s489_s5 + $0x8] sm:$0xff] }
  0x11   :  { %171 = vmatpush.bf16.msra.mxu1 %v154_v11  ;;  %273 = vmatpush.bf16.msra.mxu3 %v154_v11  ;;  %v228_v0 = vpack.c.bf16 %v223_v63, %v222_v62  ;;  %v279_v3 = vld [vmem:[#allocation4] ss:$0 sm:$0xff]  ;;  %v227_v4 = vpack.c.bf16 %v221_v2, %v220_v1 }
  0x13   :  { %267 = vmatmul.msk.bf16.vlgmr.msra.gmra.mxu0 %vm80_vm1, %v74_v5  ;;  %244 = vmatpush.bf16.msra.mxu2 %v228_v0 }
  0x15   :  { %172 = vmatpush.bf16.msra.mxu1 %v153_v15  ;;  %274 = vmatpush.bf16.msra.mxu3 %v153_v15 }
  0x17   :  { %245 = vmatpush.bf16.msra.mxu2 %v227_v4 }
  0x23   :  { %268 = vmatmul.msk.bf16.gmra.mxu0 %vm80_vm1, %v75_v8 }
  0x90   :  { %v100_v16 = vpop.f32.mrf.mxu0 }
  0x91   :  { %v101_v17 = vadd.f32 %v278_v14, %v100_v16 }
  0x93   :  { %v114_v18 = vmul.f32 0.044715, %v101_v17  ;;  %v110_v42 = vmul.f32 0.5, %v101_v17 }
  0x95   :  { %v118_v19 = vmul.f32 %v114_v18, %v101_v17 }
  0x97   :  { %v122_v20 = vmul.f32 %v118_v19, %v101_v17 }
  0x98   :  { %v102_v21 = vpop.f32.mrf.mxu0 }
  0x99   :  { %v103_v22 = vadd.f32 %v278_v14, %v102_v21  ;;  %v126_v23 = vadd.f32 %v122_v20, %v101_v17 }
  0x9b   :  { %v115_v24 = vmul.f32 0.044715, %v103_v22  ;;  %v130_v26 = vmul.f32 0.7978846, %v126_v23  ;;  %v111_v43 = vmul.f32 0.5, %v103_v22 }
  0x9d   :  { %v119_v25 = vmul.f32 %v115_v24, %v103_v22  ;;  %281 = vtanh.f32 %v130_v26 }
  0x9f   :  { %v123_v27 = vmul.f32 %v119_v25, %v103_v22 }
  0xa0   :  { %v105_v28 = vpop.f32.mrf.mxu0 }
  0xa1   :  { %v106_v29 = vadd.f32 %v278_v14, %v105_v28  ;;  %v127_v30 = vadd.f32 %v123_v27, %v103_v22 }
  0xa3   :  { %v116_v31 = vmul.f32 0.044715, %v106_v29  ;;  %v131_v32 = vmul.f32 0.7978846, %v127_v30  ;;  %v282_v34 = vpop.eup %281  ;;  %v112_v56 = vmul.f32 0.5, %v106_v29 }
  0xa4   :  { %v138_v39 = vadd.f32 1.0, %v282_v34 }
  0xa5   :  { %v120_v33 = vmul.f32 %v116_v31, %v106_v29  ;;  %283 = vtanh.f32 %v131_v32 }
  0xa6   :  { %v142_v47 = vmul.f32 %v138_v39, %v110_v42 }
  0xa7   :  { %v124_v35 = vmul.f32 %v120_v33, %v106_v29 }
  0xa8   :  { %v107_v36 = vpop.f32.mrf.mxu0 }
  0xa9   :  { %v108_v37 = vadd.f32 %v278_v14, %v107_v36  ;;  %v128_v38 = vadd.f32 %v124_v35, %v106_v29 }
  0xab   :  { %v284_v40 = vpop.eup %283  ;;  %v117_v41 = vmul.f32 0.044715, %v108_v37  ;;  %v132_v46 = vmul.f32 0.7978846, %v128_v38  ;;  %v113_v57 = vmul.f32 0.5, %v108_v37 }
  0xac   :  { %v139_v44 = vadd.f32 1.0, %v284_v40 }
  0xad   :  { %v121_v45 = vmul.f32 %v117_v41, %v108_v37  ;;  %285 = vtanh.f32 %v132_v46 }
  0xae   :  { %v143_v48 = vmul.f32 %v139_v44, %v111_v43 }
  0xaf   :  { %v125_v49 = vmul.f32 %v121_v45, %v108_v37 }
  0xb0   :  { %v151_v50 = vpack.c.bf16 %v143_v48, %v142_v47 }
  0xb1   :  { %v129_v51 = vadd.f32 %v125_v49, %v108_v37 }
  0xb2   :  { %269 = vmatmul.msk.bf16.vlgmr.msra.gmra.mxu1 %vm158_vm2, %v151_v50 }
  0xb3   :  { %v133_v52 = vmul.f32 0.7978846, %v129_v51  ;;  %v286_v53 = vpop.eup %285  ;;  %v280_v51 = vld [vmem:[#allocation6] ss:$0 sm:$0xff] }
  0xb4   :  { %v140_v54 = vadd.f32 1.0, %v286_v53 }
  0xb5   :  { %287 = vtanh.f32 %v133_v52 }
  0xb6   :  { %v144_v59 = vmul.f32 %v140_v54, %v112_v56 }
  0xbb   :  { %v288_v55 = vpop.eup %287 }
  0xbc   :  { %v141_v58 = vadd.f32 1.0, %v288_v55 }
  0xbe   :  { %v145_v60 = vmul.f32 %v141_v58, %v113_v57 }
  0xc0   :  { %v152_v61 = vpack.c.bf16 %v145_v60, %v144_v59 }
  0xc2   :  { %270 = vmatmul.msk.bf16.vlgmr.msra.gmra.mxu3 %vm158_vm2, %v152_v61 }
 0x12f   :  { %v174_v5 = vpop.f32.mrf.mxu1 }
 0x130   :  { %v175_v6 = vadd.f32 %v279_v3, %v174_v5 }
 0x132   :  { %v188_v7 = vmul.f32 0.044715, %v175_v6  ;;  %v184_v26 = vmul.f32 0.5, %v175_v6 }
 0x134   :  { %v192_v8 = vmul.f32 %v188_v7, %v175_v6 }
 0x136   :  { %v196_v9 = vmul.f32 %v192_v8, %v175_v6 }
 0x137   :  { %v176_v10 = vpop.f32.mrf.mxu1 }
 0x138   :  { %v177_v11 = vadd.f32 %v279_v3, %v176_v10  ;;  %v200_v12 = vadd.f32 %v196_v9, %v175_v6 }
 0x13a   :  { %v189_v13 = vmul.f32 0.044715, %v177_v11  ;;  %v204_v15 = vmul.f32 0.7978846, %v200_v12  ;;  %v185_v27 = vmul.f32 0.5, %v177_v11 }
 0x13c   :  { %v193_v14 = vmul.f32 %v189_v13, %v177_v11  ;;  %289 = vtanh.f32 %v204_v15 }
 0x13e   :  { %v197_v16 = vmul.f32 %v193_v14, %v177_v11 }
 0x140   :  { %v201_v17 = vadd.f32 %v197_v16, %v177_v11 }
 0x142   :  { %v205_v18 = vmul.f32 0.7978846, %v201_v17  ;;  %v290_v20 = vpop.eup %289 }
 0x143   :  { %v212_v23 = vadd.f32 1.0, %v290_v20 }
 0x144   :  { %291 = vtanh.f32 %v205_v18 }
 0x145   :  { %v179_v19 = vpop.f32.mrf.mxu3  ;;  %v216_v31 = vmul.f32 %v212_v23, %v184_v26 }
 0x146   :  { %v180_v21 = vadd.f32 %v279_v3, %v179_v19 }
 0x148   :  { %v190_v22 = vmul.f32 0.044715, %v180_v21  ;;  %v186_v45 = vmul.f32 0.5, %v180_v21 }
 0x14a   :  { %v292_v24 = vpop.eup %291  ;;  %v194_v25 = vmul.f32 %v190_v22, %v180_v21 }
 0x14b   :  { %v213_v28 = vadd.f32 1.0, %v292_v24 }
 0x14c   :  { %v198_v29 = vmul.f32 %v194_v25, %v180_v21 }
 0x14d   :  { %v181_v30 = vpop.f32.mrf.mxu3  ;;  %v217_v32 = vmul.f32 %v213_v28, %v185_v27 }
 0x14e   :  { %v182_v33 = vadd.f32 %v279_v3, %v181_v30  ;;  %v202_v34 = vadd.f32 %v198_v29, %v180_v21 }
 0x14f   :  { %v225_v35 = vpack.c.bf16 %v217_v32, %v216_v31 }
 0x150   :  { %v191_v36 = vmul.f32 0.044715, %v182_v33  ;;  %v206_v38 = vmul.f32 0.7978846, %v202_v34  ;;  %v187_v46 = vmul.f32 0.5, %v182_v33 }
 0x151   :  { %271 = vmatmul.msk.bf16.vlgmr.msra.gmra.mxu2 %vm158_vm2, %v225_v35 }
 0x152   :  { %v195_v37 = vmul.f32 %v191_v36, %v182_v33  ;;  %293 = vtanh.f32 %v206_v38 }
 0x154   :  { %v199_v39 = vmul.f32 %v195_v37, %v182_v33 }
 0x156   :  { %v203_v40 = vadd.f32 %v199_v39, %v182_v33 }
 0x158   :  { %v207_v41 = vmul.f32 0.7978846, %v203_v40  ;;  %v294_v42 = vpop.eup %293 }
 0x159   :  { %v214_v43 = vadd.f32 1.0, %v294_v42 }
 0x15a   :  { %295 = vtanh.f32 %v207_v41 }
 0x15b   :  { %v218_v48 = vmul.f32 %v214_v43, %v186_v45 }
 0x160   :  { %v296_v44 = vpop.eup %295 }
 0x161   :  { %v215_v47 = vadd.f32 1.0, %v296_v44 }
 0x163   :  { %v219_v49 = vmul.f32 %v215_v47, %v187_v46 }
 0x165   :  { %v226_v50 = vpack.c.bf16 %v219_v49, %v218_v48 }
 0x167   :  { %272 = vmatmul.msk.bf16.gmra.mxu2 %vm158_vm2, %v226_v50 }
 0x1d4   :  { %v247_v52 = vpop.f32.mrf.mxu2 }
 0x1d5   :  { %v248_v53 = vadd.f32 %v280_v51, %v247_v52 }
 0x1d7   :  { %257 = vst.msk [vmem:[%s491_s7] sm:$0xff] %vm158_vm2, %v248_v53 }
 0x1dc   :  { %v249_v54 = vpop.f32.mrf.mxu2 }
 0x1dd   :  { %v250_v55 = vadd.f32 %v280_v51, %v249_v54 }
 0x1df   :  { %258 = vst.msk [vmem:[%s491_s7 + $0x8] sm:$0xff] %vm158_vm2, %v250_v55 }
 0x1ea   :  { %v252_v56 = vpop.f32.mrf.mxu2 }
 0x1eb   :  { %v253_v57 = vadd.f32 %v280_v51, %v252_v56 }
 0x1ed   :  { %259 = vst.msk [vmem:[%s491_s7 + $0x10] sm:$0xff] %vm158_vm2, %v253_v57 }
 0x1f2   :  { %v254_v58 = vpop.f32.mrf.mxu2 }
 0x1f3   :  { %v255_v59 = vadd.f32 %v280_v51, %v254_v58 }
 0x1f5   :  { %260 = vst.msk [vmem:[%s491_s7 + $0x18] sm:$0xff] %vm158_vm2, %v255_v59 }
 0x1f6   :  { %265 = vsyncpa [#allocation3], 1 }
 0x1f7   :  { %266 = vsyncpa [#allocation5], 1 }

// kernel: gnot_forward.19
= control target key start
LH: loop header
LB: loop body
LE: loop exit
PB: predicated region body
PF: predicated region fallthrough
CT: control target
= control target key end

     0   :  { %s559_s15 = smov 0   ;;  %s643_s0 = inlined_call_operand.vmem [shape: f32[2,8,32], index: 0, kind: input, shape index: {}]   ;;  %s644_s1 = inlined_call_operand.vmem [shape: f32[32,96], index: 1, kind: input, shape index: {}]   ;;  %s645_s2 = inlined_call_operand.vmem [shape: f32[1,96], index: 2, kind: input, shape index: {}]   ;;  %s646_s3 = inlined_call_operand.vmem [shape: f32[32,32], index: 3, kind: input, shape index: {}]   ;;  %s647_s4 = inlined_call_operand.vmem [shape: f32[2,8,32], index: 4, kind: output, shape index: {}]  }
   0x1 LB: > { %s483_s16 = sadd.s32 4294967295, %s529_s15   ;;  %p487_p0 = scmp.ge.s32.totalorder %s529_s15, 1  ;;  %s529_s15 = sphi %s559_s15, %s14_s15  }
   0x2   : > { %p161_p1 = scmp.lt.s32.totalorder %s529_s15, 3 }
   0x4   : > { %p162_p2 = pnand %p487_p0, %p161_p1 }
   0x5   : > { %p185_p3 = scmp.lt.s32.totalorder (!%p162_p2), %s483_s16, 1  ;;  %s531_s11 = smov (!%p162_p2), 64  }
   0x6   : > { %165 = sbr.rel (%p162_p2) target bundleno = 1210 (0x4ba), region = 36  ;;  %s532_s14 = smov (!%p162_p2), 96  }
   0x7   : > { %s533_s17 = smov (!%p162_p2), 32  }
   0xb   : > { %v201_v0 = vld [vmem:[%s644_s1 + $0x10] sm:$0xff]  ;;  %v202_v1 = vld [vmem:[%s644_s1 + $0x18] sm:$0xff]  ;;  %v199_v2 = vld [vmem:[%s644_s1] sm:$0xff]  ;;  %s649_s16 = smov (!%p185_p3, %s483_s16), 1  ;;  %vm210_vm0 = vcmask 261120   ;;  %vm258_vm1 = vcmask 523520  }
   0xc   : > { %v205_v3 = vpack.c.bf16 %v202_v1, %v201_v0  ;;  %v200_v4 = vld [vmem:[%s644_s1 + $0x8] sm:$0xff]  ;;  %s488_s25 = sshll.u32 %s649_s16, 3  ;;  %v591_v8 = vld [vmem:[%s646_s3 + $0x18] sm:$0xff]  ;;  %v596_v9 = vld [vmem:[%s646_s3 + $0x10] sm:$0xff]  ;;  %vm381_vm2 = vcmask 1043456   ;;  %vm374_vm3 = vcmask 64512  }
   0xd   : > { %v204_v5 = vpack.c.bf16 %v200_v4, %v199_v2  ;;  %s188_s28 = scalar_lea.vmem %s643_s0, %s488_s25  ;;  %248 = vmatpush.msra.mxu1 %v591_v8  ;;  %323 = vmatpush.msra.mxu3 %v591_v8  ;;  %v603_v10 = vld [vmem:[%s646_s3 + $0x8] sm:$0xff]  ;;  %v512_v11 = vld [vmem:[%s645_s2] ss:$0 sm:$0xff]  ;;  %s192_s20 = scalar_lea.vmem %s647_s4, %s488_s25 }
   0xe   : > { %220 = vmatpush.bf16.msra.mxu0 %v205_v3  ;;  %v194_v6 = vld [vmem:[%s188_s28] sm:$0xff]  ;;  %282 = vmatpush.msra.mxu2 %v591_v8 }
   0xf   : > { %v203_v7 = vpack.c.bf16 %v194_v6, %v194_v6  ;;  %249 = vmatpush.msra.mxu1 %v596_v9  ;;  %324 = vmatpush.msra.mxu3 %v596_v9  ;;  %v620_v18 = vld [vmem:[%s646_s3] sm:$0xff] }
  0x10   : > { %283 = vmatpush.msra.mxu2 %v596_v9 }
  0x11   : > { %250 = vmatpush.msra.mxu1 %v603_v10  ;;  %325 = vmatpush.msra.mxu3 %v603_v10 }
  0x12   : > { %221 = vmatpush.bf16.msra.mxu0 %v204_v5  ;;  %284 = vmatpush.msra.mxu2 %v603_v10 }
  0x13   : > { %251 = vmatpush.msra.mxu1 %v620_v18  ;;  %326 = vmatpush.msra.mxu3 %v620_v18 }
  0x14   : > { %285 = vmatpush.msra.mxu2 %v620_v18 }
  0x15   : > { %490 = vmatmul.msk.bf16.vlgmr.msra.gmra.mxu0 %vm210_vm0, %v203_v7 }
  0x92   : > { %v223_v12 = vpop.f32.mrf.mxu0 }
  0x93   : > { %v224_v13 = vadd.f32 %v512_v11, %v223_v12 }
  0x95   : > { %v259_v14 = vsel %vm258_vm1, %v224_v13, -inf  ;;  %v227_v15 = vsel %vm210_vm0, %v224_v13, -inf  ;;  %v370_v16 = vpack.c.bf16 %v224_v13, %v224_v13 }
  0x96   : > { %260 = vmax.xlane.f32.xlu0 %v259_v14  ;;  %228 = vmax.xlane.f32.xlu1 %v227_v15 }
  0x97   : > { %372 = vrot.lane.b32.xlu2 %v370_v16, %s531_s11 }
  0x9a   : > { %v225_v17 = vpop.f32.mrf.mxu0 }
  0xf1   : > { %v373_v19 = vpop.permute.xlu2 %372 }
  0xf2   : > { %v383_v20 = vsel %vm381_vm2, %v373_v19, 0 }
  0xf3   : > { %392 = vmatpush.bf16.msrb.mxu1 %v383_v20  ;;  %499 = vmatpush.bf16.msrb.mxu3 %v383_v20 }
 0x109   : > { %v261_v21 = vpop.xlane.xlu0 %260  ;;  %v229_v22 = vpop.xlane.xlu1 %228 }
 0x10a   : > { %v262_v23 = vsub.f32 %v224_v13, %v261_v21  ;;  %v230_v24 = vsub.f32 %v224_v13, %v229_v22 }
 0x10c   : > { %v263_v25 = vmul.f32 1.442695, %v262_v23  ;;  %v231_v26 = vmul.f32 1.442695, %v230_v24 }
 0x10e   : > { %513 = vpow2.f32 %v263_v25 }
 0x10f   : > { %515 = vpow2.f32 %v231_v26 }
 0x114   : > { %v514_v27 = vpop.eup %513 }
 0x115   : > { %v516_v28 = vpop.eup %515  ;;  %266 = vrot.lane.b32.xlu0 %v514_v27, %s532_s14 }
 0x116   : > { %491 = vmatmul.msk.f32.vlgmr.msra.gmra.mxu1 %vm210_vm0, %v516_v28 }
 0x187   : > { %v267_v29 = vpop.permute.xlu0 %266 }
 0x188   : > { %492 = vmatmul.msk.f32.vlgmr.msra.gmra.mxu2 %vm210_vm0, %v267_v29 }
 0x193   : > { %v253_v41 = vpop.f32.mrf.mxu1 }
 0x20b   : > { %v287_v30 = vpop.f32.mrf.mxu2 }
 0x20c   : > { %517 = vrcp.f32 %v287_v30 }
 0x20d   : > { %519 = vrcp.f32 %v253_v41 }
 0x212   : > { %v518_v31 = vpop.eup %517 }
 0x213   : > { %292 = vrot.lane.b32.xlu1 %v518_v31, %s533_s17  ;;  %v520_v43 = vpop.eup %519 }
 0x214   : > { %v257_v44 = vmul.f32 %v520_v43, %v516_v28 }
 0x216   : > { %v408_v0 = vpack.c.bf16 %v257_v44, %v257_v44 }
 0x285   : > { %v293_v32 = vpop.permute.xlu1 %292 }
 0x286   : > { %v295_v33 = vmul.f32 %v514_v27, %v293_v32 }
 0x288   : > { %v296_v34 = vsel %vm258_vm1, %v295_v33, 0.0  ;;  %333 = vrot.lane.b32.xlu2 %v295_v33, %s532_s14 }
 0x289   : > { %v297_v35 = vrot.slane %v296_v34, 4 }
 0x28b   : > { %v298_v36 = vadd.f32 %v297_v35, %v296_v34 }
 0x28d   : > { %v299_v37 = vrot.slane %v298_v36, 2 }
 0x28f   : > { %v300_v38 = vadd.f32 %v299_v37, %v298_v36 }
 0x291   : > { %v301_v39 = vrot.slane %v300_v38, 1 }
 0x293   : > { %v302_v40 = vadd.f32 %v301_v39, %v300_v38 }
 0x295   : > { %304 = vrot.lane.b32.xlu2 %v302_v40, %s532_s14 }
 0x2e2   : > { %v334_v42 = vpop.permute.xlu2 %333 }
 0x2e3   : > { %336 = vxpose.xlu2.b32.start.end [1/1] (short) (narrow) %v334_v42, 32 }
 0x2ef   : > { %v305_v45 = vpop.permute.xlu2 %304 }
 0x2f0   : > { %v307_v46 = vmul.f32 %v305_v45, %v257_v44 }
 0x2f2   : > { %493 = vmatmul.msk.f32.vlgmr.msra.gmra.mxu3 %vm210_vm0, %v307_v46 }
 0x375   : > { %v328_v53 = vpop.f32.mrf.mxu3 }
 0x376   : > { %521 = vrcp.f32 %v328_v53 }
 0x37c   : > { %v352_v47 = vpop.trf.xlu2  ;;  %v522_v1 = vpop.eup %521 }
 0x384   : > { %v353_v48 = vpop.trf.xlu2 }
 0x385   : > { %v368_v49 = vpack.c.bf16 %v353_v48, %v352_v47 }
 0x387   : > { %494 = vmatmul.msk.bf16.vlgmr.msrb.gmra.mxu1 %vm374_vm3, %v368_v49 }
 0x38c   : > { %v354_v50 = vpop.trf.xlu2 }
 0x394   : > { %v355_v51 = vpop.trf.xlu2 }
 0x395   : > { %v369_v52 = vpack.c.bf16 %v355_v51, %v354_v50 }
 0x397   : > { %495 = vmatmul.msk.bf16.vlgmr.msrb.gmra.mxu3 %vm374_vm3, %v369_v52 }
 0x404   : > { %v394_v54 = vpop.f32.mrf.mxu1 }
 0x405   : > { %v404_v62 = vmul.f32 %v394_v54, %v620_v18 }
 0x40c   : > { %v396_v56 = vpop.f32.mrf.mxu1 }
 0x40d   : > { %v405_v60 = vmul.f32 %v396_v56, %v603_v10 }
 0x40f   : > { %v409_v63 = vpack.c.bf16 %v405_v60, %v404_v62 }
 0x41a   : > { %v399_v55 = vpop.f32.mrf.mxu3 }
 0x41b   : > { %v406_v58 = vmul.f32 %v399_v55, %v596_v9 }
 0x422   : > { %v401_v57 = vpop.f32.mrf.mxu3 }
 0x423   : > { %v407_v59 = vmul.f32 %v401_v57, %v591_v8 }
 0x425   : > { %v410_v61 = vpack.c.bf16 %v407_v59, %v406_v58 }
 0x427   : > { %420 = vmatpush.bf16.msrb.mxu2 %v410_v61 }
 0x42b   : > { %421 = vmatpush.bf16.msrb.mxu2 %v409_v63 }
 0x42e   : > { %496 = vmatmul.msk.bf16.vlgmr.msrb.gmra.mxu2 %vm210_vm0, %v408_v0 }
 0x4b1   : > { %v423_v2 = vpop.f32.mrf.mxu2 }
 0x4b2   : > { %v427_v3 = vmul.f32 %v522_v1, %v423_v2 }
 0x4b4   : > { %v428_v4 = vadd.f32 %v427_v3, %v257_v44 }
 0x4b6   : > { %429 = vst.msk [vmem:[%s192_s20] sm:$0xff] %vm210_vm0, %v428_v4 }
 0x4b9   : > { %v425_v5 = vpop.f32.mrf.mxu2 }
 0x4ba PF: > { %s14_s15 = sadd.s32 1, %s529_s15  }
 0x4bb   : > { %p11_p4 = scmp.ge.s32.totalorder %s14_s15, 4  }
 0x4bd   :  { %13 = sbr.rel (!%p11_p4) target bundleno = 1 (0x1), region = 66 }

// kernel: gnot_forward.18
= control target key start
LH: loop header
LB: loop body
LE: loop exit
PB: predicated region body
PF: predicated region fallthrough
CT: control target
= control target key end

     0   :  { %vm52_vm0 = vcmask 261120   ;;  %s533_s3 = inlined_call_operand.vmem [shape: f32[32,32], index: 3, kind: input, shape index: {}]   ;;  %s534_s0 = inlined_call_operand.vmem [shape: f32[16,32], index: 0, kind: input, shape index: {}]   ;;  %s535_s4 = inlined_call_operand.vmem [shape: f32[1,32], index: 4, kind: input, shape index: {}]   ;;  %s536_s6 = inlined_call_operand.vmem [shape: f32[1,64], index: 6, kind: input, shape index: {}]   ;;  %s537_s5 = inlined_call_operand.vmem [shape: f32[32,64], index: 5, kind: input, shape index: {}]   ;;  %s538_s7 = inlined_call_operand.vmem [shape: f32[2,32,32], index: 7, kind: input, shape index: {}]   ;;  %s539_s8 = inlined_call_operand.vmem [shape: f32[2,1,32], index: 8, kind: input, shape index: {}]   ;;  %s540_s9 = inlined_call_operand.vmem [shape: f32[2,32,32], index: 9, kind: input, shape index: {}]   ;;  %s541_s2 = inlined_call_operand.vmem [shape: f32[16,2], index: 2, kind: input, shape index: {}]   ;;  %s542_s10 = inlined_call_operand.vmem [shape: f32[2,1,32], index: 10, kind: input, shape index: {}]   ;;  %s543_s1 = inlined_call_operand.vmem [shape: f32[16,32], index: 1, kind: input, shape index: {}]   ;;  %s544_s11 = inlined_call_operand.vmem [shape: f32[16,32], index: 11, kind: output, shape index: {}]  }
   0x1   :  { %v43_v0 = vld [vmem:[%s533_s3 + $0x10] sm:$0xff]  ;;  %v44_v1 = vld [vmem:[%s533_s3 + $0x18] sm:$0xff]  ;;  %v41_v2 = vld [vmem:[%s533_s3] sm:$0xff] }
   0x2   :  { %v47_v3 = vpack.c.bf16 %v44_v1, %v43_v0  ;;  %v42_v4 = vld [vmem:[%s533_s3 + $0x8] sm:$0xff]  ;;  %v39_v6 = vld [vmem:[%s534_s0] sm:$0xff]  ;;  %v72_v9 = vld [vmem:[%s537_s5 + $0x10] sm:$0xff] }
   0x3   :  { %v46_v5 = vpack.c.bf16 %v42_v4, %v41_v2  ;;  %v40_v7 = vld [vmem:[%s534_s0 + $0x8] sm:$0xff]  ;;  %v73_v10 = vld [vmem:[%s537_s5 + $0x18] sm:$0xff]  ;;  %v70_v12 = vld [vmem:[%s537_s5] sm:$0xff] }
   0x4   :  { %62 = vmatpush.bf16.msra.mxu0 %v47_v3  ;;  %v45_v8 = vpack.c.bf16 %v40_v7, %v39_v6  ;;  %v76_v11 = vpack.c.bf16 %v73_v10, %v72_v9  ;;  %v71_v13 = vld [vmem:[%s537_s5 + $0x8] sm:$0xff]  ;;  %v330_v16 = vld [vmem:[%s535_s4] ss:$0 sm:$0xff]  ;;  %v122_v21 = vld [vmem:[%s538_s7 + $0x10] sm:$0xff]  ;;  %v349_v6 = vmov 0  }
   0x5   :  { %v75_v14 = vpack.c.bf16 %v71_v13, %v70_v12  ;;  %v123_v22 = vld [vmem:[%s538_s7 + $0x18] sm:$0xff]  ;;  %v120_v23 = vld [vmem:[%s538_s7] sm:$0xff]  ;;  %v121_v25 = vld [vmem:[%s538_s7 + $0x8] sm:$0xff]  ;;  %325 = vset.pattern.permute.xlu0 %v349_v6  ;;  %326 = vset.pattern.permute.xlu1 %v349_v6 }
   0x6   :  { %90 = vmatpush.bf16.msra.mxu1 %v76_v11  ;;  %v127_v24 = vpack.c.bf16 %v123_v22, %v122_v21  ;;  %v126_v26 = vpack.c.bf16 %v121_v25, %v120_v23  ;;  %v331_v27 = vld [vmem:[%s536_s6] ss:$0 sm:$0xff]  ;;  %v312_v30 = vld [vmem:[%s538_s7 + $0x30] sm:$0xff]  ;;  %v313_v31 = vld [vmem:[%s538_s7 + $0x38] sm:$0xff]  ;;  %s348_s6 = smov 96  }
   0x7   :  { %v310_v32 = vld [vmem:[%s538_s7 + $0x20] sm:$0xff]  ;;  %v216_v34 = vpack.c.bf16 %v313_v31, %v312_v30  ;;  %v311_v35 = vld [vmem:[%s538_s7 + $0x28] sm:$0xff]  ;;  %v168_v57 = vld [vmem:[%s540_s9 + $0x10] sm:$0xff] }
   0x8   :  { %63 = vmatpush.bf16.msra.mxu0 %v46_v5  ;;  %140 = vmatpush.bf16.msra.mxu2 %v127_v24  ;;  %v215_v37 = vpack.c.bf16 %v311_v35, %v310_v32  ;;  %v169_v58 = vld [vmem:[%s540_s9 + $0x18] sm:$0xff]  ;;  %v166_v59 = vld [vmem:[%s540_s9] sm:$0xff]  ;;  %v167_v61 = vld [vmem:[%s540_s9 + $0x8] sm:$0xff] }
   0x9   :  { %v173_v60 = vpack.c.bf16 %v169_v58, %v168_v57  ;;  %v172_v63 = vpack.c.bf16 %v167_v61, %v166_v59  ;;  %v332_v0 = vld [vmem:[%s539_s8] ss:$0 sm:$0xff]  ;;  %v117_v4 = vld [vmem:[%s541_s2 + $0x8] sm:$0xff] }
   0xa   :  { %91 = vmatpush.bf16.msra.mxu1 %v75_v14  ;;  %v116_v3 = vld [vmem:[%s541_s2] sm:$0xff]  ;;  %201 = vperm.xlu1 %326, %v117_v4   ;;  %v317_v31 = vld [vmem:[%s540_s9 + $0x28] sm:$0xff] }
   0xb   :  { %306 = vmatmul.msk.bf16.vlgmr.msra.gmra.mxu0 %vm52_vm0, %v45_v8  ;;  %186 = vmatpush.bf16.msra.mxu3 %v173_v60  ;;  %v334_v59 = vld [vmem:[%s542_s10] ss:$0 sm:$0xff] }
   0xc   :  { %141 = vmatpush.bf16.msra.mxu2 %v126_v26  ;;  %232 = vmatpush.bf16.msrb.mxu0 %v216_v34 }
   0xf   :  { %187 = vmatpush.bf16.msra.mxu3 %v172_v63  ;;  %v335_v63 = vld [vmem:[%s542_s10 + $0x1] ss:$0 sm:$0xff] }
  0x10   :  { %233 = vmatpush.bf16.msrb.mxu0 %v215_v37  ;;  %v350_v37 = vmov 1  }
  0x11   :  { %328 = vset.pattern.permute.xlu2 %v350_v37 }
  0x12   :  { %327 = vset.pattern.permute.xlu1 %v350_v37  ;;  %293 = vperm.xlu2 %328, %v117_v4  }
  0x13   :  { %289 = vperm.xlu1 %327, %v116_v3  }
  0x7c   :  { %v202_v60 = vpop.permute.xlu1 %201 }
  0x85   :  { %v290_v4 = vpop.permute.xlu1 %289 }
  0x88   :  { %v65_v15 = vpop.f32.mrf.mxu0 }
  0x89   :  { %v66_v18 = vadd.f32 %v330_v16, %v65_v15 }
  0x90   :  { %v67_v17 = vpop.f32.mrf.mxu0 }
  0x91   :  { %v68_v19 = vadd.f32 %v330_v16, %v67_v17 }
  0x93   :  { %v74_v20 = vpack.c.bf16 %v68_v19, %v66_v18 }
  0x95   :  { %307 = vmatmul.msk.bf16.vlgmr.msra.gmra.mxu1 %vm52_vm0, %v74_v20 }
 0x112   :  { %v93_v28 = vpop.f32.mrf.mxu1 }
 0x113   :  { %v94_v29 = vadd.f32 %v331_v27, %v93_v28  ;;  %v319_v28 = vld [vmem:[%s540_s9 + $0x38] sm:$0xff] }
 0x115   :  { %v100_v33 = vmul.f32 0.044715, %v94_v29  ;;  %v98_v51 = vmul.f32 0.5, %v94_v29 }
 0x117   :  { %v102_v36 = vmul.f32 %v100_v33, %v94_v29  ;;  %v333_v33 = vld [vmem:[%s539_s8 + $0x1] ss:$0 sm:$0xff] }
 0x119   :  { %v104_v38 = vmul.f32 %v102_v36, %v94_v29 }
 0x11a   :  { %v95_v39 = vpop.f32.mrf.mxu1 }
 0x11b   :  { %v96_v40 = vadd.f32 %v331_v27, %v95_v39  ;;  %v106_v41 = vadd.f32 %v104_v38, %v94_v29  ;;  %v318_v27 = vld [vmem:[%s540_s9 + $0x30] sm:$0xff]  ;;  %v316_v29 = vld [vmem:[%s540_s9 + $0x20] sm:$0xff] }
 0x11c   :  { %v267_v30 = vpack.c.bf16 %v319_v28, %v318_v27  ;;  %v266_v32 = vpack.c.bf16 %v317_v31, %v316_v29 }
 0x11d   :  { %v101_v42 = vmul.f32 0.044715, %v96_v40  ;;  %v108_v44 = vmul.f32 0.7978846, %v106_v41  ;;  %v99_v52 = vmul.f32 0.5, %v96_v40 }
 0x11e   :  { %280 = vmatpush.bf16.msrb.mxu1 %v267_v30 }
 0x11f   :  { %v103_v43 = vmul.f32 %v101_v42, %v96_v40  ;;  %336 = vtanh.f32 %v108_v44 }
 0x121   :  { %v105_v45 = vmul.f32 %v103_v43, %v96_v40 }
 0x122   :  { %281 = vmatpush.bf16.msrb.mxu1 %v266_v32 }
 0x123   :  { %v107_v46 = vadd.f32 %v105_v45, %v96_v40 }
 0x125   :  { %v109_v47 = vmul.f32 0.7978846, %v107_v46  ;;  %v337_v48 = vpop.eup %336 }
 0x126   :  { %v112_v49 = vadd.f32 1.0, %v337_v48 }
 0x127   :  { %338 = vtanh.f32 %v109_v47 }
 0x128   :  { %v114_v54 = vmul.f32 %v112_v49, %v98_v51 }
 0x12d   :  { %v339_v50 = vpop.eup %338 }
 0x12e   :  { %v113_v53 = vadd.f32 1.0, %v339_v50 }
 0x130   :  { %v115_v55 = vmul.f32 %v113_v53, %v99_v52 }
 0x132   :  { %v125_v56 = vpack.c.bf16 %v115_v55, %v114_v54 }
 0x134   :  { %221 = vrot.lane.b32.xlu0 %v125_v56, %s348_s6  ;;  %308 = vmatmul.msk.bf16.vlgmr.msra.gmra.mxu2 %vm52_vm0, %v125_v56 }
 0x13c   :  { %196 = vperm.xlu0 %325, %v116_v3  }
 0x144   :  { %329 = vset.pattern.permute.xlu0 %v350_v37 }
 0x1a6   :  { %v222_v62 = vpop.permute.xlu0 %221 }
 0x1a7   :  { %315 = vmatmul.msk.bf16.vlgmr.msrb.gmra.mxu0 %vm52_vm0, %v222_v62 }
 0x1ae   :  { %v197_v62 = vpop.permute.xlu0 %196 }
 0x1b7   :  { %v143_v1 = vpop.f32.mrf.mxu2 }
 0x1b8   :  { %v144_v2 = vadd.f32 %v332_v0, %v143_v1 }
 0x1ba   :  { %v150_v5 = vmul.f32 0.044715, %v144_v2  ;;  %v148_v21 = vmul.f32 0.5, %v144_v2 }
 0x1bc   :  { %v152_v7 = vmul.f32 %v150_v5, %v144_v2 }
 0x1be   :  { %v154_v8 = vmul.f32 %v152_v7, %v144_v2 }
 0x1bf   :  { %v145_v9 = vpop.f32.mrf.mxu2 }
 0x1c0   :  { %v146_v10 = vadd.f32 %v332_v0, %v145_v9  ;;  %v156_v11 = vadd.f32 %v154_v8, %v144_v2  ;;  %v118_v2 = vld [vmem:[%s543_s1] sm:$0xff] }
 0x1c2   :  { %v151_v12 = vmul.f32 0.044715, %v146_v10  ;;  %v158_v14 = vmul.f32 0.7978846, %v156_v11  ;;  %v149_v22 = vmul.f32 0.5, %v146_v10  ;;  %v119_v11 = vld [vmem:[%s543_s1 + $0x8] sm:$0xff] }
 0x1c4   :  { %v153_v13 = vmul.f32 %v151_v12, %v146_v10  ;;  %340 = vtanh.f32 %v158_v14 }
 0x1c6   :  { %v155_v15 = vmul.f32 %v153_v13, %v146_v10  ;;  %v294_v13 = vpop.permute.xlu2 %293 }
 0x1c8   :  { %v157_v16 = vadd.f32 %v155_v15, %v146_v10 }
 0x1ca   :  { %v159_v17 = vmul.f32 0.7978846, %v157_v16  ;;  %v341_v18 = vpop.eup %340 }
 0x1cb   :  { %v162_v19 = vadd.f32 1.0, %v341_v18 }
 0x1cc   :  { %342 = vtanh.f32 %v159_v17 }
 0x1cd   :  { %v164_v24 = vmul.f32 %v162_v19, %v148_v21 }
 0x1d2   :  { %v343_v20 = vpop.eup %342 }
 0x1d3   :  { %v163_v23 = vadd.f32 1.0, %v343_v20 }
 0x1d5   :  { %v165_v25 = vmul.f32 %v163_v23, %v149_v22 }
 0x1d7   :  { %v171_v26 = vpack.c.bf16 %v165_v25, %v164_v24 }
 0x1d9   :  { %309 = vmatmul.msk.bf16.vlgmr.msra.gmra.mxu3 %vm52_vm0, %v171_v26 }
 0x224   :  { %v235_v34 = vpop.f32.mrf.mxu0 }
 0x225   :  { %v236_v35 = vadd.f32 %v333_v33, %v235_v34 }
 0x227   :  { %v242_v36 = vmul.f32 0.044715, %v236_v35  ;;  %v240_v52 = vmul.f32 0.5, %v236_v35 }
 0x229   :  { %v244_v38 = vmul.f32 %v242_v36, %v236_v35 }
 0x22b   :  { %v246_v39 = vmul.f32 %v244_v38, %v236_v35 }
 0x22c   :  { %v237_v40 = vpop.f32.mrf.mxu0 }
 0x22d   :  { %v248_v41 = vadd.f32 %v246_v39, %v236_v35  ;;  %v238_v42 = vadd.f32 %v333_v33, %v237_v40 }
 0x22f   :  { %v243_v43 = vmul.f32 0.044715, %v238_v42  ;;  %v250_v44 = vmul.f32 0.7978846, %v248_v41  ;;  %v241_v53 = vmul.f32 0.5, %v238_v42 }
 0x231   :  { %v245_v45 = vmul.f32 %v243_v43, %v238_v42  ;;  %344 = vtanh.f32 %v250_v44 }
 0x233   :  { %v247_v46 = vmul.f32 %v245_v45, %v238_v42 }
 0x235   :  { %v249_v47 = vadd.f32 %v247_v46, %v238_v42 }
 0x237   :  { %v251_v48 = vmul.f32 0.7978846, %v249_v47  ;;  %v345_v49 = vpop.eup %344 }
 0x238   :  { %v254_v50 = vadd.f32 1.0, %v345_v49 }
 0x239   :  { %346 = vtanh.f32 %v251_v48 }
 0x23a   :  { %v256_v55 = vmul.f32 %v254_v50, %v240_v52 }
 0x23f   :  { %v347_v51 = vpop.eup %346 }
 0x240   :  { %v255_v54 = vadd.f32 1.0, %v347_v51 }
 0x242   :  { %v257_v56 = vmul.f32 %v255_v54, %v241_v53 }
 0x244   :  { %v265_v57 = vpack.c.bf16 %v257_v56, %v256_v55 }
 0x246   :  { %321 = vmatmul.msk.bf16.vlgmr.msrb.gmra.mxu1 %vm52_vm0, %v265_v57 }
 0x25c   :  { %v189_v58 = vpop.f32.mrf.mxu3 }
 0x25d   :  { %v190_v61 = vadd.f32 %v334_v59, %v189_v58 }
 0x25f   :  { %v204_v0 = vmul.f32 %v197_v62, %v190_v61 }
 0x261   :  { %v206_v6 = vadd.f32 %v204_v0, %v118_v2 }
 0x264   :  { %v191_v1 = vpop.f32.mrf.mxu3 }
 0x265   :  { %v192_v7 = vadd.f32 %v334_v59, %v191_v1 }
 0x267   :  { %v205_v10 = vmul.f32 %v202_v60, %v192_v7 }
 0x269   :  { %v207_v15 = vadd.f32 %v205_v10, %v119_v11 }
 0x2c3   :  { %v283_v3 = vpop.f32.mrf.mxu1 }
 0x2c4   :  { %v284_v5 = vadd.f32 %v335_v63, %v283_v3 }
 0x2c6   :  { %v296_v8 = vmul.f32 %v290_v4, %v284_v5 }
 0x2c8   :  { %v298_v9 = vadd.f32 %v296_v8, %v206_v6 }
 0x2ca   :  { %300 = vst.msk [vmem:[%s544_s11] sm:$0xff] %vm52_vm0, %v298_v9 }
 0x2cb   :  { %v285_v12 = vpop.f32.mrf.mxu1 }
 0x2cc   :  { %v286_v14 = vadd.f32 %v335_v63, %v285_v12 }
 0x2ce   :  { %v297_v16 = vmul.f32 %v294_v13, %v286_v14 }
 0x2d0   :  { %v299_v17 = vadd.f32 %v297_v16, %v207_v15 }
 0x2d2   :  { %301 = vst.msk [vmem:[%s544_s11 + $0x8] sm:$0xff] %vm52_vm0, %v299_v17 }

// kernel: gnot_forward.17
= control target key start
LH: loop header
LB: loop body
LE: loop exit
PB: predicated region body
PF: predicated region fallthrough
CT: control target
= control target key end

     0   :  { %15 = vsyncpa [#allocation3], 0  ;;  %s1348_s0 = inlined_call_operand.vmem [shape: f32[2,8,32], index: 0, kind: input, shape index: {}]   ;;  %s1349_s1 = inlined_call_operand.vmem [shape: f32[32,32], index: 1, kind: input, shape index: {}]   ;;  %s1350_s2 = inlined_call_operand.hbm [shape: f32[1,32], index: 2, kind: input, shape index: {}]   ;;  %s1351_s3 = inlined_call_operand.vmem [shape: f32[32,32], index: 3, kind: input, shape index: {}]   ;;  %s1352_s4 = inlined_call_operand.vmem [shape: f32[2,8,32], index: 4, kind: input, shape index: {}]   ;;  %s1353_s5 = inlined_call_operand.vmem [shape: f32[32,64], index: 5, kind: input, shape index: {}]   ;;  %s1354_s6 = inlined_call_operand.hbm [shape: f32[1,64], index: 6, kind: input, shape index: {}]   ;;  %s1355_s7 = inlined_call_operand.vmem [shape: f32[2,16,32], index: 7, kind: input, shape index: {}]   ;;  %s1356_s8 = inlined_call_operand.vmem [shape: f32[32,64], index: 8, kind: input, shape index: {}]   ;;  %s1357_s9 = inlined_call_operand.vmem [shape: f32[1,64], index: 9, kind: input, shape index: {}]   ;;  %s1358_s10 = inlined_call_operand.vmem [shape: f32[2,8,32], index: 10, kind: output, shape index: {}]  }
   0x1   :  { %16 = vsyncpa [#allocation5], 0  ;;  %s1188_s13 = smov 0  }
   0x2 LB: > { %s293_s16 = sshll.u32 %s1350_s2, 4  ;;  %s968_s17 = sadd.s32 4294967295, %s1128_s13   ;;  %s1128_s13 = sphi %s1188_s13, %s22_s13   ;;  %s294_s16 = int_to_ptr.hbm [resolvable:$true] %s293_s16 }
   0x3   : > { %p970_p0 = scmp.ge.s32.totalorder %s1128_s13, 1  ;;  %p278_p1 = scmp.lt.s32.totalorder %s1128_s13, 3 }
   0x4   : > { %p1015_p2 = scmp.eq.s32.totalorder %s968_s17, 0  ;;  %s1130_s19 = smov [#allocation2]  }
   0x5   : > { %p1199_p3 = pnand %p970_p0, %p278_p1  ;;  %s295_s20 = sshll.u32 %s1130_s19, 4  ;;  %s296_s20 = int_to_ptr.vmem [resolvable:$true] %s295_s20 }
   0x6   : > { %s311_s23 = sshll.u32 %s1354_s6, 4  ;;  %s1131_s24 = smov [#allocation4]   ;;  %s312_s23 = int_to_ptr.hbm [resolvable:$true] %s311_s23 }
   0x7   : > { %p1008_p4 = pneg %p1199_p3  ;;  %s313_s25 = sshll.u32 %s1131_s24, 4  ;;  %s314_s25 = int_to_ptr.vmem [resolvable:$true] %s313_s25 }
   0x8   : > { %354 = sbr.rel (%p1199_p3) target bundleno = 919 (0x397), region = 60 }
   0x9   : > { %p1009_p5 = pnand %p1015_p2, %p1008_p4 }
   0xb   : > { %1011 = dma.hbm_to_vmem [thread:$0]  (!%p1009_p5), %s294_s16, 16, %s296_s20, [#allocation3]  }
   0xc   : > { %1014 = dma.hbm_to_vmem [thread:$0]  (!%p1009_p5), %s312_s23, 16, %s314_s25, [#allocation5]  }
   0xd   : > { %1119 = dma.done.wait (%p1015_p2), [#allocation3], 16  }
   0xe   : > { %1121 = vsyncadd (%p1015_p2), [#allocation3], 4294967280 }
   0xf   : > { %1123 = dma.done.wait (%p1015_p2), [#allocation5], 16  }
  0x10   : > { %1125 = vsyncadd (%p1015_p2), [#allocation5], 4294967280  ;;  %p405_p6 = scmp.lt.s32.totalorder %s968_s17, 1  ;;  %v430_v0 = vld [vmem:[%s1349_s1 + $0x10] sm:$0xff]  ;;  %v431_v1 = vld [vmem:[%s1349_s1 + $0x18] sm:$0xff]  ;;  %vm439_vm0 = vcmask 261120  }
  0x11   : > { %v490_v2 = vld [vmem:[%s1353_s5 + $0x10] sm:$0xff]  ;;  %v434_v3 = vpack.c.bf16 %v431_v1, %v430_v0  ;;  %v491_v4 = vld [vmem:[%s1353_s5 + $0x18] sm:$0xff]  ;;  %v428_v9 = vld [vmem:[%s1349_s1] sm:$0xff]  ;;  %vm623_vm1 = vcmask 1043456   ;;  %vm616_vm2 = vcmask 64512   ;;  %vm819_vm3 = vcmask 130048  }
  0x12   : > { %s1361_s17 = smov (!%p405_p6, %s968_s17), 1  ;;  %v675_v5 = vld [vmem:[%s1356_s8 + $0x10] sm:$0xff]  ;;  %v676_v6 = vld [vmem:[%s1356_s8 + $0x18] sm:$0xff]  ;;  %v494_v7 = vpack.c.bf16 %v491_v4, %v490_v2  ;;  %v429_v10 = vld [vmem:[%s1349_s1 + $0x8] sm:$0xff] }
  0x13   : > { %s1215_s26 = sshll.u32 %s1361_s17, 3  ;;  %s999_s27 = sshll.u32 %s1361_s17, 4  ;;  %v679_v8 = vpack.c.bf16 %v676_v6, %v675_v5  ;;  %v488_v11 = vld [vmem:[%s1353_s5] sm:$0xff]  ;;  %449 = vmatpush.bf16.msra.mxu0 %v434_v3  ;;  %v433_v12 = vpack.c.bf16 %v429_v10, %v428_v9  ;;  %v489_v13 = vld [vmem:[%s1353_s5 + $0x8] sm:$0xff]  ;;  %v1277_v44 = vld [vmem:[%s1351_s3 + $0x18] sm:$0xff] }
  0x14   : > { %s408_s18 = scalar_lea.vmem %s1348_s0, %s1215_s26  ;;  %s412_s28 = scalar_lea.vmem %s1352_s4, %s1215_s26  ;;  %v673_v14 = vld [vmem:[%s1356_s8] sm:$0xff]  ;;  %v674_v15 = vld [vmem:[%s1356_s8 + $0x8] sm:$0xff]  ;;  %508 = vmatpush.bf16.msra.mxu2 %v494_v7  ;;  %v493_v16 = vpack.c.bf16 %v489_v13, %v488_v11  ;;  %536 = vmatpush.msra.mxu3 %v1277_v44  ;;  %v1284_v45 = vld [vmem:[%s1351_s3 + $0x10] sm:$0xff] }
  0x15   : > { %s417_s11 = scalar_lea.vmem %s1355_s7, %s999_s27  ;;  %693 = vmatpush.bf16.msra.mxu1 %v679_v8  ;;  %v678_v17 = vpack.c.bf16 %v674_v15, %v673_v14  ;;  %v423_v18 = vld [vmem:[%s408_s18] sm:$0xff]  ;;  %v1292_v46 = vld [vmem:[%s1351_s3 + $0x8] sm:$0xff]  ;;  %s421_s21 = scalar_lea.vmem %s1358_s10, %s1215_s26 }
  0x16   : > { %v487_v19 = vld [vmem:[%s412_s28] sm:$0xff]  ;;  %v672_v21 = vld [vmem:[%s417_s11 + $0x8] sm:$0xff]  ;;  %v432_v22 = vpack.c.bf16 %v423_v18, %v423_v18  ;;  %s1132_s28 = smov 96   ;;  %537 = vmatpush.msra.mxu3 %v1284_v45 }
  0x17   : > { %v671_v20 = vld [vmem:[%s417_s11] sm:$0xff]  ;;  %450 = vmatpush.bf16.msra.mxu0 %v433_v12  ;;  %v492_v23 = vpack.c.bf16 %v487_v19, %v487_v19 }
  0x18   : > { %v677_v24 = vpack.c.bf16 %v672_v21, %v671_v20  ;;  %509 = vmatpush.bf16.msra.mxu2 %v493_v16  ;;  %v1031_v25 = vld [vmem:[#allocation2] ss:$0 sm:$0xff]  ;;  %v1033_v30 = vld [vmem:[#allocation4] ss:$0 sm:$0xff]  ;;  %538 = vmatpush.msra.mxu3 %v1292_v46 }
  0x19   : > { %694 = vmatpush.bf16.msra.mxu1 %v678_v17  ;;  %v1032_v31 = vld [vmem:[%s1357_s9] ss:$0 sm:$0xff] }
  0x1a   : > { %982 = vmatmul.msk.bf16.vlgmr.msra.gmra.mxu0 %vm439_vm0, %v432_v22  ;;  %v1300_v47 = vld [vmem:[%s1351_s3] sm:$0xff] }
  0x1b   : > { %984 = vmatmul.msk.bf16.vlgmr.msra.gmra.mxu2 %vm439_vm0, %v492_v23  ;;  %477 = vmatpush.msrb.mxu0 %v1277_v44 }
  0x1c   : > { %990 = vmatmul.msk.bf16.vlgmr.msra.gmra.mxu1 %vm439_vm0, %v677_v24  ;;  %731 = vmatpush.msrb.mxu2 %v1277_v44 }
  0x1d   : > { %478 = vmatpush.msrb.mxu0 %v1284_v45  ;;  %539 = vmatpush.msra.mxu3 %v1300_v47 }
  0x1e   : > { %732 = vmatpush.msrb.mxu2 %v1284_v45 }
  0x1f   : > { %479 = vmatpush.msrb.mxu0 %v1292_v46  ;;  %569 = vmatpush.msrb.mxu3 %v1277_v44 }
  0x20   : > { %733 = vmatpush.msrb.mxu2 %v1292_v46 }
  0x21   : > { %480 = vmatpush.msrb.mxu0 %v1300_v47  ;;  %570 = vmatpush.msrb.mxu3 %v1284_v45 }
  0x22   : > { %734 = vmatpush.msrb.mxu2 %v1300_v47 }
  0x23   : > { %571 = vmatpush.msrb.mxu3 %v1292_v46 }
  0x25   : > { %572 = vmatpush.msrb.mxu3 %v1300_v47 }
  0x97   : > { %v452_v26 = vpop.f32.mrf.mxu0 }
  0x98   : > { %v453_v27 = vadd.f32 %v1031_v25, %v452_v26 }
  0x99   : > { %v696_v28 = vpop.f32.mrf.mxu1 }
  0x9a   : > { %v456_v29 = vsel %vm439_vm0, %v453_v27, -inf  ;;  %v697_v39 = vadd.f32 %v1032_v31, %v696_v28 }
  0x9b   : > { %457 = vmax.xlane.f32.xlu1 %v456_v29 }
  0x9c   : > { %v701_v42 = vsel %vm439_vm0, %v697_v39, -inf }
  0x9e   : > { %v511_v32 = vpop.f32.mrf.mxu2 }
  0x9f   : > { %v512_v33 = vadd.f32 %v1033_v30, %v511_v32  ;;  %v454_v34 = vpop.f32.mrf.mxu0 }
  0xa1   : > { %v698_v35 = vpop.f32.mrf.mxu1  ;;  %v515_v37 = vsel %vm439_vm0, %v512_v33, -inf  ;;  %v612_v38 = vpack.c.bf16 %v512_v33, %v512_v33 }
  0xa2   : > { %v699_v36 = vadd.f32 %v1032_v31, %v698_v35  ;;  %516 = vmax.xlane.f32.xlu0 %v515_v37 }
  0xa3   : > { %614 = vrot.lane.b32.xlu2 %v612_v38, %s1132_s28 }
  0xa4   : > { %v704_v40 = vsel %vm439_vm0, %v699_v36, -inf  ;;  %v814_v43 = vpack.c.bf16 %v699_v36, %v697_v39 }
  0xa5   : > { %705 = vmax.xlane.f32.xlu1 %v704_v40 }
  0xa6   : > { %v513_v41 = vpop.f32.mrf.mxu2 }
  0xaa   : > { %702 = vmax.xlane.f32.xlu0 %v701_v42 }
  0xbe   : > { %816 = vrot.lane.b32.xlu0 %v814_v43, %s1132_s28 }
  0xfd   : > { %v615_v56 = vpop.permute.xlu2 %614 }
  0xfe   : > { %v625_v61 = vsel %vm623_vm1, %v615_v56, 0 }
 0x10e   : > { %v458_v48 = vpop.xlane.xlu1 %457 }
 0x10f   : > { %v459_v49 = vsub.f32 %v453_v27, %v458_v48 }
 0x111   : > { %v460_v50 = vmul.f32 1.442695, %v459_v49 }
 0x113   : > { %1034 = vpow2.f32 %v460_v50 }
 0x115   : > { %v517_v51 = vpop.xlane.xlu0 %516 }
 0x116   : > { %v518_v52 = vsub.f32 %v512_v33, %v517_v51 }
 0x118   : > { %v519_v53 = vmul.f32 1.442695, %v518_v52  ;;  %v706_v58 = vpop.xlane.xlu1 %705 }
 0x119   : > { %v1035_v54 = vpop.eup %1034  ;;  %v708_v62 = vsub.f32 %v699_v36, %v706_v58 }
 0x11a   : > { %1036 = vpow2.f32 %v519_v53  ;;  %983 = vmatmul.msk.f32.vlgmr.msrb.gmra.mxu0 %vm439_vm0, %v1035_v54 }
 0x11b   : > { %v711_v63 = vmul.f32 1.442695, %v708_v62 }
 0x11d   : > { %v703_v55 = vpop.xlane.xlu0 %702 }
 0x11e   : > { %v707_v57 = vsub.f32 %v697_v39, %v703_v55 }
 0x120   : > { %v1037_v59 = vpop.eup %1036  ;;  %v709_v60 = vmul.f32 1.442695, %v707_v57 }
 0x121   : > { %985 = vmatmul.msk.f32.vlgmr.msra.gmra.mxu3 %vm439_vm0, %v1037_v59 }
 0x122   : > { %1038 = vpow2.f32 %v709_v60  ;;  %634 = vmatpush.bf16.msra.mxu3 %v625_v61 }
 0x123   : > { %1040 = vpow2.f32 %v711_v63 }
 0x128   : > { %v1039_v0 = vpop.eup %1038 }
 0x129   : > { %991 = vmatmul.msk.f32.vlgmr.msrb.gmra.mxu2 %vm439_vm0, %v1039_v0  ;;  %v1041_v1 = vpop.eup %1040 }
 0x130   : > { %v817_v2 = vpop.permute.xlu0 %816 }
 0x131   : > { %992 = vmatmul.msk.f32.gmra.mxu2 %vm439_vm0, %v1041_v1  ;;  %833 = vmatpush.bf16.msrb.mxu1 %v817_v2 }
 0x197   : > { %v482_v7 = vpop.f32.mrf.mxu0 }
 0x1a4   : > { %v541_v3 = vpop.f32.mrf.mxu3 }
 0x1a5   : > { %1042 = vrcp.f32 %v541_v3 }
 0x1ab   : > { %v1043_v4 = vpop.eup %1042 }
 0x1ac   : > { %v736_v5 = vpop.f32.mrf.mxu2  ;;  %v545_v6 = vmul.f32 %v1043_v4, %v1037_v59 }
 0x1ad   : > { %1044 = vrcp.f32 %v736_v5 }
 0x1ae   : > { %578 = vxpose.xlu2.b32.start.end [1/1] (short) (narrow) %v545_v6, 32  ;;  %v546_v8 = vsel %vm439_vm0, %v545_v6, 0.0  ;;  %1046 = vrcp.f32 %v482_v7 }
 0x1af   : > { %v547_v9 = vrot.slane %v546_v8, 4 }
 0x1b1   : > { %v548_v10 = vadd.f32 %v547_v9, %v546_v8 }
 0x1b3   : > { %v1045_v11 = vpop.eup %1044  ;;  %v549_v12 = vrot.slane %v548_v10, 2 }
 0x1b4   : > { %v739_v13 = vpop.f32.mrf.mxu2  ;;  %v744_v14 = vmul.f32 %v1045_v11, %v1039_v0  ;;  %v1047_v16 = vpop.eup %1046 }
 0x1b5   : > { %v550_v15 = vadd.f32 %v549_v12, %v548_v10  ;;  %1048 = vrcp.f32 %v739_v13  ;;  %v1315_v18 = vmul.f32 %v1047_v16, %v1035_v54 }
 0x1b6   : > { %780 = vxpose.xlu1.b32.start [1/2] (short) (narrow) %v744_v14, 32  ;;  %v746_v23 = vsel %vm439_vm0, %v744_v14, 0.0 }
 0x1b7   : > { %v551_v17 = vrot.slane %v550_v15, 1  ;;  %v650_v59 = vpack.c.bf16 %v1315_v18, %v1315_v18 }
 0x1b9   : > { %v552_v19 = vadd.f32 %v551_v17, %v550_v15 }
 0x1bb   : > { %v1049_v20 = vpop.eup %1048  ;;  %v553_v21 = vmul.f32 %v552_v19, %v1315_v18 }
 0x1bc   : > { %v745_v22 = vmul.f32 %v1049_v20, %v1041_v1 }
 0x1bd   : > { %986 = vmatmul.msk.f32.vlgmr.msrb.gmra.mxu3 %vm439_vm0, %v553_v21 }
 0x1be   : > { %781 = vxpose.xlu1.b32.end [2/2] (short) (narrow) %v745_v22, 32  ;;  %v747_v24 = vsel %vm439_vm0, %v745_v22, 0.0 }
 0x1bf   : > { %v748_v25 = vadd.f32 %v747_v24, %v746_v23 }
 0x1c1   : > { %v749_v51 = vrot.slane %v748_v25, 4 }
 0x1c3   : > { %v750_v56 = vadd.f32 %v749_v51, %v748_v25 }
 0x1c5   : > { %v751_v58 = vrot.slane %v750_v56, 2 }
 0x1c7   : > { %v752_v61 = vadd.f32 %v751_v58, %v750_v56 }
 0x1c9   : > { %v753_v2 = vrot.slane %v752_v61, 1 }
 0x1cb   : > { %v754_v5 = vadd.f32 %v753_v2, %v752_v61 }
 0x240   : > { %v574_v38 = vpop.f32.mrf.mxu3 }
 0x241   : > { %1050 = vrcp.f32 %v574_v38 }
 0x247   : > { %v594_v26 = vpop.trf.xlu2  ;;  %v1051_v8 = vpop.eup %1050 }
 0x24f   : > { %v595_v27 = vpop.trf.xlu2 }
 0x250   : > { %v610_v28 = vpack.c.bf16 %v595_v27, %v594_v26 }
 0x252   : > { %987 = vmatmul.msk.bf16.vlgmr.msra.gmra.mxu3 %vm616_vm2, %v610_v28 }
 0x257   : > { %v596_v29 = vpop.trf.xlu2 }
 0x25a   : > { %v796_v30 = vpop.trf.xlu1 }
 0x25f   : > { %v597_v31 = vpop.trf.xlu2 }
 0x260   : > { %v611_v32 = vpack.c.bf16 %v597_v31, %v596_v29 }
 0x262   : > { %988 = vmatmul.msk.bf16.gmra.mxu3 %vm616_vm2, %v611_v32  ;;  %v797_v33 = vpop.trf.xlu1 }
 0x263   : > { %v812_v34 = vpack.c.bf16 %v797_v33, %v796_v30 }
 0x265   : > { %994 = vmatmul.msk.bf16.vlgmr.msrb.gmra.mxu1 %vm819_vm3, %v812_v34 }
 0x26a   : > { %v798_v35 = vpop.trf.xlu1 }
 0x272   : > { %v799_v36 = vpop.trf.xlu1 }
 0x273   : > { %v813_v37 = vpack.c.bf16 %v799_v36, %v798_v35 }
 0x275   : > { %995 = vmatmul.msk.bf16.gmra.mxu1 %vm819_vm3, %v813_v37 }
 0x2d5   : > { %v636_v39 = vpop.f32.mrf.mxu3 }
 0x2d6   : > { %v646_v54 = vmul.f32 %v636_v39, %v1300_v47 }
 0x2dd   : > { %v638_v40 = vpop.f32.mrf.mxu3 }
 0x2de   : > { %v647_v52 = vmul.f32 %v638_v40, %v1292_v46 }
 0x2e0   : > { %v651_v57 = vpack.c.bf16 %v647_v52, %v646_v54 }
 0x2e2   : > { %v835_v41 = vpop.f32.mrf.mxu1 }
 0x2e3   : > { %v845_v3 = vmul.f32 %v835_v41, %v1300_v47 }
 0x2e5   : > { %v641_v42 = vpop.f32.mrf.mxu3 }
 0x2e6   : > { %v648_v49 = vmul.f32 %v641_v42, %v1284_v45 }
 0x2ea   : > { %v837_v43 = vpop.f32.mrf.mxu1 }
 0x2eb   : > { %v846_v0 = vmul.f32 %v837_v43, %v1292_v46 }
 0x2ed   : > { %v643_v48 = vpop.f32.mrf.mxu3  ;;  %v849_v4 = vpack.c.bf16 %v846_v0, %v845_v3 }
 0x2ee   : > { %v649_v50 = vmul.f32 %v643_v48, %v1277_v44 }
 0x2f0   : > { %v652_v53 = vpack.c.bf16 %v649_v50, %v648_v49 }
 0x2f2   : > { %662 = vmatpush.bf16.msra.mxu0 %v652_v53  ;;  %v840_v55 = vpop.f32.mrf.mxu1 }
 0x2f3   : > { %v847_v62 = vmul.f32 %v840_v55, %v1284_v45 }
 0x2f6   : > { %663 = vmatpush.bf16.msra.mxu0 %v651_v57 }
 0x2f9   : > { %989 = vmatmul.msk.bf16.vlgmr.msra.gmra.mxu0 %vm439_vm0, %v650_v59 }
 0x2fa   : > { %771 = vmatpush.msrb.mxu0 %v1277_v44  ;;  %v842_v60 = vpop.f32.mrf.mxu1 }
 0x2fb   : > { %v848_v63 = vmul.f32 %v842_v60, %v1277_v44 }
 0x2fc   : > { %772 = vmatpush.msrb.mxu0 %v1284_v45  ;;  %v755_v45 = vmul.f32 %v754_v5, %v1315_v18 }
 0x2fd   : > { %v850_v1 = vpack.c.bf16 %v848_v63, %v847_v62 }
 0x2fe   : > { %773 = vmatpush.msrb.mxu0 %v1292_v46 }
 0x2ff   : > { %857 = vmatpush.bf16.msra.mxu2 %v850_v1 }
 0x300   : > { %774 = vmatpush.msrb.mxu0 %v1300_v47 }
 0x303   : > { %858 = vmatpush.bf16.msra.mxu2 %v849_v4 }
 0x306   : > { %996 = vmatmul.msk.bf16.vlgmr.msra.gmra.mxu2 %vm439_vm0, %v650_v59 }
 0x309   : > { %993 = vmatmul.msk.f32.vlgmr.msrb.gmra.mxu0 %vm439_vm0, %v755_v45 }
 0x376   : > { %v665_v44 = vpop.f32.mrf.mxu0 }
 0x377   : > { %v669_v47 = vmul.f32 %v1051_v8, %v665_v44 }
 0x37e   : > { %v667_v6 = vpop.f32.mrf.mxu0 }
 0x386   : > { %v776_v46 = vpop.f32.mrf.mxu0 }
 0x387   : > { %1052 = vrcp.f32 %v776_v46 }
 0x389   : > { %v860_v7 = vpop.f32.mrf.mxu2 }
 0x38d   : > { %v1053_v9 = vpop.eup %1052 }
 0x38e   : > { %v864_v10 = vmul.f32 %v1053_v9, %v860_v7 }
 0x390   : > { %v865_v11 = vadd.f32 %v864_v10, %v669_v47 }
 0x391   : > { %v862_v12 = vpop.f32.mrf.mxu2 }
 0x392   : > { %v866_v13 = vmul.f32 0.5, %v865_v11 }
 0x394   : > { %v867_v14 = vadd.f32 %v866_v13, %v1315_v18 }
 0x396   : > { %868 = vst.msk [vmem:[%s421_s21] sm:$0xff] %vm439_vm0, %v867_v14 }
 0x397 PF: > { %s22_s13 = sadd.s32 1, %s1128_s13  }
 0x398   : > { %p19_p7 = scmp.ge.s32.totalorder %s22_s13, 4  }
 0x39a   :  { %21 = sbr.rel (!%p19_p7) target bundleno = 2 (0x2), region = 105 }
 0x39f   :  { %888 = vsyncpa [#allocation3], 1 }
 0x3a0   :  { %890 = vsyncpa [#allocation3 + $0x1], 1 }
 0x3a1   :  { %891 = vsyncpa [#allocation5], 1 }

// kernel: gnot_forward.21
= control target key start
LH: loop header
LB: loop body
LE: loop exit
PB: predicated region body
PF: predicated region fallthrough
CT: control target
= control target key end

     0   :  { %s1041_s13 = smov 0   ;;  %s1188_s0 = inlined_call_operand.vmem [shape: f32[2,8,32], index: 0, kind: input, shape index: {}]   ;;  %s1189_s1 = inlined_call_operand.vmem [shape: f32[32,32], index: 1, kind: input, shape index: {}]   ;;  %s1190_s2 = inlined_call_operand.vmem [shape: f32[1,32], index: 2, kind: input, shape index: {}]   ;;  %s1191_s3 = inlined_call_operand.vmem [shape: f32[32,32], index: 3, kind: input, shape index: {}]   ;;  %s1192_s4 = inlined_call_operand.vmem [shape: f32[2,8,32], index: 4, kind: input, shape index: {}]   ;;  %s1193_s5 = inlined_call_operand.vmem [shape: f32[32,64], index: 5, kind: input, shape index: {}]   ;;  %s1194_s6 = inlined_call_operand.vmem [shape: f32[1,64], index: 6, kind: input, shape index: {}]   ;;  %s1195_s7 = inlined_call_operand.vmem [shape: f32[2,16,32], index: 7, kind: input, shape index: {}]   ;;  %s1196_s8 = inlined_call_operand.vmem [shape: f32[32,64], index: 8, kind: input, shape index: {}]   ;;  %s1197_s9 = inlined_call_operand.vmem [shape: f32[1,64], index: 9, kind: input, shape index: {}]   ;;  %s1198_s10 = inlined_call_operand.vmem [shape: f32[2,8,32], index: 10, kind: output, shape index: {}]  }
   0x1 LB: > { %s916_s14 = sadd.s32 4294967295, %s983_s13   ;;  %p920_p0 = scmp.ge.s32.totalorder %s983_s13, 1  ;;  %s983_s13 = sphi %s1041_s13, %s20_s13  }
   0x2   : > { %p330_p1 = scmp.lt.s32.totalorder %s983_s13, 3 }
   0x4   : > { %p331_p2 = pnand %p920_p0, %p330_p1 }
   0x5   : > { %p375_p3 = scmp.lt.s32.totalorder (!%p331_p2), %s916_s14, 1  ;;  %s985_s19 = smov (!%p331_p2), 96  }
   0x6   : > { %334 = sbr.rel (%p331_p2) target bundleno = 914 (0x392), region = 60 }
   0xb   : > { %v400_v0 = vld [vmem:[%s1189_s1 + $0x10] sm:$0xff]  ;;  %v401_v1 = vld [vmem:[%s1189_s1 + $0x18] sm:$0xff]  ;;  %v398_v9 = vld [vmem:[%s1189_s1] sm:$0xff]  ;;  %s1200_s14 = smov (!%p375_p3, %s916_s14), 1  ;;  %vm409_vm0 = vcmask 261120   ;;  %vm593_vm1 = vcmask 1043456  }
   0xc   : > { %v460_v2 = vld [vmem:[%s1193_s5 + $0x10] sm:$0xff]  ;;  %v404_v3 = vpack.c.bf16 %v401_v1, %v400_v0  ;;  %v461_v4 = vld [vmem:[%s1193_s5 + $0x18] sm:$0xff]  ;;  %v399_v10 = vld [vmem:[%s1189_s1 + $0x8] sm:$0xff]  ;;  %s1085_s21 = sshll.u32 %s1200_s14, 3  ;;  %s943_s22 = sshll.u32 %s1200_s14, 4  ;;  %vm586_vm2 = vcmask 64512  }
   0xd   : > { %v645_v5 = vld [vmem:[%s1196_s8 + $0x10] sm:$0xff]  ;;  %v646_v6 = vld [vmem:[%s1196_s8 + $0x18] sm:$0xff]  ;;  %v464_v7 = vpack.c.bf16 %v461_v4, %v460_v2  ;;  %v458_v11 = vld [vmem:[%s1193_s5] sm:$0xff]  ;;  %v403_v12 = vpack.c.bf16 %v399_v10, %v398_v9  ;;  %s378_s25 = scalar_lea.vmem %s1188_s0, %s1085_s21  ;;  %s382_s28 = scalar_lea.vmem %s1192_s4, %s1085_s21  ;;  %vm789_vm3 = vcmask 130048  }
   0xe   : > { %v649_v8 = vpack.c.bf16 %v646_v6, %v645_v5  ;;  %419 = vmatpush.bf16.msra.mxu0 %v404_v3  ;;  %v459_v13 = vld [vmem:[%s1193_s5 + $0x8] sm:$0xff]  ;;  %v643_v14 = vld [vmem:[%s1196_s8] sm:$0xff]  ;;  %s387_s11 = scalar_lea.vmem %s1195_s7, %s943_s22  ;;  %v1117_v44 = vld [vmem:[%s1191_s3 + $0x18] sm:$0xff] }
   0xf   : > { %v644_v15 = vld [vmem:[%s1196_s8 + $0x8] sm:$0xff]  ;;  %478 = vmatpush.bf16.msra.mxu2 %v464_v7  ;;  %v463_v16 = vpack.c.bf16 %v459_v13, %v458_v11  ;;  %v393_v18 = vld [vmem:[%s378_s25] sm:$0xff]  ;;  %506 = vmatpush.msra.mxu3 %v1117_v44  ;;  %v1124_v45 = vld [vmem:[%s1191_s3 + $0x10] sm:$0xff] }
  0x10   : > { %663 = vmatpush.bf16.msra.mxu1 %v649_v8  ;;  %v648_v17 = vpack.c.bf16 %v644_v15, %v643_v14  ;;  %v402_v19 = vpack.c.bf16 %v393_v18, %v393_v18  ;;  %v457_v20 = vld [vmem:[%s382_s28] sm:$0xff]  ;;  %v642_v22 = vld [vmem:[%s387_s11 + $0x8] sm:$0xff] }
  0x11   : > { %v641_v21 = vld [vmem:[%s387_s11] sm:$0xff]  ;;  %v462_v23 = vpack.c.bf16 %v457_v20, %v457_v20  ;;  %507 = vmatpush.msra.mxu3 %v1124_v45  ;;  %v1132_v46 = vld [vmem:[%s1191_s3 + $0x8] sm:$0xff]  ;;  %s391_s11 = scalar_lea.vmem %s1198_s10, %s1085_s21 }
  0x12   : > { %420 = vmatpush.bf16.msra.mxu0 %v403_v12  ;;  %v647_v24 = vpack.c.bf16 %v642_v22, %v641_v21  ;;  %v954_v25 = vld [vmem:[%s1190_s2] ss:$0 sm:$0xff] }
  0x13   : > { %479 = vmatpush.bf16.msra.mxu2 %v463_v16  ;;  %v956_v30 = vld [vmem:[%s1194_s6] ss:$0 sm:$0xff]  ;;  %508 = vmatpush.msra.mxu3 %v1132_v46 }
  0x14   : > { %664 = vmatpush.bf16.msra.mxu1 %v648_v17  ;;  %v955_v31 = vld [vmem:[%s1197_s9] ss:$0 sm:$0xff] }
  0x15   : > { %926 = vmatmul.msk.bf16.vlgmr.msra.gmra.mxu0 %vm409_vm0, %v402_v19  ;;  %v1140_v47 = vld [vmem:[%s1191_s3] sm:$0xff] }
  0x16   : > { %928 = vmatmul.msk.bf16.vlgmr.msra.gmra.mxu2 %vm409_vm0, %v462_v23  ;;  %447 = vmatpush.msrb.mxu0 %v1117_v44 }
  0x17   : > { %934 = vmatmul.msk.bf16.vlgmr.msra.gmra.mxu1 %vm409_vm0, %v647_v24  ;;  %701 = vmatpush.msrb.mxu2 %v1117_v44 }
  0x18   : > { %448 = vmatpush.msrb.mxu0 %v1124_v45  ;;  %509 = vmatpush.msra.mxu3 %v1140_v47 }
  0x19   : > { %702 = vmatpush.msrb.mxu2 %v1124_v45 }
  0x1a   : > { %449 = vmatpush.msrb.mxu0 %v1132_v46  ;;  %539 = vmatpush.msrb.mxu3 %v1117_v44 }
  0x1b   : > { %703 = vmatpush.msrb.mxu2 %v1132_v46 }
  0x1c   : > { %450 = vmatpush.msrb.mxu0 %v1140_v47  ;;  %540 = vmatpush.msrb.mxu3 %v1124_v45 }
  0x1d   : > { %704 = vmatpush.msrb.mxu2 %v1140_v47 }
  0x1e   : > { %541 = vmatpush.msrb.mxu3 %v1132_v46 }
  0x20   : > { %542 = vmatpush.msrb.mxu3 %v1140_v47 }
  0x92   : > { %v422_v26 = vpop.f32.mrf.mxu0 }
  0x93   : > { %v423_v27 = vadd.f32 %v954_v25, %v422_v26 }
  0x94   : > { %v666_v28 = vpop.f32.mrf.mxu1 }
  0x95   : > { %v426_v29 = vsel %vm409_vm0, %v423_v27, -inf  ;;  %v667_v39 = vadd.f32 %v955_v31, %v666_v28 }
  0x96   : > { %427 = vmax.xlane.f32.xlu1 %v426_v29 }
  0x97   : > { %v671_v42 = vsel %vm409_vm0, %v667_v39, -inf }
  0x99   : > { %v481_v32 = vpop.f32.mrf.mxu2 }
  0x9a   : > { %v482_v33 = vadd.f32 %v956_v30, %v481_v32  ;;  %v424_v34 = vpop.f32.mrf.mxu0 }
  0x9c   : > { %v668_v35 = vpop.f32.mrf.mxu1  ;;  %v485_v37 = vsel %vm409_vm0, %v482_v33, -inf  ;;  %v582_v38 = vpack.c.bf16 %v482_v33, %v482_v33 }
  0x9d   : > { %v669_v36 = vadd.f32 %v955_v31, %v668_v35  ;;  %486 = vmax.xlane.f32.xlu0 %v485_v37 }
  0x9e   : > { %584 = vrot.lane.b32.xlu2 %v582_v38, %s985_s19 }
  0x9f   : > { %v674_v40 = vsel %vm409_vm0, %v669_v36, -inf  ;;  %v784_v43 = vpack.c.bf16 %v669_v36, %v667_v39 }
  0xa0   : > { %675 = vmax.xlane.f32.xlu1 %v674_v40 }
  0xa1   : > { %v483_v41 = vpop.f32.mrf.mxu2 }
  0xa5   : > { %672 = vmax.xlane.f32.xlu0 %v671_v42 }
  0xb9   : > { %786 = vrot.lane.b32.xlu0 %v784_v43, %s985_s19 }
  0xf8   : > { %v585_v56 = vpop.permute.xlu2 %584 }
  0xf9   : > { %v595_v61 = vsel %vm593_vm1, %v585_v56, 0 }
 0x109   : > { %v428_v48 = vpop.xlane.xlu1 %427 }
 0x10a   : > { %v429_v49 = vsub.f32 %v423_v27, %v428_v48 }
 0x10c   : > { %v430_v50 = vmul.f32 1.442695, %v429_v49 }
 0x10e   : > { %957 = vpow2.f32 %v430_v50 }
 0x110   : > { %v487_v51 = vpop.xlane.xlu0 %486 }
 0x111   : > { %v488_v52 = vsub.f32 %v482_v33, %v487_v51 }
 0x113   : > { %v489_v53 = vmul.f32 1.442695, %v488_v52  ;;  %v676_v58 = vpop.xlane.xlu1 %675 }
 0x114   : > { %v958_v54 = vpop.eup %957  ;;  %v678_v62 = vsub.f32 %v669_v36, %v676_v58 }
 0x115   : > { %959 = vpow2.f32 %v489_v53  ;;  %927 = vmatmul.msk.f32.vlgmr.msrb.gmra.mxu0 %vm409_vm0, %v958_v54 }
 0x116   : > { %v681_v63 = vmul.f32 1.442695, %v678_v62 }
 0x118   : > { %v673_v55 = vpop.xlane.xlu0 %672 }
 0x119   : > { %v677_v57 = vsub.f32 %v667_v39, %v673_v55 }
 0x11b   : > { %v960_v59 = vpop.eup %959  ;;  %v679_v60 = vmul.f32 1.442695, %v677_v57 }
 0x11c   : > { %929 = vmatmul.msk.f32.vlgmr.msra.gmra.mxu3 %vm409_vm0, %v960_v59 }
 0x11d   : > { %961 = vpow2.f32 %v679_v60  ;;  %604 = vmatpush.bf16.msra.mxu3 %v595_v61 }
 0x11e   : > { %963 = vpow2.f32 %v681_v63 }
 0x123   : > { %v962_v0 = vpop.eup %961 }
 0x124   : > { %935 = vmatmul.msk.f32.vlgmr.msrb.gmra.mxu2 %vm409_vm0, %v962_v0  ;;  %v964_v1 = vpop.eup %963 }
 0x12b   : > { %v787_v2 = vpop.permute.xlu0 %786 }
 0x12c   : > { %936 = vmatmul.msk.f32.gmra.mxu2 %vm409_vm0, %v964_v1  ;;  %803 = vmatpush.bf16.msrb.mxu1 %v787_v2 }
 0x192   : > { %v452_v7 = vpop.f32.mrf.mxu0 }
 0x19f   : > { %v511_v3 = vpop.f32.mrf.mxu3 }
 0x1a0   : > { %965 = vrcp.f32 %v511_v3 }
 0x1a6   : > { %v966_v4 = vpop.eup %965 }
 0x1a7   : > { %v706_v5 = vpop.f32.mrf.mxu2  ;;  %v515_v6 = vmul.f32 %v966_v4, %v960_v59 }
 0x1a8   : > { %967 = vrcp.f32 %v706_v5 }
 0x1a9   : > { %548 = vxpose.xlu2.b32.start.end [1/1] (short) (narrow) %v515_v6, 32  ;;  %v516_v8 = vsel %vm409_vm0, %v515_v6, 0.0  ;;  %969 = vrcp.f32 %v452_v7 }
 0x1aa   : > { %v517_v9 = vrot.slane %v516_v8, 4 }
 0x1ac   : > { %v518_v10 = vadd.f32 %v517_v9, %v516_v8 }
 0x1ae   : > { %v968_v11 = vpop.eup %967  ;;  %v519_v12 = vrot.slane %v518_v10, 2 }
 0x1af   : > { %v709_v13 = vpop.f32.mrf.mxu2  ;;  %v714_v14 = vmul.f32 %v968_v11, %v962_v0  ;;  %v970_v16 = vpop.eup %969 }
 0x1b0   : > { %v520_v15 = vadd.f32 %v519_v12, %v518_v10  ;;  %971 = vrcp.f32 %v709_v13  ;;  %v1155_v18 = vmul.f32 %v970_v16, %v958_v54 }
 0x1b1   : > { %750 = vxpose.xlu1.b32.start [1/2] (short) (narrow) %v714_v14, 32  ;;  %v716_v23 = vsel %vm409_vm0, %v714_v14, 0.0 }
 0x1b2   : > { %v521_v17 = vrot.slane %v520_v15, 1  ;;  %v620_v59 = vpack.c.bf16 %v1155_v18, %v1155_v18 }
 0x1b4   : > { %v522_v19 = vadd.f32 %v521_v17, %v520_v15 }
 0x1b6   : > { %v972_v20 = vpop.eup %971  ;;  %v523_v21 = vmul.f32 %v522_v19, %v1155_v18 }
 0x1b7   : > { %v715_v22 = vmul.f32 %v972_v20, %v964_v1 }
 0x1b8   : > { %930 = vmatmul.msk.f32.vlgmr.msrb.gmra.mxu3 %vm409_vm0, %v523_v21 }
 0x1b9   : > { %751 = vxpose.xlu1.b32.end [2/2] (short) (narrow) %v715_v22, 32  ;;  %v717_v24 = vsel %vm409_vm0, %v715_v22, 0.0 }
 0x1ba   : > { %v718_v25 = vadd.f32 %v717_v24, %v716_v23 }
 0x1bc   : > { %v719_v51 = vrot.slane %v718_v25, 4 }
 0x1be   : > { %v720_v56 = vadd.f32 %v719_v51, %v718_v25 }
 0x1c0   : > { %v721_v58 = vrot.slane %v720_v56, 2 }
 0x1c2   : > { %v722_v61 = vadd.f32 %v721_v58, %v720_v56 }
 0x1c4   : > { %v723_v2 = vrot.slane %v722_v61, 1 }
 0x1c6   : > { %v724_v5 = vadd.f32 %v723_v2, %v722_v61 }
 0x23b   : > { %v544_v38 = vpop.f32.mrf.mxu3 }
 0x23c   : > { %973 = vrcp.f32 %v544_v38 }
 0x242   : > { %v564_v26 = vpop.trf.xlu2  ;;  %v974_v8 = vpop.eup %973 }
 0x24a   : > { %v565_v27 = vpop.trf.xlu2 }
 0x24b   : > { %v580_v28 = vpack.c.bf16 %v565_v27, %v564_v26 }
 0x24d   : > { %931 = vmatmul.msk.bf16.vlgmr.msra.gmra.mxu3 %vm586_vm2, %v580_v28 }
 0x252   : > { %v566_v29 = vpop.trf.xlu2 }
 0x255   : > { %v766_v30 = vpop.trf.xlu1 }
 0x25a   : > { %v567_v31 = vpop.trf.xlu2 }
 0x25b   : > { %v581_v32 = vpack.c.bf16 %v567_v31, %v566_v29 }
 0x25d   : > { %932 = vmatmul.msk.bf16.gmra.mxu3 %vm586_vm2, %v581_v32  ;;  %v767_v33 = vpop.trf.xlu1 }
 0x25e   : > { %v782_v34 = vpack.c.bf16 %v767_v33, %v766_v30 }
 0x260   : > { %938 = vmatmul.msk.bf16.vlgmr.msrb.gmra.mxu1 %vm789_vm3, %v782_v34 }
 0x265   : > { %v768_v35 = vpop.trf.xlu1 }
 0x26d   : > { %v769_v36 = vpop.trf.xlu1 }
 0x26e   : > { %v783_v37 = vpack.c.bf16 %v769_v36, %v768_v35 }
 0x270   : > { %939 = vmatmul.msk.bf16.gmra.mxu1 %vm789_vm3, %v783_v37 }
 0x2d0   : > { %v606_v39 = vpop.f32.mrf.mxu3 }
 0x2d1   : > { %v616_v54 = vmul.f32 %v606_v39, %v1140_v47 }
 0x2d8   : > { %v608_v40 = vpop.f32.mrf.mxu3 }
 0x2d9   : > { %v617_v52 = vmul.f32 %v608_v40, %v1132_v46 }
 0x2db   : > { %v621_v57 = vpack.c.bf16 %v617_v52, %v616_v54 }
 0x2dd   : > { %v805_v41 = vpop.f32.mrf.mxu1 }
 0x2de   : > { %v815_v3 = vmul.f32 %v805_v41, %v1140_v47 }
 0x2e0   : > { %v611_v42 = vpop.f32.mrf.mxu3 }
 0x2e1   : > { %v618_v49 = vmul.f32 %v611_v42, %v1124_v45 }
 0x2e5   : > { %v807_v43 = vpop.f32.mrf.mxu1 }
 0x2e6   : > { %v816_v0 = vmul.f32 %v807_v43, %v1132_v46 }
 0x2e8   : > { %v613_v48 = vpop.f32.mrf.mxu3  ;;  %v819_v4 = vpack.c.bf16 %v816_v0, %v815_v3 }
 0x2e9   : > { %v619_v50 = vmul.f32 %v613_v48, %v1117_v44 }
 0x2eb   : > { %v622_v53 = vpack.c.bf16 %v619_v50, %v618_v49 }
 0x2ed   : > { %632 = vmatpush.bf16.msra.mxu0 %v622_v53  ;;  %v810_v55 = vpop.f32.mrf.mxu1 }
 0x2ee   : > { %v817_v62 = vmul.f32 %v810_v55, %v1124_v45 }
 0x2f1   : > { %633 = vmatpush.bf16.msra.mxu0 %v621_v57 }
 0x2f4   : > { %933 = vmatmul.msk.bf16.vlgmr.msra.gmra.mxu0 %vm409_vm0, %v620_v59 }
 0x2f5   : > { %741 = vmatpush.msrb.mxu0 %v1117_v44  ;;  %v812_v60 = vpop.f32.mrf.mxu1 }
 0x2f6   : > { %v818_v63 = vmul.f32 %v812_v60, %v1117_v44 }
 0x2f7   : > { %742 = vmatpush.msrb.mxu0 %v1124_v45  ;;  %v725_v45 = vmul.f32 %v724_v5, %v1155_v18 }
 0x2f8   : > { %v820_v1 = vpack.c.bf16 %v818_v63, %v817_v62 }
 0x2f9   : > { %743 = vmatpush.msrb.mxu0 %v1132_v46 }
 0x2fa   : > { %827 = vmatpush.bf16.msra.mxu2 %v820_v1 }
 0x2fb   : > { %744 = vmatpush.msrb.mxu0 %v1140_v47 }
 0x2fe   : > { %828 = vmatpush.bf16.msra.mxu2 %v819_v4 }
 0x301   : > { %940 = vmatmul.msk.bf16.vlgmr.msra.gmra.mxu2 %vm409_vm0, %v620_v59 }
 0x304   : > { %937 = vmatmul.msk.f32.vlgmr.msrb.gmra.mxu0 %vm409_vm0, %v725_v45 }
 0x371   : > { %v635_v44 = vpop.f32.mrf.mxu0 }
 0x372   : > { %v639_v47 = vmul.f32 %v974_v8, %v635_v44 }
 0x379   : > { %v637_v6 = vpop.f32.mrf.mxu0 }
 0x381   : > { %v746_v46 = vpop.f32.mrf.mxu0 }
 0x382   : > { %975 = vrcp.f32 %v746_v46 }
 0x384   : > { %v830_v7 = vpop.f32.mrf.mxu2 }
 0x388   : > { %v976_v9 = vpop.eup %975 }
 0x389   : > { %v834_v10 = vmul.f32 %v976_v9, %v830_v7 }
 0x38b   : > { %v835_v11 = vadd.f32 %v834_v10, %v639_v47 }
 0x38c   : > { %v832_v12 = vpop.f32.mrf.mxu2 }
 0x38d   : > { %v836_v13 = vmul.f32 0.5, %v835_v11 }
 0x38f   : > { %v837_v14 = vadd.f32 %v836_v13, %v1155_v18 }
 0x391   : > { %838 = vst.msk [vmem:[%s391_s11] sm:$0xff] %vm409_vm0, %v837_v14 }
 0x392 PF: > { %s20_s13 = sadd.s32 1, %s983_s13  }
 0x393   : > { %p17_p4 = scmp.ge.s32.totalorder %s20_s13, 4  }
 0x395   :  { %19 = sbr.rel (!%p17_p4) target bundleno = 1 (0x1), region = 96 }

// kernel: gnot_forward.25
= control target key start
LH: loop header
LB: loop body
LE: loop exit
PB: predicated region body
PF: predicated region fallthrough
CT: control target
= control target key end

     0   :  { %s315_s0 = inlined_call_operand.vmem [shape: f32[16,32], index: 0, kind: input, shape index: {}]   ;;  %s316_s1 = inlined_call_operand.vmem [shape: f32[32,32], index: 1, kind: input, shape index: {}]   ;;  %s317_s2 = inlined_call_operand.vmem [shape: f32[1,32], index: 2, kind: input, shape index: {}]   ;;  %s318_s3 = inlined_call_operand.vmem [shape: f32[32,32], index: 3, kind: input, shape index: {}]   ;;  %s319_s4 = inlined_call_operand.vmem [shape: f32[1,32], index: 4, kind: input, shape index: {}]   ;;  %s320_s5 = inlined_call_operand.vmem [shape: f32[32,8], index: 5, kind: input, shape index: {}]   ;;  %s321_s6 = inlined_call_operand.vmem [shape: f32[1,8], index: 6, kind: input, shape index: {}]   ;;  %s322_s7 = inlined_call_operand.hbm [shape: f32[16,8], index: 7, kind: output, shape index: {}]  }
   0x1   :  { %v32_v0 = vld [vmem:[%s316_s1 + $0x10] sm:$0xff]  ;;  %v33_v1 = vld [vmem:[%s316_s1 + $0x18] sm:$0xff]  ;;  %v30_v2 = vld [vmem:[%s316_s1] sm:$0xff] }
   0x2   :  { %v37_v3 = vpack.c.bf16 %v33_v1, %v32_v0  ;;  %v31_v4 = vld [vmem:[%s316_s1 + $0x8] sm:$0xff]  ;;  %v28_v5 = vld [vmem:[%s315_s0] sm:$0xff] }
   0x3   :  { %v36_v6 = vpack.c.bf16 %v31_v4, %v30_v2  ;;  %v29_v7 = vld [vmem:[%s315_s0 + $0x8] sm:$0xff] }
   0x4   :  { %51 = vmatpush.bf16.msra.mxu0 %v37_v3 }
   0x5   :  { %12 = vsyncpa [#allocation3], 0  ;;  %v35_v8 = vpack.c.bf16 %v29_v7, %v28_v5  ;;  %vm41_vm0 = vcmask 261120   ;;  %v79_v9 = vld [vmem:[%s318_s3 + $0x10] sm:$0xff]  ;;  %v80_v10 = vld [vmem:[%s318_s3 + $0x18] sm:$0xff]  ;;  %vm151_vm1 = vcmask 64512  }
   0x6   :  { %v77_v11 = vld [vmem:[%s318_s3] sm:$0xff]  ;;  %v84_v12 = vpack.c.bf16 %v80_v10, %v79_v9  ;;  %v78_v13 = vld [vmem:[%s318_s3 + $0x8] sm:$0xff]  ;;  %v125_v39 = vld [vmem:[%s320_s5 + $0x10] sm:$0xff]  ;;  %s215_s29 = smov [#allocation2]   ;;  %s160_s10 = sshll.u32 %s322_s7, 4  ;;  %s161_s10 = int_to_ptr.hbm [resolvable:$true] %s160_s10 }
   0x7   :  { %v83_v14 = vpack.c.bf16 %v78_v13, %v77_v11  ;;  %v178_v15 = vld [vmem:[%s317_s2] ss:$0 sm:$0xff]  ;;  %v126_v40 = vld [vmem:[%s320_s5 + $0x18] sm:$0xff]  ;;  %v124_v43 = vld [vmem:[%s320_s5 + $0x8] sm:$0xff]  ;;  %s158_s30 = sshll.u32 %s215_s29, 4  ;;  %s216_s11 = smov 128   ;;  %s159_s30 = int_to_ptr.vmem [resolvable:$true] %s158_s30 }
   0x8   :  { %52 = vmatpush.bf16.msra.mxu0 %v36_v6  ;;  %97 = vmatpush.bf16.msra.mxu1 %v84_v12  ;;  %v123_v41 = vld [vmem:[%s320_s5] sm:$0xff]  ;;  %v130_v42 = vpack.c.bf16 %v126_v40, %v125_v39  ;;  %s217_s12 = smov 8  }
   0x9   :  { %v129_v44 = vpack.c.bf16 %v124_v43, %v123_v41  ;;  %v179_v45 = vld [vmem:[%s319_s4] ss:$0 sm:$0xff] }
   0xa   :  { %143 = vmatpush.bf16.msra.mxu2 %v130_v42  ;;  %v180_v5 = vld [vmem:[%s321_s6] ss:$0 sm:$0xff] }
   0xb   :  { %172 = vmatmul.msk.bf16.vlgmr.msra.gmra.mxu0 %vm41_vm0, %v35_v8 }
   0xc   :  { %98 = vmatpush.bf16.msra.mxu1 %v83_v14 }
   0xe   :  { %144 = vmatpush.bf16.msra.mxu2 %v129_v44 }
  0x88   :  { %v54_v16 = vpop.f32.mrf.mxu0 }
  0x89   :  { %v55_v17 = vadd.f32 %v178_v15, %v54_v16 }
  0x8b   :  { %v61_v18 = vmul.f32 0.044715, %v55_v17  ;;  %v59_v33 = vmul.f32 0.5, %v55_v17 }
  0x8d   :  { %v63_v19 = vmul.f32 %v61_v18, %v55_v17 }
  0x8f   :  { %v65_v20 = vmul.f32 %v63_v19, %v55_v17 }
  0x90   :  { %v56_v21 = vpop.f32.mrf.mxu0 }
  0x91   :  { %v57_v22 = vadd.f32 %v178_v15, %v56_v21  ;;  %v67_v23 = vadd.f32 %v65_v20, %v55_v17 }
  0x93   :  { %v62_v24 = vmul.f32 0.044715, %v57_v22  ;;  %v69_v26 = vmul.f32 0.7978846, %v67_v23  ;;  %v60_v34 = vmul.f32 0.5, %v57_v22 }
  0x95   :  { %v64_v25 = vmul.f32 %v62_v24, %v57_v22  ;;  %181 = vtanh.f32 %v69_v26 }
  0x97   :  { %v66_v27 = vmul.f32 %v64_v25, %v57_v22 }
  0x99   :  { %v68_v28 = vadd.f32 %v66_v27, %v57_v22 }
  0x9b   :  { %v70_v29 = vmul.f32 0.7978846, %v68_v28  ;;  %v182_v30 = vpop.eup %181 }
  0x9c   :  { %v73_v31 = vadd.f32 1.0, %v182_v30 }
  0x9d   :  { %183 = vtanh.f32 %v70_v29 }
  0x9e   :  { %v75_v36 = vmul.f32 %v73_v31, %v59_v33 }
  0xa3   :  { %v184_v32 = vpop.eup %183 }
  0xa4   :  { %v74_v35 = vadd.f32 1.0, %v184_v32 }
  0xa6   :  { %v76_v37 = vmul.f32 %v74_v35, %v60_v34 }
  0xa8   :  { %v82_v38 = vpack.c.bf16 %v76_v37, %v75_v36 }
  0xaa   :  { %173 = vmatmul.msk.bf16.vlgmr.msra.gmra.mxu1 %vm41_vm0, %v82_v38 }
 0x127   :  { %v100_v46 = vpop.f32.mrf.mxu1 }
 0x128   :  { %v101_v47 = vadd.f32 %v179_v45, %v100_v46 }
 0x12a   :  { %v107_v48 = vmul.f32 0.044715, %v101_v47  ;;  %v105_v63 = vmul.f32 0.5, %v101_v47 }
 0x12c   :  { %v109_v49 = vmul.f32 %v107_v48, %v101_v47 }
 0x12e   :  { %v111_v50 = vmul.f32 %v109_v49, %v101_v47 }
 0x12f   :  { %v102_v51 = vpop.f32.mrf.mxu1 }
 0x130   :  { %v103_v52 = vadd.f32 %v179_v45, %v102_v51  ;;  %v113_v53 = vadd.f32 %v111_v50, %v101_v47 }
 0x132   :  { %v108_v54 = vmul.f32 0.044715, %v103_v52  ;;  %v115_v56 = vmul.f32 0.7978846, %v113_v53  ;;  %v106_v0 = vmul.f32 0.5, %v103_v52 }
 0x134   :  { %v110_v55 = vmul.f32 %v108_v54, %v103_v52  ;;  %185 = vtanh.f32 %v115_v56 }
 0x136   :  { %v112_v57 = vmul.f32 %v110_v55, %v103_v52 }
 0x138   :  { %v114_v58 = vadd.f32 %v112_v57, %v103_v52 }
 0x13a   :  { %v116_v59 = vmul.f32 0.7978846, %v114_v58  ;;  %v186_v60 = vpop.eup %185 }
 0x13b   :  { %v119_v61 = vadd.f32 1.0, %v186_v60 }
 0x13c   :  { %187 = vtanh.f32 %v116_v59 }
 0x13d   :  { %v121_v2 = vmul.f32 %v119_v61, %v105_v63 }
 0x142   :  { %v188_v62 = vpop.eup %187 }
 0x143   :  { %v120_v1 = vadd.f32 1.0, %v188_v62 }
 0x145   :  { %v122_v3 = vmul.f32 %v120_v1, %v106_v0 }
 0x147   :  { %v128_v4 = vpack.c.bf16 %v122_v3, %v121_v2 }
 0x149   :  { %174 = vmatmul.msk.bf16.vlgmr.msra.gmra.mxu2 %vm41_vm0, %v128_v4 }
 0x1cc   :  { %v146_v6 = vpop.f32.mrf.mxu2 }
 0x1cd   :  { %v147_v7 = vadd.f32 %v180_v5, %v146_v6 }
 0x1cf   :  { %152 = vst.msk [vmem:[#allocation2] sm:$0xff] %vm151_vm1, %v147_v7 }
 0x1d4   :  { %v148_v8 = vpop.f32.mrf.mxu2 }
 0x1d5   :  { %v149_v9 = vadd.f32 %v180_v5, %v148_v8 }
 0x1d7   :  { %153 = vst.msk [vmem:[#allocation2 + $0x8] sm:$0xff] %vm151_vm1, %v149_v9 }
 0x1d8   :  { %166 = dma.vmem_to_hbm [thread:$0]  %s159_s30, 256, %s161_s10, [#allocation3], %s216_s11, %s216_s11, %s217_s12  }
 0x1d9   :  { %213 = dma.done.wait [#allocation3], 256  }
 0x1da   :  { %214 = vsyncadd [#allocation3], 4294967040 }
 0x1db   :  { %171 = vsyncpa [#allocation3], 1 }

</bundles_post_ra>
